<compile_context>
chip_gen: v7x
topology: tpu7x:2x2x1
jax: 0.10.0
libtpu: 0.0.40
codegen_flags: <defaults>
</compile_context>

<pallas_src>
import functools
import math

import jax
import jax.numpy as jnp
from jax import lax
from jax.experimental import pallas as pl
from jax.experimental.pallas import tpu as pltpu


def _round8(n):
    return -(-n // 8) * 8


def _weight_layout(input_size, hidden, num_layers, output_size):
    """Row offsets of every parameter inside the packed (rows, 128) array.

    Every segment starts at an 8-row-aligned offset so in-kernel slices are
    sublane-aligned; all segments are stored left-justified in 128 lanes and
    zero padded, so full-lane loads are always safe.
    """
    entries = [('wih0', input_size), ('whh0', hidden), ('lb0', 1)]
    for l in range(1, num_layers):
        entries += [(f'wih{l}', hidden), (f'whh{l}', hidden), (f'lb{l}', 1)]
    entries += [('wqkv', hidden), ('bqkv', 1), ('wo', hidden), ('bo', 1),
                ('fw1', hidden), ('fb1', 1), ('fw2', 64), ('fb2', 1)]
    layout, off = {}, 0
    for name, rows in entries:
        layout[name] = (off, rows)
        off += _round8(rows)
    return layout, off


# ----------------------------------------------------------------------------
# Fused forward kernel (built per static T, B, Din, H, O, num_layers).
# ----------------------------------------------------------------------------
def _make_fused_kernel(T, B, Din, H, O, num_layers, wlayout):
    E = H                                   # unidirectional, single head
    L = num_layers
    f32 = jnp.float32

    def kernel(x_ref, mask_ref, amask_ref, pool_ref, wp_ref, out_ref, seq_ref):

        def wld(name):                      # full-lane (128), sublane-aligned load
            off, rows = wlayout[name]
            return wp_ref[off:off + rows, :]

        # ---- layer-0 input projection: hoisted off the recurrence ------------
        # One tiny independent matmul per step from the (T,B,Din) leading-axis
        # ref: no mid-vreg sublane slicing inside the unrolled recurrence.
        wih0 = wld('wih0')
        lb0 = wld('lb0')
        pre0 = [jnp.dot(x_ref[t], wih0, preferred_element_type=f32) + lb0
                for t in range(T)]                            # T x (B, 4H)

        # ---- wavefront over the L x T recurrence (dependent depth T+L-1) -----
        h = [jnp.zeros((B, H), f32) for _ in range(L)]
        c = [jnp.zeros((B, H), f32) for _ in range(L)]
        for wv in range(T + L - 1):
            new_h, new_c = list(h), list(c)
            for l in range(L):
                t = wv - l
                if t < 0 or t >= T:
                    continue
                if l == 0:
                    gates = pre0[t] + jnp.dot(h[0], wld('whh0'),
                                              preferred_element_type=f32)
                else:
                    # h[l-1] still holds the previous wave's value, i.e. the
                    # output of layer l-1 at exactly this step t.
                    gates = (jnp.dot(h[l - 1], wld(f'wih{l}'),
                                     preferred_element_type=f32)
                             + jnp.dot(h[l], wld(f'whh{l}'),
                                       preferred_element_type=f32)
                             + wld(f'lb{l}'))
                sg = jax.nn.sigmoid(gates)        # one full-width EUP pass (i,f,o)
                th = jnp.tanh(gates)              # one full-width EUP pass (g)
                i_g = sg[:, 0 * H:1 * H]
                f_g = sg[:, 1 * H:2 * H]
                g_g = th[:, 2 * H:3 * H]
                o_g = sg[:, 3 * H:4 * H]
                nc = f_g * c[l] + i_g * g_g
                nh = o_g * jnp.tanh(nc)
                new_c[l], new_h[l] = nc, nh
                if l == L - 1:
                    # t-major staging: one aligned (B,H) row-slab store per step,
                    # off the recurrent chain.
                    seq_ref[t * B:(t + 1) * B, :] = nh
            h, c = new_h, new_c

        # ---- pack/pad semantics + single-head attention, all 2-D matmuls -----
        seq = seq_ref[...] * mask_ref[...]                    # (T*B, E), padded rows -> 0

        qkv = jnp.dot(seq, wld('wqkv'), preferred_element_type=f32) + wld('bqkv')
        q = qkv[:, 0 * E:1 * E]
        k = qkv[:, 1 * E:2 * E]
        v = qkv[:, 2 * E:3 * E]

        scores = lax.dot_general(q, k, (((1,), (1,)), ((), ())),
                                 preferred_element_type=f32)  # (T*B, T*B)
        scores = scores * (1.0 / math.sqrt(E)) + amask_ref[...]
        m = jnp.max(scores, axis=-1, keepdims=True)
        p = jnp.exp(scores - m)
        attn = p / jnp.sum(p, axis=-1, keepdims=True)         # exact softmax

        # mean over time folded into the attention weights, then out-projection
        wbar = jnp.dot(pool_ref[...], attn, preferred_element_type=f32)  # (B, T*B)
        ctx = jnp.dot(wbar, v, preferred_element_type=f32)               # (B, E)
        pooled = (jnp.dot(ctx, wld('wo'), preferred_element_type=f32)
                  + wld('bo'))[:, :E]

        # fc head: Linear(E,64) -> ReLU -> Dropout(eval) -> Linear(64,O)
        h1 = jnp.maximum(jnp.dot(pooled, wld('fw1'), preferred_element_type=f32)
                         + wld('fb1'), 0.0)[:, :64]
        out_ref[...] = (jnp.dot(h1, wld('fw2'), preferred_element_type=f32)
                        + wld('fb2'))[:, :O]

    return kernel


# ----------------------------------------------------------------------------
# Wrapper: layout plumbing + single pallas_call (no grid, fully VMEM resident).
# ----------------------------------------------------------------------------
def rnn_model_forward(x, lengths, wpack, *, input_size, hidden, num_layers,
                      output_size):
    """x: (B, T, input_size) f32, lengths: (B,) int32, wpack: packed weights.

    Returns (B, output_size) f32.  Assumes max(lengths) == T.
    """
    B, T, Din = x.shape
    assert Din == input_size
    H, O, L = hidden, output_size, num_layers
    wlayout, wrows = _weight_layout(Din, H, L, O)
    assert wpack.shape == (wrows, 128)

    # Layout plumbing stays in the wrapper (free): time-major input, t-major
    # validity mask, additive cross-batch score mask and time-mean pooling
    # matrix for the flattened (T*B, T*B) attention.
    x_tm = jnp.transpose(x, (1, 0, 2))                                  # (T, B, Din)
    valid = (jnp.arange(T)[:, None] < lengths[None, :]).reshape(T * B, 1)
    mask = jnp.broadcast_to(valid, (T * B, H)).astype(jnp.float32)      # rows (t, b)
    r = jnp.arange(T * B)
    same = (r[:, None] % B) == (r[None, :] % B)
    amask = jnp.where(same, 0.0, -1e30).astype(jnp.float32)             # (T*B, T*B)
    pool = ((r[None, :] % B) == jnp.arange(B)[:, None]).astype(jnp.float32) / T

    vmem = pl.BlockSpec(memory_space=pltpu.MemorySpace.VMEM)
    kernel = _make_fused_kernel(T, B, Din, H, O, L, wlayout)
    return pl.pallas_call(
        kernel,
        out_shape=jax.ShapeDtypeStruct((B, O), jnp.float32),
        in_specs=[vmem] * 5,
        out_specs=vmem,
        scratch_shapes=[pltpu.VMEM((T * B, H), jnp.float32)],  # t-major rnn_out staging
    )(x_tm, mask, amask, pool, wpack)


# ----------------------------------------------------------------------------
# Deterministic parameter initialization (PyTorch-like uniform ranges) + packing.
# ----------------------------------------------------------------------------
def init_params(key, input_size, hidden, num_layers, output_size):
    E = hidden
    keys = iter(jax.random.split(key, num_layers * 4 + 8))

    def u(k, shape, bound):
        return jax.random.uniform(k, shape, jnp.float32, -bound, bound)

    params = {'lstm': [], 'attn_fc': {}}
    bound = 1.0 / math.sqrt(hidden)
    for layer in range(num_layers):
        din = input_size if layer == 0 else hidden
        w_ih = u(next(keys), (4 * hidden, din), bound)      # PyTorch (4H, Din), gates i,f,g,o
        w_hh = u(next(keys), (4 * hidden, hidden), bound)   # PyTorch (4H, H)
        b_ih = u(next(keys), (4 * hidden,), bound)
        b_hh = u(next(keys), (4 * hidden,), bound)
        params['lstm'].append({
            'w_ih_t': w_ih.T,                               # (Din, 4H)
            'w_hh_t': w_hh.T,                               # (H, 4H)
            'b': (b_ih + b_hh).reshape(1, 4 * hidden),
        })

    # nn.MultiheadAttention(embed_dim=E, num_heads=1): fused QKV weights.
    ab = 1.0 / math.sqrt(E)
    in_proj_w = u(next(keys), (3 * E, E), ab)               # [Wq; Wk; Wv]
    out_proj_w = u(next(keys), (E, E), ab)
    af = params['attn_fc']
    af['wqkv'] = in_proj_w.T                                # (E, 3E)
    af['bqkv'] = jnp.zeros((1, 3 * E), jnp.float32)
    af['wo'] = out_proj_w.T                                 # (E, E)
    af['bo'] = jnp.zeros((1, E), jnp.float32)

    # fc: Linear(E, 64) -> ReLU -> Dropout (eval) -> Linear(64, output_size)
    b1 = 1.0 / math.sqrt(E)
    af['w1'] = u(next(keys), (64, E), b1).T                 # (E, 64)
    af['b1'] = u(next(keys), (64,), b1).reshape(1, 64)
    b2 = 1.0 / math.sqrt(64)
    af['w2'] = u(next(keys), (output_size, 64), b2).T       # (64, O)
    af['b2'] = u(next(keys), (output_size,), b2).reshape(1, output_size)
    return params


def pack_params(params, *, input_size, hidden, num_layers, output_size):
    """Pack all parameters into one (rows, 128) f32 array (one DMA at kernel entry)."""
    assert 4 * hidden <= 128 and 3 * hidden <= 128 and output_size <= 128
    wlayout, rows = _weight_layout(input_size, hidden, num_layers, output_size)
    wp = jnp.zeros((rows, 128), jnp.float32)

    def put(wp, name, arr):
        off, r = wlayout[name]
        assert arr.shape[0] == r
        return wp.at[off:off + arr.shape[0], 0:arr.shape[1]].set(arr)

    for l, lp in enumerate(params['lstm']):
        wp = put(wp, f'wih{l}', lp['w_ih_t'])
        wp = put(wp, f'whh{l}', lp['w_hh_t'])
        wp = put(wp, f'lb{l}', lp['b'])
    af = params['attn_fc']
    wp = put(wp, 'wqkv', af['wqkv'])
    wp = put(wp, 'bqkv', af['bqkv'])
    wp = put(wp, 'wo', af['wo'])
    wp = put(wp, 'bo', af['bo'])
    wp = put(wp, 'fw1', af['w1'])
    wp = put(wp, 'fb1', af['b1'])
    wp = put(wp, 'fw2', af['w2'])
    wp = put(wp, 'fb2', af['b2'])
    return wp


if __name__ == "__main__":
    B, T = 2, 8
    INPUT_SIZE = 16
    HIDDEN = 32          # rnn_output_size == embed_dim (unidirectional)
    NUM_LAYERS = 3
    OUTPUT_SIZE = 10

    key = jax.random.PRNGKey(0)
    k_param, k_x = jax.random.split(key)
    params = init_params(k_param, INPUT_SIZE, HIDDEN, NUM_LAYERS, OUTPUT_SIZE)
    wpack = pack_params(params, input_size=INPUT_SIZE, hidden=HIDDEN,
                        num_layers=NUM_LAYERS, output_size=OUTPUT_SIZE)

    x = jax.random.normal(k_x, (B, T, INPUT_SIZE), jnp.float32)
    lengths = jnp.array([T, 5], dtype=jnp.int32)   # max(length) == T (pad_packed T_max)

    fwd = jax.jit(functools.partial(
        rnn_model_forward, input_size=INPUT_SIZE, hidden=HIDDEN,
        num_layers=NUM_LAYERS, output_size=OUTPUT_SIZE))
    out = fwd(x, lengths, wpack)
    out = jax.block_until_ready(out)
    assert out.shape == (B, OUTPUT_SIZE)
    print("KERNEL_OK")
</pallas_src>

<mosaic_0001>
module attributes {stable_mosaic.version = 11 : i64} {
  func.func @kernel(%arg0: memref<8x2x16xf32, #tpu.memory_space<vmem>>, %arg1: memref<16x32xf32, #tpu.memory_space<vmem>>, %arg2: memref<16x16xf32, #tpu.memory_space<vmem>>, %arg3: memref<2x16xf32, #tpu.memory_space<vmem>>, %arg4: memref<392x128xf32, #tpu.memory_space<vmem>>, %arg5: memref<2x10xf32, #tpu.memory_space<vmem>>, %arg6: memref<16x32xf32, #tpu.memory_space<vmem>>) attributes {dimension_semantics = [], scalar_prefetch = 0 : i64, scratch_operands = 1 : i64, tpu.core_type = #tpu.core_type<tc>} {
    %c0 = arith.constant 0 : index
    %c0_0 = arith.constant 0 : index
    %0 = vector.load %arg4[%c0, %c0_0] : memref<392x128xf32, #tpu.memory_space<vmem>>, vector<16x128xf32>
    %c48 = arith.constant 48 : index
    %c0_1 = arith.constant 0 : index
    %1 = vector.load %arg4[%c48, %c0_1] : memref<392x128xf32, #tpu.memory_space<vmem>>, vector<1x128xf32>
    %c0_2 = arith.constant 0 : index
    %c0_3 = arith.constant 0 : index
    %c0_4 = arith.constant 0 : index
    %2 = vector.load %arg0[%c0_2, %c0_3, %c0_4] : memref<8x2x16xf32, #tpu.memory_space<vmem>>, vector<1x2x16xf32>
    %3 = vector.shape_cast %2 : vector<1x2x16xf32> to vector<2x16xf32>
    %cst = arith.constant dense<0.000000e+00> : vector<2x128xf32>
    %4 = tpu.matmul %3, %0, %cst {dimension_numbers = #tpu.dot_dimension_numbers<[1], [0], [0], [1], [0, 0, 1, 1], [], []>} : vector<2x16xf32>, vector<16x128xf32>, vector<2x128xf32> -> vector<2x128xf32>
    %5 = vector.broadcast %1 : vector<1x128xf32> to vector<2x128xf32>
    %6 = arith.addf %4, %5 : vector<2x128xf32>
    %c1 = arith.constant 1 : index
    %c0_5 = arith.constant 0 : index
    %c0_6 = arith.constant 0 : index
    %7 = vector.load %arg0[%c1, %c0_5, %c0_6] : memref<8x2x16xf32, #tpu.memory_space<vmem>>, vector<1x2x16xf32>
    %8 = vector.shape_cast %7 : vector<1x2x16xf32> to vector<2x16xf32>
    %cst_7 = arith.constant dense<0.000000e+00> : vector<2x128xf32>
    %9 = tpu.matmul %8, %0, %cst_7 {dimension_numbers = #tpu.dot_dimension_numbers<[1], [0], [0], [1], [0, 0, 1, 1], [], []>} : vector<2x16xf32>, vector<16x128xf32>, vector<2x128xf32> -> vector<2x128xf32>
    %10 = vector.broadcast %1 : vector<1x128xf32> to vector<2x128xf32>
    %11 = arith.addf %9, %10 : vector<2x128xf32>
    %c2 = arith.constant 2 : index
    %c0_8 = arith.constant 0 : index
    %c0_9 = arith.constant 0 : index
    %12 = vector.load %arg0[%c2, %c0_8, %c0_9] : memref<8x2x16xf32, #tpu.memory_space<vmem>>, vector<1x2x16xf32>
    %13 = vector.shape_cast %12 : vector<1x2x16xf32> to vector<2x16xf32>
    %cst_10 = arith.constant dense<0.000000e+00> : vector<2x128xf32>
    %14 = tpu.matmul %13, %0, %cst_10 {dimension_numbers = #tpu.dot_dimension_numbers<[1], [0], [0], [1], [0, 0, 1, 1], [], []>} : vector<2x16xf32>, vector<16x128xf32>, vector<2x128xf32> -> vector<2x128xf32>
    %15 = vector.broadcast %1 : vector<1x128xf32> to vector<2x128xf32>
    %16 = arith.addf %14, %15 : vector<2x128xf32>
    %c3 = arith.constant 3 : index
    %c0_11 = arith.constant 0 : index
    %c0_12 = arith.constant 0 : index
    %17 = vector.load %arg0[%c3, %c0_11, %c0_12] : memref<8x2x16xf32, #tpu.memory_space<vmem>>, vector<1x2x16xf32>
    %18 = vector.shape_cast %17 : vector<1x2x16xf32> to vector<2x16xf32>
    %cst_13 = arith.constant dense<0.000000e+00> : vector<2x128xf32>
    %19 = tpu.matmul %18, %0, %cst_13 {dimension_numbers = #tpu.dot_dimension_numbers<[1], [0], [0], [1], [0, 0, 1, 1], [], []>} : vector<2x16xf32>, vector<16x128xf32>, vector<2x128xf32> -> vector<2x128xf32>
    %20 = vector.broadcast %1 : vector<1x128xf32> to vector<2x128xf32>
    %21 = arith.addf %19, %20 : vector<2x128xf32>
    %c4 = arith.constant 4 : index
    %c0_14 = arith.constant 0 : index
    %c0_15 = arith.constant 0 : index
    %22 = vector.load %arg0[%c4, %c0_14, %c0_15] : memref<8x2x16xf32, #tpu.memory_space<vmem>>, vector<1x2x16xf32>
    %23 = vector.shape_cast %22 : vector<1x2x16xf32> to vector<2x16xf32>
    %cst_16 = arith.constant dense<0.000000e+00> : vector<2x128xf32>
    %24 = tpu.matmul %23, %0, %cst_16 {dimension_numbers = #tpu.dot_dimension_numbers<[1], [0], [0], [1], [0, 0, 1, 1], [], []>} : vector<2x16xf32>, vector<16x128xf32>, vector<2x128xf32> -> vector<2x128xf32>
    %25 = vector.broadcast %1 : vector<1x128xf32> to vector<2x128xf32>
    %26 = arith.addf %24, %25 : vector<2x128xf32>
    %c5 = arith.constant 5 : index
    %c0_17 = arith.constant 0 : index
    %c0_18 = arith.constant 0 : index
    %27 = vector.load %arg0[%c5, %c0_17, %c0_18] : memref<8x2x16xf32, #tpu.memory_space<vmem>>, vector<1x2x16xf32>
    %28 = vector.shape_cast %27 : vector<1x2x16xf32> to vector<2x16xf32>
    %cst_19 = arith.constant dense<0.000000e+00> : vector<2x128xf32>
    %29 = tpu.matmul %28, %0, %cst_19 {dimension_numbers = #tpu.dot_dimension_numbers<[1], [0], [0], [1], [0, 0, 1, 1], [], []>} : vector<2x16xf32>, vector<16x128xf32>, vector<2x128xf32> -> vector<2x128xf32>
    %30 = vector.broadcast %1 : vector<1x128xf32> to vector<2x128xf32>
    %31 = arith.addf %29, %30 : vector<2x128xf32>
    %c6 = arith.constant 6 : index
    %c0_20 = arith.constant 0 : index
    %c0_21 = arith.constant 0 : index
    %32 = vector.load %arg0[%c6, %c0_20, %c0_21] : memref<8x2x16xf32, #tpu.memory_space<vmem>>, vector<1x2x16xf32>
    %33 = vector.shape_cast %32 : vector<1x2x16xf32> to vector<2x16xf32>
    %cst_22 = arith.constant dense<0.000000e+00> : vector<2x128xf32>
    %34 = tpu.matmul %33, %0, %cst_22 {dimension_numbers = #tpu.dot_dimension_numbers<[1], [0], [0], [1], [0, 0, 1, 1], [], []>} : vector<2x16xf32>, vector<16x128xf32>, vector<2x128xf32> -> vector<2x128xf32>
    %35 = vector.broadcast %1 : vector<1x128xf32> to vector<2x128xf32>
    %36 = arith.addf %34, %35 : vector<2x128xf32>
    %c7 = arith.constant 7 : index
    %c0_23 = arith.constant 0 : index
    %c0_24 = arith.constant 0 : index
    %37 = vector.load %arg0[%c7, %c0_23, %c0_24] : memref<8x2x16xf32, #tpu.memory_space<vmem>>, vector<1x2x16xf32>
    %38 = vector.shape_cast %37 : vector<1x2x16xf32> to vector<2x16xf32>
    %cst_25 = arith.constant dense<0.000000e+00> : vector<2x128xf32>
    %39 = tpu.matmul %38, %0, %cst_25 {dimension_numbers = #tpu.dot_dimension_numbers<[1], [0], [0], [1], [0, 0, 1, 1], [], []>} : vector<2x16xf32>, vector<16x128xf32>, vector<2x128xf32> -> vector<2x128xf32>
    %40 = vector.broadcast %1 : vector<1x128xf32> to vector<2x128xf32>
    %41 = arith.addf %39, %40 : vector<2x128xf32>
    %cst_26 = arith.constant 0.000000e+00 : f32
    %42 = vector.broadcast %cst_26 : f32 to vector<2x32xf32>
    %cst_27 = arith.constant 0.000000e+00 : f32
    %43 = vector.broadcast %cst_27 : f32 to vector<2x32xf32>
    %cst_28 = arith.constant 0.000000e+00 : f32
    %44 = vector.broadcast %cst_28 : f32 to vector<2x32xf32>
    %cst_29 = arith.constant 0.000000e+00 : f32
    %45 = vector.broadcast %cst_29 : f32 to vector<2x32xf32>
    %cst_30 = arith.constant 0.000000e+00 : f32
    %46 = vector.broadcast %cst_30 : f32 to vector<2x32xf32>
    %cst_31 = arith.constant 0.000000e+00 : f32
    %47 = vector.broadcast %cst_31 : f32 to vector<2x32xf32>
    %c16 = arith.constant 16 : index
    %c0_32 = arith.constant 0 : index
    %48 = vector.load %arg4[%c16, %c0_32] : memref<392x128xf32, #tpu.memory_space<vmem>>, vector<32x128xf32>
    %cst_33 = arith.constant dense<0.000000e+00> : vector<2x128xf32>
    %49 = tpu.matmul %42, %48, %cst_33 {dimension_numbers = #tpu.dot_dimension_numbers<[1], [0], [0], [1], [0, 0, 1, 1], [], []>} : vector<2x32xf32>, vector<32x128xf32>, vector<2x128xf32> -> vector<2x128xf32>
    %50 = arith.addf %6, %49 : vector<2x128xf32>
    %51 = arith.negf %50 : vector<2x128xf32>
    %52 = math.exp %51 : vector<2x128xf32>
    %cst_34 = arith.constant 1.000000e+00 : f32
    %53 = vector.broadcast %cst_34 : f32 to vector<2x128xf32>
    %54 = arith.addf %53, %52 : vector<2x128xf32>
    %55 = arith.divf %53, %54 : vector<2x128xf32>
    %56 = math.tanh %50 : vector<2x128xf32>
    %57 = vector.extract_strided_slice %55 {offsets = [0, 0], sizes = [2, 32], strides = [1, 1]} : vector<2x128xf32> to vector<2x32xf32>
    %58 = vector.extract_strided_slice %55 {offsets = [0, 32], sizes = [2, 32], strides = [1, 1]} : vector<2x128xf32> to vector<2x32xf32>
    %59 = vector.extract_strided_slice %56 {offsets = [0, 64], sizes = [2, 32], strides = [1, 1]} : vector<2x128xf32> to vector<2x32xf32>
    %60 = vector.extract_strided_slice %55 {offsets = [0, 96], sizes = [2, 32], strides = [1, 1]} : vector<2x128xf32> to vector<2x32xf32>
    %61 = arith.mulf %58, %45 : vector<2x32xf32>
    %62 = arith.mulf %57, %59 : vector<2x32xf32>
    %63 = arith.addf %61, %62 : vector<2x32xf32>
    %64 = math.tanh %63 : vector<2x32xf32>
    %65 = arith.mulf %60, %64 : vector<2x32xf32>
    %c16_35 = arith.constant 16 : index
    %c0_36 = arith.constant 0 : index
    %66 = vector.load %arg4[%c16_35, %c0_36] : memref<392x128xf32, #tpu.memory_space<vmem>>, vector<32x128xf32>
    %cst_37 = arith.constant dense<0.000000e+00> : vector<2x128xf32>
    %67 = tpu.matmul %65, %66, %cst_37 {dimension_numbers = #tpu.dot_dimension_numbers<[1], [0], [0], [1], [0, 0, 1, 1], [], []>} : vector<2x32xf32>, vector<32x128xf32>, vector<2x128xf32> -> vector<2x128xf32>
    %68 = arith.addf %11, %67 : vector<2x128xf32>
    %69 = arith.negf %68 : vector<2x128xf32>
    %70 = math.exp %69 : vector<2x128xf32>
    %cst_38 = arith.constant 1.000000e+00 : f32
    %71 = vector.broadcast %cst_38 : f32 to vector<2x128xf32>
    %72 = arith.addf %71, %70 : vector<2x128xf32>
    %73 = arith.divf %71, %72 : vector<2x128xf32>
    %74 = math.tanh %68 : vector<2x128xf32>
    %75 = vector.extract_strided_slice %73 {offsets = [0, 0], sizes = [2, 32], strides = [1, 1]} : vector<2x128xf32> to vector<2x32xf32>
    %76 = vector.extract_strided_slice %73 {offsets = [0, 32], sizes = [2, 32], strides = [1, 1]} : vector<2x128xf32> to vector<2x32xf32>
    %77 = vector.extract_strided_slice %74 {offsets = [0, 64], sizes = [2, 32], strides = [1, 1]} : vector<2x128xf32> to vector<2x32xf32>
    %78 = vector.extract_strided_slice %73 {offsets = [0, 96], sizes = [2, 32], strides = [1, 1]} : vector<2x128xf32> to vector<2x32xf32>
    %79 = arith.mulf %76, %63 : vector<2x32xf32>
    %80 = arith.mulf %75, %77 : vector<2x32xf32>
    %81 = arith.addf %79, %80 : vector<2x32xf32>
    %82 = math.tanh %81 : vector<2x32xf32>
    %83 = arith.mulf %78, %82 : vector<2x32xf32>
    %c56 = arith.constant 56 : index
    %c0_39 = arith.constant 0 : index
    %84 = vector.load %arg4[%c56, %c0_39] : memref<392x128xf32, #tpu.memory_space<vmem>>, vector<32x128xf32>
    %cst_40 = arith.constant dense<0.000000e+00> : vector<2x128xf32>
    %85 = tpu.matmul %65, %84, %cst_40 {dimension_numbers = #tpu.dot_dimension_numbers<[1], [0], [0], [1], [0, 0, 1, 1], [], []>} : vector<2x32xf32>, vector<32x128xf32>, vector<2x128xf32> -> vector<2x128xf32>
    %c88 = arith.constant 88 : index
    %c0_41 = arith.constant 0 : index
    %86 = vector.load %arg4[%c88, %c0_41] : memref<392x128xf32, #tpu.memory_space<vmem>>, vector<32x128xf32>
    %cst_42 = arith.constant dense<0.000000e+00> : vector<2x128xf32>
    %87 = tpu.matmul %43, %86, %cst_42 {dimension_numbers = #tpu.dot_dimension_numbers<[1], [0], [0], [1], [0, 0, 1, 1], [], []>} : vector<2x32xf32>, vector<32x128xf32>, vector<2x128xf32> -> vector<2x128xf32>
    %88 = arith.addf %85, %87 : vector<2x128xf32>
    %c120 = arith.constant 120 : index
    %c0_43 = arith.constant 0 : index
    %89 = vector.load %arg4[%c120, %c0_43] : memref<392x128xf32, #tpu.memory_space<vmem>>, vector<1x128xf32>
    %90 = vector.broadcast %89 : vector<1x128xf32> to vector<2x128xf32>
    %91 = arith.addf %88, %90 : vector<2x128xf32>
    %92 = arith.negf %91 : vector<2x128xf32>
    %93 = math.exp %92 : vector<2x128xf32>
    %cst_44 = arith.constant 1.000000e+00 : f32
    %94 = vector.broadcast %cst_44 : f32 to vector<2x128xf32>
    %95 = arith.addf %94, %93 : vector<2x128xf32>
    %96 = arith.divf %94, %95 : vector<2x128xf32>
    %97 = math.tanh %91 : vector<2x128xf32>
    %98 = vector.extract_strided_slice %96 {offsets = [0, 0], sizes = [2, 32], strides = [1, 1]} : vector<2x128xf32> to vector<2x32xf32>
    %99 = vector.extract_strided_slice %96 {offsets = [0, 32], sizes = [2, 32], strides = [1, 1]} : vector<2x128xf32> to vector<2x32xf32>
    %100 = vector.extract_strided_slice %97 {offsets = [0, 64], sizes = [2, 32], strides = [1, 1]} : vector<2x128xf32> to vector<2x32xf32>
    %101 = vector.extract_strided_slice %96 {offsets = [0, 96], sizes = [2, 32], strides = [1, 1]} : vector<2x128xf32> to vector<2x32xf32>
    %102 = arith.mulf %99, %46 : vector<2x32xf32>
    %103 = arith.mulf %98, %100 : vector<2x32xf32>
    %104 = arith.addf %102, %103 : vector<2x32xf32>
    %105 = math.tanh %104 : vector<2x32xf32>
    %106 = arith.mulf %101, %105 : vector<2x32xf32>
    %c16_45 = arith.constant 16 : index
    %c0_46 = arith.constant 0 : index
    %107 = vector.load %arg4[%c16_45, %c0_46] : memref<392x128xf32, #tpu.memory_space<vmem>>, vector<32x128xf32>
    %cst_47 = arith.constant dense<0.000000e+00> : vector<2x128xf32>
    %108 = tpu.matmul %83, %107, %cst_47 {dimension_numbers = #tpu.dot_dimension_numbers<[1], [0], [0], [1], [0, 0, 1, 1], [], []>} : vector<2x32xf32>, vector<32x128xf32>, vector<2x128xf32> -> vector<2x128xf32>
    %109 = arith.addf %16, %108 : vector<2x128xf32>
    %110 = arith.negf %109 : vector<2x128xf32>
    %111 = math.exp %110 : vector<2x128xf32>
    %cst_48 = arith.constant 1.000000e+00 : f32
    %112 = vector.broadcast %cst_48 : f32 to vector<2x128xf32>
    %113 = arith.addf %112, %111 : vector<2x128xf32>
    %114 = arith.divf %112, %113 : vector<2x128xf32>
    %115 = math.tanh %109 : vector<2x128xf32>
    %116 = vector.extract_strided_slice %114 {offsets = [0, 0], sizes = [2, 32], strides = [1, 1]} : vector<2x128xf32> to vector<2x32xf32>
    %117 = vector.extract_strided_slice %114 {offsets = [0, 32], sizes = [2, 32], strides = [1, 1]} : vector<2x128xf32> to vector<2x32xf32>
    %118 = vector.extract_strided_slice %115 {offsets = [0, 64], sizes = [2, 32], strides = [1, 1]} : vector<2x128xf32> to vector<2x32xf32>
    %119 = vector.extract_strided_slice %114 {offsets = [0, 96], sizes = [2, 32], strides = [1, 1]} : vector<2x128xf32> to vector<2x32xf32>
    %120 = arith.mulf %117, %81 : vector<2x32xf32>
    %121 = arith.mulf %116, %118 : vector<2x32xf32>
    %122 = arith.addf %120, %121 : vector<2x32xf32>
    %123 = math.tanh %122 : vector<2x32xf32>
    %124 = arith.mulf %119, %123 : vector<2x32xf32>
    %c56_49 = arith.constant 56 : index
    %c0_50 = arith.constant 0 : index
    %125 = vector.load %arg4[%c56_49, %c0_50] : memref<392x128xf32, #tpu.memory_space<vmem>>, vector<32x128xf32>
    %cst_51 = arith.constant dense<0.000000e+00> : vector<2x128xf32>
    %126 = tpu.matmul %83, %125, %cst_51 {dimension_numbers = #tpu.dot_dimension_numbers<[1], [0], [0], [1], [0, 0, 1, 1], [], []>} : vector<2x32xf32>, vector<32x128xf32>, vector<2x128xf32> -> vector<2x128xf32>
    %c88_52 = arith.constant 88 : index
    %c0_53 = arith.constant 0 : index
    %127 = vector.load %arg4[%c88_52, %c0_53] : memref<392x128xf32, #tpu.memory_space<vmem>>, vector<32x128xf32>
    %cst_54 = arith.constant dense<0.000000e+00> : vector<2x128xf32>
    %128 = tpu.matmul %106, %127, %cst_54 {dimension_numbers = #tpu.dot_dimension_numbers<[1], [0], [0], [1], [0, 0, 1, 1], [], []>} : vector<2x32xf32>, vector<32x128xf32>, vector<2x128xf32> -> vector<2x128xf32>
    %129 = arith.addf %126, %128 : vector<2x128xf32>
    %c120_55 = arith.constant 120 : index
    %c0_56 = arith.constant 0 : index
    %130 = vector.load %arg4[%c120_55, %c0_56] : memref<392x128xf32, #tpu.memory_space<vmem>>, vector<1x128xf32>
    %131 = vector.broadcast %130 : vector<1x128xf32> to vector<2x128xf32>
    %132 = arith.addf %129, %131 : vector<2x128xf32>
    %133 = arith.negf %132 : vector<2x128xf32>
    %134 = math.exp %133 : vector<2x128xf32>
    %cst_57 = arith.constant 1.000000e+00 : f32
    %135 = vector.broadcast %cst_57 : f32 to vector<2x128xf32>
    %136 = arith.addf %135, %134 : vector<2x128xf32>
    %137 = arith.divf %135, %136 : vector<2x128xf32>
    %138 = math.tanh %132 : vector<2x128xf32>
    %139 = vector.extract_strided_slice %137 {offsets = [0, 0], sizes = [2, 32], strides = [1, 1]} : vector<2x128xf32> to vector<2x32xf32>
    %140 = vector.extract_strided_slice %137 {offsets = [0, 32], sizes = [2, 32], strides = [1, 1]} : vector<2x128xf32> to vector<2x32xf32>
    %141 = vector.extract_strided_slice %138 {offsets = [0, 64], sizes = [2, 32], strides = [1, 1]} : vector<2x128xf32> to vector<2x32xf32>
    %142 = vector.extract_strided_slice %137 {offsets = [0, 96], sizes = [2, 32], strides = [1, 1]} : vector<2x128xf32> to vector<2x32xf32>
    %143 = arith.mulf %140, %104 : vector<2x32xf32>
    %144 = arith.mulf %139, %141 : vector<2x32xf32>
    %145 = arith.addf %143, %144 : vector<2x32xf32>
    %146 = math.tanh %145 : vector<2x32xf32>
    %147 = arith.mulf %142, %146 : vector<2x32xf32>
    %c128 = arith.constant 128 : index
    %c0_58 = arith.constant 0 : index
    %148 = vector.load %arg4[%c128, %c0_58] : memref<392x128xf32, #tpu.memory_space<vmem>>, vector<32x128xf32>
    %cst_59 = arith.constant dense<0.000000e+00> : vector<2x128xf32>
    %149 = tpu.matmul %106, %148, %cst_59 {dimension_numbers = #tpu.dot_dimension_numbers<[1], [0], [0], [1], [0, 0, 1, 1], [], []>} : vector<2x32xf32>, vector<32x128xf32>, vector<2x128xf32> -> vector<2x128xf32>
    %c160 = arith.constant 160 : index
    %c0_60 = arith.constant 0 : index
    %150 = vector.load %arg4[%c160, %c0_60] : memref<392x128xf32, #tpu.memory_space<vmem>>, vector<32x128xf32>
    %cst_61 = arith.constant dense<0.000000e+00> : vector<2x128xf32>
    %151 = tpu.matmul %44, %150, %cst_61 {dimension_numbers = #tpu.dot_dimension_numbers<[1], [0], [0], [1], [0, 0, 1, 1], [], []>} : vector<2x32xf32>, vector<32x128xf32>, vector<2x128xf32> -> vector<2x128xf32>
    %152 = arith.addf %149, %151 : vector<2x128xf32>
    %c192 = arith.constant 192 : index
    %c0_62 = arith.constant 0 : index
    %153 = vector.load %arg4[%c192, %c0_62] : memref<392x128xf32, #tpu.memory_space<vmem>>, vector<1x128xf32>
    %154 = vector.broadcast %153 : vector<1x128xf32> to vector<2x128xf32>
    %155 = arith.addf %152, %154 : vector<2x128xf32>
    %156 = arith.negf %155 : vector<2x128xf32>
    %157 = math.exp %156 : vector<2x128xf32>
    %cst_63 = arith.constant 1.000000e+00 : f32
    %158 = vector.broadcast %cst_63 : f32 to vector<2x128xf32>
    %159 = arith.addf %158, %157 : vector<2x128xf32>
    %160 = arith.divf %158, %159 : vector<2x128xf32>
    %161 = math.tanh %155 : vector<2x128xf32>
    %162 = vector.extract_strided_slice %160 {offsets = [0, 0], sizes = [2, 32], strides = [1, 1]} : vector<2x128xf32> to vector<2x32xf32>
    %163 = vector.extract_strided_slice %160 {offsets = [0, 32], sizes = [2, 32], strides = [1, 1]} : vector<2x128xf32> to vector<2x32xf32>
    %164 = vector.extract_strided_slice %161 {offsets = [0, 64], sizes = [2, 32], strides = [1, 1]} : vector<2x128xf32> to vector<2x32xf32>
    %165 = vector.extract_strided_slice %160 {offsets = [0, 96], sizes = [2, 32], strides = [1, 1]} : vector<2x128xf32> to vector<2x32xf32>
    %166 = arith.mulf %163, %47 : vector<2x32xf32>
    %167 = arith.mulf %162, %164 : vector<2x32xf32>
    %168 = arith.addf %166, %167 : vector<2x32xf32>
    %169 = math.tanh %168 : vector<2x32xf32>
    %170 = arith.mulf %165, %169 : vector<2x32xf32>
    %c0_64 = arith.constant 0 : index
    %c0_65 = arith.constant 0 : index
    %171 = vector.load %arg6[%c0_64, %c0_65] : memref<16x32xf32, #tpu.memory_space<vmem>>, vector<2x32xf32>
    tpu.vector_store %arg6[%c0_64, %c0_65], %170 {strides = array<i32>} : memref<16x32xf32, #tpu.memory_space<vmem>>, vector<2x32xf32>,
    %c16_66 = arith.constant 16 : index
    %c0_67 = arith.constant 0 : index
    %172 = vector.load %arg4[%c16_66, %c0_67] : memref<392x128xf32, #tpu.memory_space<vmem>>, vector<32x128xf32>
    %cst_68 = arith.constant dense<0.000000e+00> : vector<2x128xf32>
    %173 = tpu.matmul %124, %172, %cst_68 {dimension_numbers = #tpu.dot_dimension_numbers<[1], [0], [0], [1], [0, 0, 1, 1], [], []>} : vector<2x32xf32>, vector<32x128xf32>, vector<2x128xf32> -> vector<2x128xf32>
    %174 = arith.addf %21, %173 : vector<2x128xf32>
    %175 = arith.negf %174 : vector<2x128xf32>
    %176 = math.exp %175 : vector<2x128xf32>
    %cst_69 = arith.constant 1.000000e+00 : f32
    %177 = vector.broadcast %cst_69 : f32 to vector<2x128xf32>
    %178 = arith.addf %177, %176 : vector<2x128xf32>
    %179 = arith.divf %177, %178 : vector<2x128xf32>
    %180 = math.tanh %174 : vector<2x128xf32>
    %181 = vector.extract_strided_slice %179 {offsets = [0, 0], sizes = [2, 32], strides = [1, 1]} : vector<2x128xf32> to vector<2x32xf32>
    %182 = vector.extract_strided_slice %179 {offsets = [0, 32], sizes = [2, 32], strides = [1, 1]} : vector<2x128xf32> to vector<2x32xf32>
    %183 = vector.extract_strided_slice %180 {offsets = [0, 64], sizes = [2, 32], strides = [1, 1]} : vector<2x128xf32> to vector<2x32xf32>
    %184 = vector.extract_strided_slice %179 {offsets = [0, 96], sizes = [2, 32], strides = [1, 1]} : vector<2x128xf32> to vector<2x32xf32>
    %185 = arith.mulf %182, %122 : vector<2x32xf32>
    %186 = arith.mulf %181, %183 : vector<2x32xf32>
    %187 = arith.addf %185, %186 : vector<2x32xf32>
    %188 = math.tanh %187 : vector<2x32xf32>
    %189 = arith.mulf %184, %188 : vector<2x32xf32>
    %c56_70 = arith.constant 56 : index
    %c0_71 = arith.constant 0 : index
    %190 = vector.load %arg4[%c56_70, %c0_71] : memref<392x128xf32, #tpu.memory_space<vmem>>, vector<32x128xf32>
    %cst_72 = arith.constant dense<0.000000e+00> : vector<2x128xf32>
    %191 = tpu.matmul %124, %190, %cst_72 {dimension_numbers = #tpu.dot_dimension_numbers<[1], [0], [0], [1], [0, 0, 1, 1], [], []>} : vector<2x32xf32>, vector<32x128xf32>, vector<2x128xf32> -> vector<2x128xf32>
    %c88_73 = arith.constant 88 : index
    %c0_74 = arith.constant 0 : index
    %192 = vector.load %arg4[%c88_73, %c0_74] : memref<392x128xf32, #tpu.memory_space<vmem>>, vector<32x128xf32>
    %cst_75 = arith.constant dense<0.000000e+00> : vector<2x128xf32>
    %193 = tpu.matmul %147, %192, %cst_75 {dimension_numbers = #tpu.dot_dimension_numbers<[1], [0], [0], [1], [0, 0, 1, 1], [], []>} : vector<2x32xf32>, vector<32x128xf32>, vector<2x128xf32> -> vector<2x128xf32>
    %194 = arith.addf %191, %193 : vector<2x128xf32>
    %c120_76 = arith.constant 120 : index
    %c0_77 = arith.constant 0 : index
    %195 = vector.load %arg4[%c120_76, %c0_77] : memref<392x128xf32, #tpu.memory_space<vmem>>, vector<1x128xf32>
    %196 = vector.broadcast %195 : vector<1x128xf32> to vector<2x128xf32>
    %197 = arith.addf %194, %196 : vector<2x128xf32>
    %198 = arith.negf %197 : vector<2x128xf32>
    %199 = math.exp %198 : vector<2x128xf32>
    %cst_78 = arith.constant 1.000000e+00 : f32
    %200 = vector.broadcast %cst_78 : f32 to vector<2x128xf32>
    %201 = arith.addf %200, %199 : vector<2x128xf32>
    %202 = arith.divf %200, %201 : vector<2x128xf32>
    %203 = math.tanh %197 : vector<2x128xf32>
    %204 = vector.extract_strided_slice %202 {offsets = [0, 0], sizes = [2, 32], strides = [1, 1]} : vector<2x128xf32> to vector<2x32xf32>
    %205 = vector.extract_strided_slice %202 {offsets = [0, 32], sizes = [2, 32], strides = [1, 1]} : vector<2x128xf32> to vector<2x32xf32>
    %206 = vector.extract_strided_slice %203 {offsets = [0, 64], sizes = [2, 32], strides = [1, 1]} : vector<2x128xf32> to vector<2x32xf32>
    %207 = vector.extract_strided_slice %202 {offsets = [0, 96], sizes = [2, 32], strides = [1, 1]} : vector<2x128xf32> to vector<2x32xf32>
    %208 = arith.mulf %205, %145 : vector<2x32xf32>
    %209 = arith.mulf %204, %206 : vector<2x32xf32>
    %210 = arith.addf %208, %209 : vector<2x32xf32>
    %211 = math.tanh %210 : vector<2x32xf32>
    %212 = arith.mulf %207, %211 : vector<2x32xf32>
    %c128_79 = arith.constant 128 : index
    %c0_80 = arith.constant 0 : index
    %213 = vector.load %arg4[%c128_79, %c0_80] : memref<392x128xf32, #tpu.memory_space<vmem>>, vector<32x128xf32>
    %cst_81 = arith.constant dense<0.000000e+00> : vector<2x128xf32>
    %214 = tpu.matmul %147, %213, %cst_81 {dimension_numbers = #tpu.dot_dimension_numbers<[1], [0], [0], [1], [0, 0, 1, 1], [], []>} : vector<2x32xf32>, vector<32x128xf32>, vector<2x128xf32> -> vector<2x128xf32>
    %c160_82 = arith.constant 160 : index
    %c0_83 = arith.constant 0 : index
    %215 = vector.load %arg4[%c160_82, %c0_83] : memref<392x128xf32, #tpu.memory_space<vmem>>, vector<32x128xf32>
    %cst_84 = arith.constant dense<0.000000e+00> : vector<2x128xf32>
    %216 = tpu.matmul %170, %215, %cst_84 {dimension_numbers = #tpu.dot_dimension_numbers<[1], [0], [0], [1], [0, 0, 1, 1], [], []>} : vector<2x32xf32>, vector<32x128xf32>, vector<2x128xf32> -> vector<2x128xf32>
    %217 = arith.addf %214, %216 : vector<2x128xf32>
    %c192_85 = arith.constant 192 : index
    %c0_86 = arith.constant 0 : index
    %218 = vector.load %arg4[%c192_85, %c0_86] : memref<392x128xf32, #tpu.memory_space<vmem>>, vector<1x128xf32>
    %219 = vector.broadcast %218 : vector<1x128xf32> to vector<2x128xf32>
    %220 = arith.addf %217, %219 : vector<2x128xf32>
    %221 = arith.negf %220 : vector<2x128xf32>
    %222 = math.exp %221 : vector<2x128xf32>
    %cst_87 = arith.constant 1.000000e+00 : f32
    %223 = vector.broadcast %cst_87 : f32 to vector<2x128xf32>
    %224 = arith.addf %223, %222 : vector<2x128xf32>
    %225 = arith.divf %223, %224 : vector<2x128xf32>
    %226 = math.tanh %220 : vector<2x128xf32>
    %227 = vector.extract_strided_slice %225 {offsets = [0, 0], sizes = [2, 32], strides = [1, 1]} : vector<2x128xf32> to vector<2x32xf32>
    %228 = vector.extract_strided_slice %225 {offsets = [0, 32], sizes = [2, 32], strides = [1, 1]} : vector<2x128xf32> to vector<2x32xf32>
    %229 = vector.extract_strided_slice %226 {offsets = [0, 64], sizes = [2, 32], strides = [1, 1]} : vector<2x128xf32> to vector<2x32xf32>
    %230 = vector.extract_strided_slice %225 {offsets = [0, 96], sizes = [2, 32], strides = [1, 1]} : vector<2x128xf32> to vector<2x32xf32>
    %231 = arith.mulf %228, %168 : vector<2x32xf32>
    %232 = arith.mulf %227, %229 : vector<2x32xf32>
    %233 = arith.addf %231, %232 : vector<2x32xf32>
    %234 = math.tanh %233 : vector<2x32xf32>
    %235 = arith.mulf %230, %234 : vector<2x32xf32>
    %c2_88 = arith.constant 2 : index
    %c0_89 = arith.constant 0 : index
    %236 = vector.load %arg6[%c2_88, %c0_89] : memref<16x32xf32, #tpu.memory_space<vmem>>, vector<2x32xf32>
    tpu.vector_store %arg6[%c2_88, %c0_89], %235 {strides = array<i32>} : memref<16x32xf32, #tpu.memory_space<vmem>>, vector<2x32xf32>,
    %c16_90 = arith.constant 16 : index
    %c0_91 = arith.constant 0 : index
    %237 = vector.load %arg4[%c16_90, %c0_91] : memref<392x128xf32, #tpu.memory_space<vmem>>, vector<32x128xf32>
    %cst_92 = arith.constant dense<0.000000e+00> : vector<2x128xf32>
    %238 = tpu.matmul %189, %237, %cst_92 {dimension_numbers = #tpu.dot_dimension_numbers<[1], [0], [0], [1], [0, 0, 1, 1], [], []>} : vector<2x32xf32>, vector<32x128xf32>, vector<2x128xf32> -> vector<2x128xf32>
    %239 = arith.addf %26, %238 : vector<2x128xf32>
    %240 = arith.negf %239 : vector<2x128xf32>
    %241 = math.exp %240 : vector<2x128xf32>
    %cst_93 = arith.constant 1.000000e+00 : f32
    %242 = vector.broadcast %cst_93 : f32 to vector<2x128xf32>
    %243 = arith.addf %242, %241 : vector<2x128xf32>
    %244 = arith.divf %242, %243 : vector<2x128xf32>
    %245 = math.tanh %239 : vector<2x128xf32>
    %246 = vector.extract_strided_slice %244 {offsets = [0, 0], sizes = [2, 32], strides = [1, 1]} : vector<2x128xf32> to vector<2x32xf32>
    %247 = vector.extract_strided_slice %244 {offsets = [0, 32], sizes = [2, 32], strides = [1, 1]} : vector<2x128xf32> to vector<2x32xf32>
    %248 = vector.extract_strided_slice %245 {offsets = [0, 64], sizes = [2, 32], strides = [1, 1]} : vector<2x128xf32> to vector<2x32xf32>
    %249 = vector.extract_strided_slice %244 {offsets = [0, 96], sizes = [2, 32], strides = [1, 1]} : vector<2x128xf32> to vector<2x32xf32>
    %250 = arith.mulf %247, %187 : vector<2x32xf32>
    %251 = arith.mulf %246, %248 : vector<2x32xf32>
    %252 = arith.addf %250, %251 : vector<2x32xf32>
    %253 = math.tanh %252 : vector<2x32xf32>
    %254 = arith.mulf %249, %253 : vector<2x32xf32>
    %c56_94 = arith.constant 56 : index
    %c0_95 = arith.constant 0 : index
    %255 = vector.load %arg4[%c56_94, %c0_95] : memref<392x128xf32, #tpu.memory_space<vmem>>, vector<32x128xf32>
    %cst_96 = arith.constant dense<0.000000e+00> : vector<2x128xf32>
    %256 = tpu.matmul %189, %255, %cst_96 {dimension_numbers = #tpu.dot_dimension_numbers<[1], [0], [0], [1], [0, 0, 1, 1], [], []>} : vector<2x32xf32>, vector<32x128xf32>, vector<2x128xf32> -> vector<2x128xf32>
    %c88_97 = arith.constant 88 : index
    %c0_98 = arith.constant 0 : index
    %257 = vector.load %arg4[%c88_97, %c0_98] : memref<392x128xf32, #tpu.memory_space<vmem>>, vector<32x128xf32>
    %cst_99 = arith.constant dense<0.000000e+00> : vector<2x128xf32>
    %258 = tpu.matmul %212, %257, %cst_99 {dimension_numbers = #tpu.dot_dimension_numbers<[1], [0], [0], [1], [0, 0, 1, 1], [], []>} : vector<2x32xf32>, vector<32x128xf32>, vector<2x128xf32> -> vector<2x128xf32>
    %259 = arith.addf %256, %258 : vector<2x128xf32>
    %c120_100 = arith.constant 120 : index
    %c0_101 = arith.constant 0 : index
    %260 = vector.load %arg4[%c120_100, %c0_101] : memref<392x128xf32, #tpu.memory_space<vmem>>, vector<1x128xf32>
    %261 = vector.broadcast %260 : vector<1x128xf32> to vector<2x128xf32>
    %262 = arith.addf %259, %261 : vector<2x128xf32>
    %263 = arith.negf %262 : vector<2x128xf32>
    %264 = math.exp %263 : vector<2x128xf32>
    %cst_102 = arith.constant 1.000000e+00 : f32
    %265 = vector.broadcast %cst_102 : f32 to vector<2x128xf32>
    %266 = arith.addf %265, %264 : vector<2x128xf32>
    %267 = arith.divf %265, %266 : vector<2x128xf32>
    %268 = math.tanh %262 : vector<2x128xf32>
    %269 = vector.extract_strided_slice %267 {offsets = [0, 0], sizes = [2, 32], strides = [1, 1]} : vector<2x128xf32> to vector<2x32xf32>
    %270 = vector.extract_strided_slice %267 {offsets = [0, 32], sizes = [2, 32], strides = [1, 1]} : vector<2x128xf32> to vector<2x32xf32>
    %271 = vector.extract_strided_slice %268 {offsets = [0, 64], sizes = [2, 32], strides = [1, 1]} : vector<2x128xf32> to vector<2x32xf32>
    %272 = vector.extract_strided_slice %267 {offsets = [0, 96], sizes = [2, 32], strides = [1, 1]} : vector<2x128xf32> to vector<2x32xf32>
    %273 = arith.mulf %270, %210 : vector<2x32xf32>
    %274 = arith.mulf %269, %271 : vector<2x32xf32>
    %275 = arith.addf %273, %274 : vector<2x32xf32>
    %276 = math.tanh %275 : vector<2x32xf32>
    %277 = arith.mulf %272, %276 : vector<2x32xf32>
    %c128_103 = arith.constant 128 : index
    %c0_104 = arith.constant 0 : index
    %278 = vector.load %arg4[%c128_103, %c0_104] : memref<392x128xf32, #tpu.memory_space<vmem>>, vector<32x128xf32>
    %cst_105 = arith.constant dense<0.000000e+00> : vector<2x128xf32>
    %279 = tpu.matmul %212, %278, %cst_105 {dimension_numbers = #tpu.dot_dimension_numbers<[1], [0], [0], [1], [0, 0, 1, 1], [], []>} : vector<2x32xf32>, vector<32x128xf32>, vector<2x128xf32> -> vector<2x128xf32>
    %c160_106 = arith.constant 160 : index
    %c0_107 = arith.constant 0 : index
    %280 = vector.load %arg4[%c160_106, %c0_107] : memref<392x128xf32, #tpu.memory_space<vmem>>, vector<32x128xf32>
    %cst_108 = arith.constant dense<0.000000e+00> : vector<2x128xf32>
    %281 = tpu.matmul %235, %280, %cst_108 {dimension_numbers = #tpu.dot_dimension_numbers<[1], [0], [0], [1], [0, 0, 1, 1], [], []>} : vector<2x32xf32>, vector<32x128xf32>, vector<2x128xf32> -> vector<2x128xf32>
    %282 = arith.addf %279, %281 : vector<2x128xf32>
    %c192_109 = arith.constant 192 : index
    %c0_110 = arith.constant 0 : index
    %283 = vector.load %arg4[%c192_109, %c0_110] : memref<392x128xf32, #tpu.memory_space<vmem>>, vector<1x128xf32>
    %284 = vector.broadcast %283 : vector<1x128xf32> to vector<2x128xf32>
    %285 = arith.addf %282, %284 : vector<2x128xf32>
    %286 = arith.negf %285 : vector<2x128xf32>
    %287 = math.exp %286 : vector<2x128xf32>
    %cst_111 = arith.constant 1.000000e+00 : f32
    %288 = vector.broadcast %cst_111 : f32 to vector<2x128xf32>
    %289 = arith.addf %288, %287 : vector<2x128xf32>
    %290 = arith.divf %288, %289 : vector<2x128xf32>
    %291 = math.tanh %285 : vector<2x128xf32>
    %292 = vector.extract_strided_slice %290 {offsets = [0, 0], sizes = [2, 32], strides = [1, 1]} : vector<2x128xf32> to vector<2x32xf32>
    %293 = vector.extract_strided_slice %290 {offsets = [0, 32], sizes = [2, 32], strides = [1, 1]} : vector<2x128xf32> to vector<2x32xf32>
    %294 = vector.extract_strided_slice %291 {offsets = [0, 64], sizes = [2, 32], strides = [1, 1]} : vector<2x128xf32> to vector<2x32xf32>
    %295 = vector.extract_strided_slice %290 {offsets = [0, 96], sizes = [2, 32], strides = [1, 1]} : vector<2x128xf32> to vector<2x32xf32>
    %296 = arith.mulf %293, %233 : vector<2x32xf32>
    %297 = arith.mulf %292, %294 : vector<2x32xf32>
    %298 = arith.addf %296, %297 : vector<2x32xf32>
    %299 = math.tanh %298 : vector<2x32xf32>
    %300 = arith.mulf %295, %299 : vector<2x32xf32>
    %c4_112 = arith.constant 4 : index
    %c0_113 = arith.constant 0 : index
    %301 = vector.load %arg6[%c4_112, %c0_113] : memref<16x32xf32, #tpu.memory_space<vmem>>, vector<2x32xf32>
    tpu.vector_store %arg6[%c4_112, %c0_113], %300 {strides = array<i32>} : memref<16x32xf32, #tpu.memory_space<vmem>>, vector<2x32xf32>,
    %c16_114 = arith.constant 16 : index
    %c0_115 = arith.constant 0 : index
    %302 = vector.load %arg4[%c16_114, %c0_115] : memref<392x128xf32, #tpu.memory_space<vmem>>, vector<32x128xf32>
    %cst_116 = arith.constant dense<0.000000e+00> : vector<2x128xf32>
    %303 = tpu.matmul %254, %302, %cst_116 {dimension_numbers = #tpu.dot_dimension_numbers<[1], [0], [0], [1], [0, 0, 1, 1], [], []>} : vector<2x32xf32>, vector<32x128xf32>, vector<2x128xf32> -> vector<2x128xf32>
    %304 = arith.addf %31, %303 : vector<2x128xf32>
    %305 = arith.negf %304 : vector<2x128xf32>
    %306 = math.exp %305 : vector<2x128xf32>
    %cst_117 = arith.constant 1.000000e+00 : f32
    %307 = vector.broadcast %cst_117 : f32 to vector<2x128xf32>
    %308 = arith.addf %307, %306 : vector<2x128xf32>
    %309 = arith.divf %307, %308 : vector<2x128xf32>
    %310 = math.tanh %304 : vector<2x128xf32>
    %311 = vector.extract_strided_slice %309 {offsets = [0, 0], sizes = [2, 32], strides = [1, 1]} : vector<2x128xf32> to vector<2x32xf32>
    %312 = vector.extract_strided_slice %309 {offsets = [0, 32], sizes = [2, 32], strides = [1, 1]} : vector<2x128xf32> to vector<2x32xf32>
    %313 = vector.extract_strided_slice %310 {offsets = [0, 64], sizes = [2, 32], strides = [1, 1]} : vector<2x128xf32> to vector<2x32xf32>
    %314 = vector.extract_strided_slice %309 {offsets = [0, 96], sizes = [2, 32], strides = [1, 1]} : vector<2x128xf32> to vector<2x32xf32>
    %315 = arith.mulf %312, %252 : vector<2x32xf32>
    %316 = arith.mulf %311, %313 : vector<2x32xf32>
    %317 = arith.addf %315, %316 : vector<2x32xf32>
    %318 = math.tanh %317 : vector<2x32xf32>
    %319 = arith.mulf %314, %318 : vector<2x32xf32>
    %c56_118 = arith.constant 56 : index
    %c0_119 = arith.constant 0 : index
    %320 = vector.load %arg4[%c56_118, %c0_119] : memref<392x128xf32, #tpu.memory_space<vmem>>, vector<32x128xf32>
    %cst_120 = arith.constant dense<0.000000e+00> : vector<2x128xf32>
    %321 = tpu.matmul %254, %320, %cst_120 {dimension_numbers = #tpu.dot_dimension_numbers<[1], [0], [0], [1], [0, 0, 1, 1], [], []>} : vector<2x32xf32>, vector<32x128xf32>, vector<2x128xf32> -> vector<2x128xf32>
    %c88_121 = arith.constant 88 : index
    %c0_122 = arith.constant 0 : index
    %322 = vector.load %arg4[%c88_121, %c0_122] : memref<392x128xf32, #tpu.memory_space<vmem>>, vector<32x128xf32>
    %cst_123 = arith.constant dense<0.000000e+00> : vector<2x128xf32>
    %323 = tpu.matmul %277, %322, %cst_123 {dimension_numbers = #tpu.dot_dimension_numbers<[1], [0], [0], [1], [0, 0, 1, 1], [], []>} : vector<2x32xf32>, vector<32x128xf32>, vector<2x128xf32> -> vector<2x128xf32>
    %324 = arith.addf %321, %323 : vector<2x128xf32>
    %c120_124 = arith.constant 120 : index
    %c0_125 = arith.constant 0 : index
    %325 = vector.load %arg4[%c120_124, %c0_125] : memref<392x128xf32, #tpu.memory_space<vmem>>, vector<1x128xf32>
    %326 = vector.broadcast %325 : vector<1x128xf32> to vector<2x128xf32>
    %327 = arith.addf %324, %326 : vector<2x128xf32>
    %328 = arith.negf %327 : vector<2x128xf32>
    %329 = math.exp %328 : vector<2x128xf32>
    %cst_126 = arith.constant 1.000000e+00 : f32
    %330 = vector.broadcast %cst_126 : f32 to vector<2x128xf32>
    %331 = arith.addf %330, %329 : vector<2x128xf32>
    %332 = arith.divf %330, %331 : vector<2x128xf32>
    %333 = math.tanh %327 : vector<2x128xf32>
    %334 = vector.extract_strided_slice %332 {offsets = [0, 0], sizes = [2, 32], strides = [1, 1]} : vector<2x128xf32> to vector<2x32xf32>
    %335 = vector.extract_strided_slice %332 {offsets = [0, 32], sizes = [2, 32], strides = [1, 1]} : vector<2x128xf32> to vector<2x32xf32>
    %336 = vector.extract_strided_slice %333 {offsets = [0, 64], sizes = [2, 32], strides = [1, 1]} : vector<2x128xf32> to vector<2x32xf32>
    %337 = vector.extract_strided_slice %332 {offsets = [0, 96], sizes = [2, 32], strides = [1, 1]} : vector<2x128xf32> to vector<2x32xf32>
    %338 = arith.mulf %335, %275 : vector<2x32xf32>
    %339 = arith.mulf %334, %336 : vector<2x32xf32>
    %340 = arith.addf %338, %339 : vector<2x32xf32>
    %341 = math.tanh %340 : vector<2x32xf32>
    %342 = arith.mulf %337, %341 : vector<2x32xf32>
    %c128_127 = arith.constant 128 : index
    %c0_128 = arith.constant 0 : index
    %343 = vector.load %arg4[%c128_127, %c0_128] : memref<392x128xf32, #tpu.memory_space<vmem>>, vector<32x128xf32>
    %cst_129 = arith.constant dense<0.000000e+00> : vector<2x128xf32>
    %344 = tpu.matmul %277, %343, %cst_129 {dimension_numbers = #tpu.dot_dimension_numbers<[1], [0], [0], [1], [0, 0, 1, 1], [], []>} : vector<2x32xf32>, vector<32x128xf32>, vector<2x128xf32> -> vector<2x128xf32>
    %c160_130 = arith.constant 160 : index
    %c0_131 = arith.constant 0 : index
    %345 = vector.load %arg4[%c160_130, %c0_131] : memref<392x128xf32, #tpu.memory_space<vmem>>, vector<32x128xf32>
    %cst_132 = arith.constant dense<0.000000e+00> : vector<2x128xf32>
    %346 = tpu.matmul %300, %345, %cst_132 {dimension_numbers = #tpu.dot_dimension_numbers<[1], [0], [0], [1], [0, 0, 1, 1], [], []>} : vector<2x32xf32>, vector<32x128xf32>, vector<2x128xf32> -> vector<2x128xf32>
    %347 = arith.addf %344, %346 : vector<2x128xf32>
    %c192_133 = arith.constant 192 : index
    %c0_134 = arith.constant 0 : index
    %348 = vector.load %arg4[%c192_133, %c0_134] : memref<392x128xf32, #tpu.memory_space<vmem>>, vector<1x128xf32>
    %349 = vector.broadcast %348 : vector<1x128xf32> to vector<2x128xf32>
    %350 = arith.addf %347, %349 : vector<2x128xf32>
    %351 = arith.negf %350 : vector<2x128xf32>
    %352 = math.exp %351 : vector<2x128xf32>
    %cst_135 = arith.constant 1.000000e+00 : f32
    %353 = vector.broadcast %cst_135 : f32 to vector<2x128xf32>
    %354 = arith.addf %353, %352 : vector<2x128xf32>
    %355 = arith.divf %353, %354 : vector<2x128xf32>
    %356 = math.tanh %350 : vector<2x128xf32>
    %357 = vector.extract_strided_slice %355 {offsets = [0, 0], sizes = [2, 32], strides = [1, 1]} : vector<2x128xf32> to vector<2x32xf32>
    %358 = vector.extract_strided_slice %355 {offsets = [0, 32], sizes = [2, 32], strides = [1, 1]} : vector<2x128xf32> to vector<2x32xf32>
    %359 = vector.extract_strided_slice %356 {offsets = [0, 64], sizes = [2, 32], strides = [1, 1]} : vector<2x128xf32> to vector<2x32xf32>
    %360 = vector.extract_strided_slice %355 {offsets = [0, 96], sizes = [2, 32], strides = [1, 1]} : vector<2x128xf32> to vector<2x32xf32>
    %361 = arith.mulf %358, %298 : vector<2x32xf32>
    %362 = arith.mulf %357, %359 : vector<2x32xf32>
    %363 = arith.addf %361, %362 : vector<2x32xf32>
    %364 = math.tanh %363 : vector<2x32xf32>
    %365 = arith.mulf %360, %364 : vector<2x32xf32>
    %c6_136 = arith.constant 6 : index
    %c0_137 = arith.constant 0 : index
    %366 = vector.load %arg6[%c6_136, %c0_137] : memref<16x32xf32, #tpu.memory_space<vmem>>, vector<2x32xf32>
    tpu.vector_store %arg6[%c6_136, %c0_137], %365 {strides = array<i32>} : memref<16x32xf32, #tpu.memory_space<vmem>>, vector<2x32xf32>,
    %c16_138 = arith.constant 16 : index
    %c0_139 = arith.constant 0 : index
    %367 = vector.load %arg4[%c16_138, %c0_139] : memref<392x128xf32, #tpu.memory_space<vmem>>, vector<32x128xf32>
    %cst_140 = arith.constant dense<0.000000e+00> : vector<2x128xf32>
    %368 = tpu.matmul %319, %367, %cst_140 {dimension_numbers = #tpu.dot_dimension_numbers<[1], [0], [0], [1], [0, 0, 1, 1], [], []>} : vector<2x32xf32>, vector<32x128xf32>, vector<2x128xf32> -> vector<2x128xf32>
    %369 = arith.addf %36, %368 : vector<2x128xf32>
    %370 = arith.negf %369 : vector<2x128xf32>
    %371 = math.exp %370 : vector<2x128xf32>
    %cst_141 = arith.constant 1.000000e+00 : f32
    %372 = vector.broadcast %cst_141 : f32 to vector<2x128xf32>
    %373 = arith.addf %372, %371 : vector<2x128xf32>
    %374 = arith.divf %372, %373 : vector<2x128xf32>
    %375 = math.tanh %369 : vector<2x128xf32>
    %376 = vector.extract_strided_slice %374 {offsets = [0, 0], sizes = [2, 32], strides = [1, 1]} : vector<2x128xf32> to vector<2x32xf32>
    %377 = vector.extract_strided_slice %374 {offsets = [0, 32], sizes = [2, 32], strides = [1, 1]} : vector<2x128xf32> to vector<2x32xf32>
    %378 = vector.extract_strided_slice %375 {offsets = [0, 64], sizes = [2, 32], strides = [1, 1]} : vector<2x128xf32> to vector<2x32xf32>
    %379 = vector.extract_strided_slice %374 {offsets = [0, 96], sizes = [2, 32], strides = [1, 1]} : vector<2x128xf32> to vector<2x32xf32>
    %380 = arith.mulf %377, %317 : vector<2x32xf32>
    %381 = arith.mulf %376, %378 : vector<2x32xf32>
    %382 = arith.addf %380, %381 : vector<2x32xf32>
    %383 = math.tanh %382 : vector<2x32xf32>
    %384 = arith.mulf %379, %383 : vector<2x32xf32>
    %c56_142 = arith.constant 56 : index
    %c0_143 = arith.constant 0 : index
    %385 = vector.load %arg4[%c56_142, %c0_143] : memref<392x128xf32, #tpu.memory_space<vmem>>, vector<32x128xf32>
    %cst_144 = arith.constant dense<0.000000e+00> : vector<2x128xf32>
    %386 = tpu.matmul %319, %385, %cst_144 {dimension_numbers = #tpu.dot_dimension_numbers<[1], [0], [0], [1], [0, 0, 1, 1], [], []>} : vector<2x32xf32>, vector<32x128xf32>, vector<2x128xf32> -> vector<2x128xf32>
    %c88_145 = arith.constant 88 : index
    %c0_146 = arith.constant 0 : index
    %387 = vector.load %arg4[%c88_145, %c0_146] : memref<392x128xf32, #tpu.memory_space<vmem>>, vector<32x128xf32>
    %cst_147 = arith.constant dense<0.000000e+00> : vector<2x128xf32>
    %388 = tpu.matmul %342, %387, %cst_147 {dimension_numbers = #tpu.dot_dimension_numbers<[1], [0], [0], [1], [0, 0, 1, 1], [], []>} : vector<2x32xf32>, vector<32x128xf32>, vector<2x128xf32> -> vector<2x128xf32>
    %389 = arith.addf %386, %388 : vector<2x128xf32>
    %c120_148 = arith.constant 120 : index
    %c0_149 = arith.constant 0 : index
    %390 = vector.load %arg4[%c120_148, %c0_149] : memref<392x128xf32, #tpu.memory_space<vmem>>, vector<1x128xf32>
    %391 = vector.broadcast %390 : vector<1x128xf32> to vector<2x128xf32>
    %392 = arith.addf %389, %391 : vector<2x128xf32>
    %393 = arith.negf %392 : vector<2x128xf32>
    %394 = math.exp %393 : vector<2x128xf32>
    %cst_150 = arith.constant 1.000000e+00 : f32
    %395 = vector.broadcast %cst_150 : f32 to vector<2x128xf32>
    %396 = arith.addf %395, %394 : vector<2x128xf32>
    %397 = arith.divf %395, %396 : vector<2x128xf32>
    %398 = math.tanh %392 : vector<2x128xf32>
    %399 = vector.extract_strided_slice %397 {offsets = [0, 0], sizes = [2, 32], strides = [1, 1]} : vector<2x128xf32> to vector<2x32xf32>
    %400 = vector.extract_strided_slice %397 {offsets = [0, 32], sizes = [2, 32], strides = [1, 1]} : vector<2x128xf32> to vector<2x32xf32>
    %401 = vector.extract_strided_slice %398 {offsets = [0, 64], sizes = [2, 32], strides = [1, 1]} : vector<2x128xf32> to vector<2x32xf32>
    %402 = vector.extract_strided_slice %397 {offsets = [0, 96], sizes = [2, 32], strides = [1, 1]} : vector<2x128xf32> to vector<2x32xf32>
    %403 = arith.mulf %400, %340 : vector<2x32xf32>
    %404 = arith.mulf %399, %401 : vector<2x32xf32>
    %405 = arith.addf %403, %404 : vector<2x32xf32>
    %406 = math.tanh %405 : vector<2x32xf32>
    %407 = arith.mulf %402, %406 : vector<2x32xf32>
    %c128_151 = arith.constant 128 : index
    %c0_152 = arith.constant 0 : index
    %408 = vector.load %arg4[%c128_151, %c0_152] : memref<392x128xf32, #tpu.memory_space<vmem>>, vector<32x128xf32>
    %cst_153 = arith.constant dense<0.000000e+00> : vector<2x128xf32>
    %409 = tpu.matmul %342, %408, %cst_153 {dimension_numbers = #tpu.dot_dimension_numbers<[1], [0], [0], [1], [0, 0, 1, 1], [], []>} : vector<2x32xf32>, vector<32x128xf32>, vector<2x128xf32> -> vector<2x128xf32>
    %c160_154 = arith.constant 160 : index
    %c0_155 = arith.constant 0 : index
    %410 = vector.load %arg4[%c160_154, %c0_155] : memref<392x128xf32, #tpu.memory_space<vmem>>, vector<32x128xf32>
    %cst_156 = arith.constant dense<0.000000e+00> : vector<2x128xf32>
    %411 = tpu.matmul %365, %410, %cst_156 {dimension_numbers = #tpu.dot_dimension_numbers<[1], [0], [0], [1], [0, 0, 1, 1], [], []>} : vector<2x32xf32>, vector<32x128xf32>, vector<2x128xf32> -> vector<2x128xf32>
    %412 = arith.addf %409, %411 : vector<2x128xf32>
    %c192_157 = arith.constant 192 : index
    %c0_158 = arith.constant 0 : index
    %413 = vector.load %arg4[%c192_157, %c0_158] : memref<392x128xf32, #tpu.memory_space<vmem>>, vector<1x128xf32>
    %414 = vector.broadcast %413 : vector<1x128xf32> to vector<2x128xf32>
    %415 = arith.addf %412, %414 : vector<2x128xf32>
    %416 = arith.negf %415 : vector<2x128xf32>
    %417 = math.exp %416 : vector<2x128xf32>
    %cst_159 = arith.constant 1.000000e+00 : f32
    %418 = vector.broadcast %cst_159 : f32 to vector<2x128xf32>
    %419 = arith.addf %418, %417 : vector<2x128xf32>
    %420 = arith.divf %418, %419 : vector<2x128xf32>
    %421 = math.tanh %415 : vector<2x128xf32>
    %422 = vector.extract_strided_slice %420 {offsets = [0, 0], sizes = [2, 32], strides = [1, 1]} : vector<2x128xf32> to vector<2x32xf32>
    %423 = vector.extract_strided_slice %420 {offsets = [0, 32], sizes = [2, 32], strides = [1, 1]} : vector<2x128xf32> to vector<2x32xf32>
    %424 = vector.extract_strided_slice %421 {offsets = [0, 64], sizes = [2, 32], strides = [1, 1]} : vector<2x128xf32> to vector<2x32xf32>
    %425 = vector.extract_strided_slice %420 {offsets = [0, 96], sizes = [2, 32], strides = [1, 1]} : vector<2x128xf32> to vector<2x32xf32>
    %426 = arith.mulf %423, %363 : vector<2x32xf32>
    %427 = arith.mulf %422, %424 : vector<2x32xf32>
    %428 = arith.addf %426, %427 : vector<2x32xf32>
    %429 = math.tanh %428 : vector<2x32xf32>
    %430 = arith.mulf %425, %429 : vector<2x32xf32>
    %c8 = arith.constant 8 : index
    %c0_160 = arith.constant 0 : index
    %431 = vector.load %arg6[%c8, %c0_160] : memref<16x32xf32, #tpu.memory_space<vmem>>, vector<2x32xf32>
    tpu.vector_store %arg6[%c8, %c0_160], %430 {strides = array<i32>} : memref<16x32xf32, #tpu.memory_space<vmem>>, vector<2x32xf32>,
    %c16_161 = arith.constant 16 : index
    %c0_162 = arith.constant 0 : index
    %432 = vector.load %arg4[%c16_161, %c0_162] : memref<392x128xf32, #tpu.memory_space<vmem>>, vector<32x128xf32>
    %cst_163 = arith.constant dense<0.000000e+00> : vector<2x128xf32>
    %433 = tpu.matmul %384, %432, %cst_163 {dimension_numbers = #tpu.dot_dimension_numbers<[1], [0], [0], [1], [0, 0, 1, 1], [], []>} : vector<2x32xf32>, vector<32x128xf32>, vector<2x128xf32> -> vector<2x128xf32>
    %434 = arith.addf %41, %433 : vector<2x128xf32>
    %435 = arith.negf %434 : vector<2x128xf32>
    %436 = math.exp %435 : vector<2x128xf32>
    %cst_164 = arith.constant 1.000000e+00 : f32
    %437 = vector.broadcast %cst_164 : f32 to vector<2x128xf32>
    %438 = arith.addf %437, %436 : vector<2x128xf32>
    %439 = arith.divf %437, %438 : vector<2x128xf32>
    %440 = math.tanh %434 : vector<2x128xf32>
    %441 = vector.extract_strided_slice %439 {offsets = [0, 0], sizes = [2, 32], strides = [1, 1]} : vector<2x128xf32> to vector<2x32xf32>
    %442 = vector.extract_strided_slice %439 {offsets = [0, 32], sizes = [2, 32], strides = [1, 1]} : vector<2x128xf32> to vector<2x32xf32>
    %443 = vector.extract_strided_slice %440 {offsets = [0, 64], sizes = [2, 32], strides = [1, 1]} : vector<2x128xf32> to vector<2x32xf32>
    %444 = vector.extract_strided_slice %439 {offsets = [0, 96], sizes = [2, 32], strides = [1, 1]} : vector<2x128xf32> to vector<2x32xf32>
    %445 = arith.mulf %442, %382 : vector<2x32xf32>
    %446 = arith.mulf %441, %443 : vector<2x32xf32>
    %447 = arith.addf %445, %446 : vector<2x32xf32>
    %448 = math.tanh %447 : vector<2x32xf32>
    %449 = arith.mulf %444, %448 : vector<2x32xf32>
    %c56_165 = arith.constant 56 : index
    %c0_166 = arith.constant 0 : index
    %450 = vector.load %arg4[%c56_165, %c0_166] : memref<392x128xf32, #tpu.memory_space<vmem>>, vector<32x128xf32>
    %cst_167 = arith.constant dense<0.000000e+00> : vector<2x128xf32>
    %451 = tpu.matmul %384, %450, %cst_167 {dimension_numbers = #tpu.dot_dimension_numbers<[1], [0], [0], [1], [0, 0, 1, 1], [], []>} : vector<2x32xf32>, vector<32x128xf32>, vector<2x128xf32> -> vector<2x128xf32>
    %c88_168 = arith.constant 88 : index
    %c0_169 = arith.constant 0 : index
    %452 = vector.load %arg4[%c88_168, %c0_169] : memref<392x128xf32, #tpu.memory_space<vmem>>, vector<32x128xf32>
    %cst_170 = arith.constant dense<0.000000e+00> : vector<2x128xf32>
    %453 = tpu.matmul %407, %452, %cst_170 {dimension_numbers = #tpu.dot_dimension_numbers<[1], [0], [0], [1], [0, 0, 1, 1], [], []>} : vector<2x32xf32>, vector<32x128xf32>, vector<2x128xf32> -> vector<2x128xf32>
    %454 = arith.addf %451, %453 : vector<2x128xf32>
    %c120_171 = arith.constant 120 : index
    %c0_172 = arith.constant 0 : index
    %455 = vector.load %arg4[%c120_171, %c0_172] : memref<392x128xf32, #tpu.memory_space<vmem>>, vector<1x128xf32>
    %456 = vector.broadcast %455 : vector<1x128xf32> to vector<2x128xf32>
    %457 = arith.addf %454, %456 : vector<2x128xf32>
    %458 = arith.negf %457 : vector<2x128xf32>
    %459 = math.exp %458 : vector<2x128xf32>
    %cst_173 = arith.constant 1.000000e+00 : f32
    %460 = vector.broadcast %cst_173 : f32 to vector<2x128xf32>
    %461 = arith.addf %460, %459 : vector<2x128xf32>
    %462 = arith.divf %460, %461 : vector<2x128xf32>
    %463 = math.tanh %457 : vector<2x128xf32>
    %464 = vector.extract_strided_slice %462 {offsets = [0, 0], sizes = [2, 32], strides = [1, 1]} : vector<2x128xf32> to vector<2x32xf32>
    %465 = vector.extract_strided_slice %462 {offsets = [0, 32], sizes = [2, 32], strides = [1, 1]} : vector<2x128xf32> to vector<2x32xf32>
    %466 = vector.extract_strided_slice %463 {offsets = [0, 64], sizes = [2, 32], strides = [1, 1]} : vector<2x128xf32> to vector<2x32xf32>
    %467 = vector.extract_strided_slice %462 {offsets = [0, 96], sizes = [2, 32], strides = [1, 1]} : vector<2x128xf32> to vector<2x32xf32>
    %468 = arith.mulf %465, %405 : vector<2x32xf32>
    %469 = arith.mulf %464, %466 : vector<2x32xf32>
    %470 = arith.addf %468, %469 : vector<2x32xf32>
    %471 = math.tanh %470 : vector<2x32xf32>
    %472 = arith.mulf %467, %471 : vector<2x32xf32>
    %c128_174 = arith.constant 128 : index
    %c0_175 = arith.constant 0 : index
    %473 = vector.load %arg4[%c128_174, %c0_175] : memref<392x128xf32, #tpu.memory_space<vmem>>, vector<32x128xf32>
    %cst_176 = arith.constant dense<0.000000e+00> : vector<2x128xf32>
    %474 = tpu.matmul %407, %473, %cst_176 {dimension_numbers = #tpu.dot_dimension_numbers<[1], [0], [0], [1], [0, 0, 1, 1], [], []>} : vector<2x32xf32>, vector<32x128xf32>, vector<2x128xf32> -> vector<2x128xf32>
    %c160_177 = arith.constant 160 : index
    %c0_178 = arith.constant 0 : index
    %475 = vector.load %arg4[%c160_177, %c0_178] : memref<392x128xf32, #tpu.memory_space<vmem>>, vector<32x128xf32>
    %cst_179 = arith.constant dense<0.000000e+00> : vector<2x128xf32>
    %476 = tpu.matmul %430, %475, %cst_179 {dimension_numbers = #tpu.dot_dimension_numbers<[1], [0], [0], [1], [0, 0, 1, 1], [], []>} : vector<2x32xf32>, vector<32x128xf32>, vector<2x128xf32> -> vector<2x128xf32>
    %477 = arith.addf %474, %476 : vector<2x128xf32>
    %c192_180 = arith.constant 192 : index
    %c0_181 = arith.constant 0 : index
    %478 = vector.load %arg4[%c192_180, %c0_181] : memref<392x128xf32, #tpu.memory_space<vmem>>, vector<1x128xf32>
    %479 = vector.broadcast %478 : vector<1x128xf32> to vector<2x128xf32>
    %480 = arith.addf %477, %479 : vector<2x128xf32>
    %481 = arith.negf %480 : vector<2x128xf32>
    %482 = math.exp %481 : vector<2x128xf32>
    %cst_182 = arith.constant 1.000000e+00 : f32
    %483 = vector.broadcast %cst_182 : f32 to vector<2x128xf32>
    %484 = arith.addf %483, %482 : vector<2x128xf32>
    %485 = arith.divf %483, %484 : vector<2x128xf32>
    %486 = math.tanh %480 : vector<2x128xf32>
    %487 = vector.extract_strided_slice %485 {offsets = [0, 0], sizes = [2, 32], strides = [1, 1]} : vector<2x128xf32> to vector<2x32xf32>
    %488 = vector.extract_strided_slice %485 {offsets = [0, 32], sizes = [2, 32], strides = [1, 1]} : vector<2x128xf32> to vector<2x32xf32>
    %489 = vector.extract_strided_slice %486 {offsets = [0, 64], sizes = [2, 32], strides = [1, 1]} : vector<2x128xf32> to vector<2x32xf32>
    %490 = vector.extract_strided_slice %485 {offsets = [0, 96], sizes = [2, 32], strides = [1, 1]} : vector<2x128xf32> to vector<2x32xf32>
    %491 = arith.mulf %488, %428 : vector<2x32xf32>
    %492 = arith.mulf %487, %489 : vector<2x32xf32>
    %493 = arith.addf %491, %492 : vector<2x32xf32>
    %494 = math.tanh %493 : vector<2x32xf32>
    %495 = arith.mulf %490, %494 : vector<2x32xf32>
    %c10 = arith.constant 10 : index
    %c0_183 = arith.constant 0 : index
    %496 = vector.load %arg6[%c10, %c0_183] : memref<16x32xf32, #tpu.memory_space<vmem>>, vector<2x32xf32>
    tpu.vector_store %arg6[%c10, %c0_183], %495 {strides = array<i32>} : memref<16x32xf32, #tpu.memory_space<vmem>>, vector<2x32xf32>,
    %c56_184 = arith.constant 56 : index
    %c0_185 = arith.constant 0 : index
    %497 = vector.load %arg4[%c56_184, %c0_185] : memref<392x128xf32, #tpu.memory_space<vmem>>, vector<32x128xf32>
    %cst_186 = arith.constant dense<0.000000e+00> : vector<2x128xf32>
    %498 = tpu.matmul %449, %497, %cst_186 {dimension_numbers = #tpu.dot_dimension_numbers<[1], [0], [0], [1], [0, 0, 1, 1], [], []>} : vector<2x32xf32>, vector<32x128xf32>, vector<2x128xf32> -> vector<2x128xf32>
    %c88_187 = arith.constant 88 : index
    %c0_188 = arith.constant 0 : index
    %499 = vector.load %arg4[%c88_187, %c0_188] : memref<392x128xf32, #tpu.memory_space<vmem>>, vector<32x128xf32>
    %cst_189 = arith.constant dense<0.000000e+00> : vector<2x128xf32>
    %500 = tpu.matmul %472, %499, %cst_189 {dimension_numbers = #tpu.dot_dimension_numbers<[1], [0], [0], [1], [0, 0, 1, 1], [], []>} : vector<2x32xf32>, vector<32x128xf32>, vector<2x128xf32> -> vector<2x128xf32>
    %501 = arith.addf %498, %500 : vector<2x128xf32>
    %c120_190 = arith.constant 120 : index
    %c0_191 = arith.constant 0 : index
    %502 = vector.load %arg4[%c120_190, %c0_191] : memref<392x128xf32, #tpu.memory_space<vmem>>, vector<1x128xf32>
    %503 = vector.broadcast %502 : vector<1x128xf32> to vector<2x128xf32>
    %504 = arith.addf %501, %503 : vector<2x128xf32>
    %505 = arith.negf %504 : vector<2x128xf32>
    %506 = math.exp %505 : vector<2x128xf32>
    %cst_192 = arith.constant 1.000000e+00 : f32
    %507 = vector.broadcast %cst_192 : f32 to vector<2x128xf32>
    %508 = arith.addf %507, %506 : vector<2x128xf32>
    %509 = arith.divf %507, %508 : vector<2x128xf32>
    %510 = math.tanh %504 : vector<2x128xf32>
    %511 = vector.extract_strided_slice %509 {offsets = [0, 0], sizes = [2, 32], strides = [1, 1]} : vector<2x128xf32> to vector<2x32xf32>
    %512 = vector.extract_strided_slice %509 {offsets = [0, 32], sizes = [2, 32], strides = [1, 1]} : vector<2x128xf32> to vector<2x32xf32>
    %513 = vector.extract_strided_slice %510 {offsets = [0, 64], sizes = [2, 32], strides = [1, 1]} : vector<2x128xf32> to vector<2x32xf32>
    %514 = vector.extract_strided_slice %509 {offsets = [0, 96], sizes = [2, 32], strides = [1, 1]} : vector<2x128xf32> to vector<2x32xf32>
    %515 = arith.mulf %512, %470 : vector<2x32xf32>
    %516 = arith.mulf %511, %513 : vector<2x32xf32>
    %517 = arith.addf %515, %516 : vector<2x32xf32>
    %518 = math.tanh %517 : vector<2x32xf32>
    %519 = arith.mulf %514, %518 : vector<2x32xf32>
    %c128_193 = arith.constant 128 : index
    %c0_194 = arith.constant 0 : index
    %520 = vector.load %arg4[%c128_193, %c0_194] : memref<392x128xf32, #tpu.memory_space<vmem>>, vector<32x128xf32>
    %cst_195 = arith.constant dense<0.000000e+00> : vector<2x128xf32>
    %521 = tpu.matmul %472, %520, %cst_195 {dimension_numbers = #tpu.dot_dimension_numbers<[1], [0], [0], [1], [0, 0, 1, 1], [], []>} : vector<2x32xf32>, vector<32x128xf32>, vector<2x128xf32> -> vector<2x128xf32>
    %c160_196 = arith.constant 160 : index
    %c0_197 = arith.constant 0 : index
    %522 = vector.load %arg4[%c160_196, %c0_197] : memref<392x128xf32, #tpu.memory_space<vmem>>, vector<32x128xf32>
    %cst_198 = arith.constant dense<0.000000e+00> : vector<2x128xf32>
    %523 = tpu.matmul %495, %522, %cst_198 {dimension_numbers = #tpu.dot_dimension_numbers<[1], [0], [0], [1], [0, 0, 1, 1], [], []>} : vector<2x32xf32>, vector<32x128xf32>, vector<2x128xf32> -> vector<2x128xf32>
    %524 = arith.addf %521, %523 : vector<2x128xf32>
    %c192_199 = arith.constant 192 : index
    %c0_200 = arith.constant 0 : index
    %525 = vector.load %arg4[%c192_199, %c0_200] : memref<392x128xf32, #tpu.memory_space<vmem>>, vector<1x128xf32>
    %526 = vector.broadcast %525 : vector<1x128xf32> to vector<2x128xf32>
    %527 = arith.addf %524, %526 : vector<2x128xf32>
    %528 = arith.negf %527 : vector<2x128xf32>
    %529 = math.exp %528 : vector<2x128xf32>
    %cst_201 = arith.constant 1.000000e+00 : f32
    %530 = vector.broadcast %cst_201 : f32 to vector<2x128xf32>
    %531 = arith.addf %530, %529 : vector<2x128xf32>
    %532 = arith.divf %530, %531 : vector<2x128xf32>
    %533 = math.tanh %527 : vector<2x128xf32>
    %534 = vector.extract_strided_slice %532 {offsets = [0, 0], sizes = [2, 32], strides = [1, 1]} : vector<2x128xf32> to vector<2x32xf32>
    %535 = vector.extract_strided_slice %532 {offsets = [0, 32], sizes = [2, 32], strides = [1, 1]} : vector<2x128xf32> to vector<2x32xf32>
    %536 = vector.extract_strided_slice %533 {offsets = [0, 64], sizes = [2, 32], strides = [1, 1]} : vector<2x128xf32> to vector<2x32xf32>
    %537 = vector.extract_strided_slice %532 {offsets = [0, 96], sizes = [2, 32], strides = [1, 1]} : vector<2x128xf32> to vector<2x32xf32>
    %538 = arith.mulf %535, %493 : vector<2x32xf32>
    %539 = arith.mulf %534, %536 : vector<2x32xf32>
    %540 = arith.addf %538, %539 : vector<2x32xf32>
    %541 = math.tanh %540 : vector<2x32xf32>
    %542 = arith.mulf %537, %541 : vector<2x32xf32>
    %c12 = arith.constant 12 : index
    %c0_202 = arith.constant 0 : index
    %543 = vector.load %arg6[%c12, %c0_202] : memref<16x32xf32, #tpu.memory_space<vmem>>, vector<2x32xf32>
    tpu.vector_store %arg6[%c12, %c0_202], %542 {strides = array<i32>} : memref<16x32xf32, #tpu.memory_space<vmem>>, vector<2x32xf32>,
    %c128_203 = arith.constant 128 : index
    %c0_204 = arith.constant 0 : index
    %544 = vector.load %arg4[%c128_203, %c0_204] : memref<392x128xf32, #tpu.memory_space<vmem>>, vector<32x128xf32>
    %cst_205 = arith.constant dense<0.000000e+00> : vector<2x128xf32>
    %545 = tpu.matmul %519, %544, %cst_205 {dimension_numbers = #tpu.dot_dimension_numbers<[1], [0], [0], [1], [0, 0, 1, 1], [], []>} : vector<2x32xf32>, vector<32x128xf32>, vector<2x128xf32> -> vector<2x128xf32>
    %c160_206 = arith.constant 160 : index
    %c0_207 = arith.constant 0 : index
    %546 = vector.load %arg4[%c160_206, %c0_207] : memref<392x128xf32, #tpu.memory_space<vmem>>, vector<32x128xf32>
    %cst_208 = arith.constant dense<0.000000e+00> : vector<2x128xf32>
    %547 = tpu.matmul %542, %546, %cst_208 {dimension_numbers = #tpu.dot_dimension_numbers<[1], [0], [0], [1], [0, 0, 1, 1], [], []>} : vector<2x32xf32>, vector<32x128xf32>, vector<2x128xf32> -> vector<2x128xf32>
    %548 = arith.addf %545, %547 : vector<2x128xf32>
    %c192_209 = arith.constant 192 : index
    %c0_210 = arith.constant 0 : index
    %549 = vector.load %arg4[%c192_209, %c0_210] : memref<392x128xf32, #tpu.memory_space<vmem>>, vector<1x128xf32>
    %550 = vector.broadcast %549 : vector<1x128xf32> to vector<2x128xf32>
    %551 = arith.addf %548, %550 : vector<2x128xf32>
    %552 = arith.negf %551 : vector<2x128xf32>
    %553 = math.exp %552 : vector<2x128xf32>
    %cst_211 = arith.constant 1.000000e+00 : f32
    %554 = vector.broadcast %cst_211 : f32 to vector<2x128xf32>
    %555 = arith.addf %554, %553 : vector<2x128xf32>
    %556 = arith.divf %554, %555 : vector<2x128xf32>
    %557 = math.tanh %551 : vector<2x128xf32>
    %558 = vector.extract_strided_slice %556 {offsets = [0, 0], sizes = [2, 32], strides = [1, 1]} : vector<2x128xf32> to vector<2x32xf32>
    %559 = vector.extract_strided_slice %556 {offsets = [0, 32], sizes = [2, 32], strides = [1, 1]} : vector<2x128xf32> to vector<2x32xf32>
    %560 = vector.extract_strided_slice %557 {offsets = [0, 64], sizes = [2, 32], strides = [1, 1]} : vector<2x128xf32> to vector<2x32xf32>
    %561 = vector.extract_strided_slice %556 {offsets = [0, 96], sizes = [2, 32], strides = [1, 1]} : vector<2x128xf32> to vector<2x32xf32>
    %562 = arith.mulf %559, %540 : vector<2x32xf32>
    %563 = arith.mulf %558, %560 : vector<2x32xf32>
    %564 = arith.addf %562, %563 : vector<2x32xf32>
    %565 = math.tanh %564 : vector<2x32xf32>
    %566 = arith.mulf %561, %565 : vector<2x32xf32>
    %c14 = arith.constant 14 : index
    %c0_212 = arith.constant 0 : index
    %567 = vector.load %arg6[%c14, %c0_212] : memref<16x32xf32, #tpu.memory_space<vmem>>, vector<2x32xf32>
    tpu.vector_store %arg6[%c14, %c0_212], %566 {strides = array<i32>} : memref<16x32xf32, #tpu.memory_space<vmem>>, vector<2x32xf32>,
    %c0_213 = arith.constant 0 : index
    %c0_214 = arith.constant 0 : index
    %568 = vector.load %arg6[%c0_213, %c0_214] : memref<16x32xf32, #tpu.memory_space<vmem>>, vector<16x32xf32>
    %c0_215 = arith.constant 0 : index
    %c0_216 = arith.constant 0 : index
    %569 = vector.load %arg1[%c0_215, %c0_216] : memref<16x32xf32, #tpu.memory_space<vmem>>, vector<16x32xf32>
    %570 = arith.mulf %568, %569 : vector<16x32xf32>
    %c200 = arith.constant 200 : index
    %c0_217 = arith.constant 0 : index
    %571 = vector.load %arg4[%c200, %c0_217] : memref<392x128xf32, #tpu.memory_space<vmem>>, vector<32x128xf32>
    %cst_218 = arith.constant dense<0.000000e+00> : vector<16x128xf32>
    %572 = tpu.matmul %570, %571, %cst_218 {dimension_numbers = #tpu.dot_dimension_numbers<[1], [0], [0], [1], [0, 0, 1, 1], [], []>} : vector<16x32xf32>, vector<32x128xf32>, vector<16x128xf32> -> vector<16x128xf32>
    %c232 = arith.constant 232 : index
    %c0_219 = arith.constant 0 : index
    %573 = vector.load %arg4[%c232, %c0_219] : memref<392x128xf32, #tpu.memory_space<vmem>>, vector<1x128xf32>
    %574 = vector.broadcast %573 : vector<1x128xf32> to vector<16x128xf32>
    %575 = arith.addf %572, %574 : vector<16x128xf32>
    %576 = vector.extract_strided_slice %575 {offsets = [0, 0], sizes = [16, 32], strides = [1, 1]} : vector<16x128xf32> to vector<16x32xf32>
    %577 = vector.extract_strided_slice %575 {offsets = [0, 32], sizes = [16, 32], strides = [1, 1]} : vector<16x128xf32> to vector<16x32xf32>
    %578 = vector.extract_strided_slice %575 {offsets = [0, 64], sizes = [16, 32], strides = [1, 1]} : vector<16x128xf32> to vector<16x32xf32>
    %cst_220 = arith.constant dense<0.000000e+00> : vector<16x16xf32>
    %579 = tpu.matmul %576, %577, %cst_220 {dimension_numbers = #tpu.dot_dimension_numbers<[1], [1], [0], [0], [0, 0, 1, 0], [], []>} : vector<16x32xf32>, vector<16x32xf32>, vector<16x16xf32> -> vector<16x16xf32>
    %cst_221 = arith.constant 0.176776692 : f32
    %580 = vector.broadcast %cst_221 : f32 to vector<16x16xf32>
    %581 = arith.mulf %579, %580 : vector<16x16xf32>
    %c0_222 = arith.constant 0 : index
    %c0_223 = arith.constant 0 : index
    %582 = vector.load %arg2[%c0_222, %c0_223] : memref<16x16xf32, #tpu.memory_space<vmem>>, vector<16x16xf32>
    %583 = arith.addf %581, %582 : vector<16x16xf32>
    %cst_224 = arith.constant dense<0xFF800000> : vector<16xf32>
    %584 = vector.multi_reduction <maximumf>, %583, %cst_224 [1] : vector<16x16xf32> to vector<16xf32>
    %585 = vector.shape_cast %584 : vector<16xf32> to vector<16x1xf32>
    %586 = vector.broadcast %585 : vector<16x1xf32> to vector<16x16xf32>
    %587 = arith.subf %583, %586 : vector<16x16xf32>
    %588 = math.exp %587 : vector<16x16xf32>
    %cst_225 = arith.constant dense<0.000000e+00> : vector<16xf32>
    %589 = vector.multi_reduction <add>, %588, %cst_225 [1] : vector<16x16xf32> to vector<16xf32>
    %590 = vector.shape_cast %589 : vector<16xf32> to vector<16x1xf32>
    %591 = vector.broadcast %590 : vector<16x1xf32> to vector<16x16xf32>
    %592 = arith.divf %588, %591 : vector<16x16xf32>
    %c0_226 = arith.constant 0 : index
    %c0_227 = arith.constant 0 : index
    %593 = vector.load %arg3[%c0_226, %c0_227] : memref<2x16xf32, #tpu.memory_space<vmem>>, vector<2x16xf32>
    %cst_228 = arith.constant dense<0.000000e+00> : vector<2x16xf32>
    %594 = tpu.matmul %593, %592, %cst_228 {dimension_numbers = #tpu.dot_dimension_numbers<[1], [0], [0], [1], [0, 0, 1, 1], [], []>} : vector<2x16xf32>, vector<16x16xf32>, vector<2x16xf32> -> vector<2x16xf32>
    %cst_229 = arith.constant dense<0.000000e+00> : vector<2x32xf32>
    %595 = tpu.matmul %594, %578, %cst_229 {dimension_numbers = #tpu.dot_dimension_numbers<[1], [0], [0], [1], [0, 0, 1, 1], [], []>} : vector<2x16xf32>, vector<16x32xf32>, vector<2x32xf32> -> vector<2x32xf32>
    %c240 = arith.constant 240 : index
    %c0_230 = arith.constant 0 : index
    %596 = vector.load %arg4[%c240, %c0_230] : memref<392x128xf32, #tpu.memory_space<vmem>>, vector<32x128xf32>
    %cst_231 = arith.constant dense<0.000000e+00> : vector<2x128xf32>
    %597 = tpu.matmul %595, %596, %cst_231 {dimension_numbers = #tpu.dot_dimension_numbers<[1], [0], [0], [1], [0, 0, 1, 1], [], []>} : vector<2x32xf32>, vector<32x128xf32>, vector<2x128xf32> -> vector<2x128xf32>
    %c272 = arith.constant 272 : index
    %c0_232 = arith.constant 0 : index
    %598 = vector.load %arg4[%c272, %c0_232] : memref<392x128xf32, #tpu.memory_space<vmem>>, vector<1x128xf32>
    %599 = vector.broadcast %598 : vector<1x128xf32> to vector<2x128xf32>
    %600 = arith.addf %597, %599 : vector<2x128xf32>
    %601 = vector.extract_strided_slice %600 {offsets = [0, 0], sizes = [2, 32], strides = [1, 1]} : vector<2x128xf32> to vector<2x32xf32>
    %c280 = arith.constant 280 : index
    %c0_233 = arith.constant 0 : index
    %602 = vector.load %arg4[%c280, %c0_233] : memref<392x128xf32, #tpu.memory_space<vmem>>, vector<32x128xf32>
    %cst_234 = arith.constant dense<0.000000e+00> : vector<2x128xf32>
    %603 = tpu.matmul %601, %602, %cst_234 {dimension_numbers = #tpu.dot_dimension_numbers<[1], [0], [0], [1], [0, 0, 1, 1], [], []>} : vector<2x32xf32>, vector<32x128xf32>, vector<2x128xf32> -> vector<2x128xf32>
    %c312 = arith.constant 312 : index
    %c0_235 = arith.constant 0 : index
    %604 = vector.load %arg4[%c312, %c0_235] : memref<392x128xf32, #tpu.memory_space<vmem>>, vector<1x128xf32>
    %605 = vector.broadcast %604 : vector<1x128xf32> to vector<2x128xf32>
    %606 = arith.addf %603, %605 : vector<2x128xf32>
    %cst_236 = arith.constant 0.000000e+00 : f32
    %607 = vector.broadcast %cst_236 : f32 to vector<2x128xf32>
    %608 = arith.maximumf %606, %607 : vector<2x128xf32>
    %609 = vector.extract_strided_slice %608 {offsets = [0, 0], sizes = [2, 64], strides = [1, 1]} : vector<2x128xf32> to vector<2x64xf32>
    %c320 = arith.constant 320 : index
    %c0_237 = arith.constant 0 : index
    %610 = vector.load %arg4[%c320, %c0_237] : memref<392x128xf32, #tpu.memory_space<vmem>>, vector<64x128xf32>
    %cst_238 = arith.constant dense<0.000000e+00> : vector<2x128xf32>
    %611 = tpu.matmul %609, %610, %cst_238 {dimension_numbers = #tpu.dot_dimension_numbers<[1], [0], [0], [1], [0, 0, 1, 1], [], []>} : vector<2x64xf32>, vector<64x128xf32>, vector<2x128xf32> -> vector<2x128xf32>
    %c384 = arith.constant 384 : index
    %c0_239 = arith.constant 0 : index
    %612 = vector.load %arg4[%c384, %c0_239] : memref<392x128xf32, #tpu.memory_space<vmem>>, vector<1x128xf32>
    %613 = vector.broadcast %612 : vector<1x128xf32> to vector<2x128xf32>
    %614 = arith.addf %611, %613 : vector<2x128xf32>
    %615 = vector.extract_strided_slice %614 {offsets = [0, 0], sizes = [2, 10], strides = [1, 1]} : vector<2x128xf32> to vector<2x10xf32>
    %c0_240 = arith.constant 0 : index
    %c0_241 = arith.constant 0 : index
    %616 = vector.load %arg5[%c0_240, %c0_241] : memref<2x10xf32, #tpu.memory_space<vmem>>, vector<2x10xf32>
    tpu.vector_store %arg5[%c0_240, %c0_241], %615 {strides = array<i32>} : memref<2x10xf32, #tpu.memory_space<vmem>>, vector<2x10xf32>,
    return
  }
}

</mosaic_0001>

<bundles_post_ra>
// kernel: rnn_model_forward.1
= control target key start
LH: loop header
LB: loop body
LE: loop exit
PB: predicated region body
PF: predicated region fallthrough
CT: control target
= control target key end

     0   :  { %10 = vsyncpa [#allocation4], 0  ;;  %s7290_s0 = inlined_call_operand.vmem [shape: f32[8,2,16], index: 0, kind: input, shape index: {}]   ;;  %s7291_s1 = inlined_call_operand.vmem [shape: f32[16,32], index: 1, kind: input, shape index: {}]   ;;  %s7292_s2 = inlined_call_operand.vmem [shape: f32[16,16], index: 2, kind: input, shape index: {}]   ;;  %s7293_s3 = inlined_call_operand.vmem [shape: f32[2,16], index: 3, kind: input, shape index: {}]   ;;  %s7294_s4 = inlined_call_operand.hbm [shape: f32[392,128], index: 4, kind: input, shape index: {}]   ;;  %s7295_s5 = inlined_call_operand.hbm [shape: f32[2,10], index: 5, kind: output, shape index: {}]  }
   0x1   :  { %11 = vsyncpa [#allocation5], 0  ;;  %s6570_s18 = smov [#allocation3]   ;;  %s6522_s22 = scalar_lea.hbm %s7294_s4, 6272 }
   0x2   :  { %s25_s19 = sshll.u32 %s6570_s18, 4  ;;  %p6523_p0 = scmp.ne.s32.totalorder %s7294_s4, %s6522_s22  ;;  %s26_s19 = int_to_ptr.vmem [resolvable:$true] %s25_s19 }
   0x3   :  { %p6526_p1 = scmp.lt.u32.totalorder %s6522_s22, %s7294_s4 }
   0x5   :  { %p6528_p2 = pnand %p6526_p1, %p6523_p0 }
   0x7   :  { %6531 = shalt.err (!%p6528_p2)
}
   0x8   :  { %s6532_s27 = scalar_lea.vmem %s26_s19, 6272  ;;  %p6537_p4 = scmp.lt.s32.totalorder %s26_s19, %s26_s19 }
   0x9   :  { %p6533_p3 = scmp.ne.s32.totalorder %s26_s19, %s6532_s27  ;;  %p6538_p5 = scmp.lt.s32.totalorder %s6532_s27, %s6532_s27 }
   0xb   :  { %p6539_p6 = por %p6538_p5, %p6537_p4 }
   0xd   :  { %p6540_p7 = pnand %p6539_p6, %p6533_p3 }
   0xf   :  { %6543 = shalt.err (!%p6540_p7)
}
  0x10   :  { %s6571_s28 = smov 128   ;;  %s6572_s29 = smov 8  }
  0x11   :  { %31 = dma.hbm_to_vmem [thread:$0]  %s7294_s4, 6272, %s26_s19, [#allocation4], %s6571_s28, %s6571_s28, %s6572_s29  }
  0x12   :  { %6566 = dma.done.wait [#allocation4], 6272  }
  0x13   :  { %6567 = vsyncadd [#allocation4], 4294961024  ;;  %v6573_v0 = vmov 0.0|0.0   ;;  %vm6574_vm0 = vmmov 0   ;;  %v6575_v1 = vmov 0.0   ;;  %v35_v2 = vld [vmem:[#allocation3] sm:$0xff] }
  0x14   :  { %5973 = vmatprep.subr.bf16.mxu1 %v6573_v0  ;;  %5412 = vmatprep.mubr.msk.f32.mxu1 %vm6574_vm0, %v6575_v1  ;;  %v36_v3 = vld [vmem:[#allocation3 + $0x8] sm:$0xff]  ;;  %vm43_vm1 = vcmask 130048   ;;  %v5037_v5 = vld [vmem:[%s7290_s0 + $0x2] sm:$0x3]  ;;  %v38_v6 = vld [vmem:[%s7290_s0] sm:$0x3] }
  0x15   :  { %5970 = vmatprep.subr.bf16.mxu0 %v6573_v0  ;;  %5405 = vmatprep.mubr.msk.f32.mxu0 %vm6574_vm0, %v6575_v1  ;;  %v6628_v4 = vpack.c.bf16 %v36_v3, %v35_v2  ;;  %v5041_v7 = vld [vmem:[%s7290_s0 + $0x6] sm:$0x3]  ;;  %v5045_v8 = vld [vmem:[%s7290_s0 + $0xa] sm:$0x3]  ;;  %v5049_v11 = vld [vmem:[%s7290_s0 + $0xe] sm:$0x3] }
  0x16   :  { %v642_v9 = vld [vmem:[#allocation3 + $0x10] sm:$0xff]  ;;  %v643_v10 = vld [vmem:[#allocation3 + $0x18] sm:$0xff]  ;;  %v644_v13 = vld [vmem:[#allocation3 + $0x20] sm:$0xff]  ;;  %s6576_s16 = smov 64   ;;  %s6577_s17 = smov 32   ;;  %vm646_vm2 = vcmask 261120  }
  0x17   :  { %5975 = vmatpush3.bf16.msra.mxu1 %v6628_v4  ;;  %5972 = vmatpush3.bf16.msra.mxu0 %v6628_v4  ;;  %v6668_v12 = vpack.c.bf16 %v643_v10, %v642_v9  ;;  %v645_v14 = vld [vmem:[#allocation3 + $0x28] sm:$0xff]  ;;  %v6687_v18 = vld [vmem:[#allocation3 + $0x30] ss:$0 sm:$0xff]  ;;  %v5039_v33 = vld [vmem:[%s7290_s0 + $0x4] sm:$0x3]  ;;  %vm1475_vm3 = vcmask 254976  }
  0x18   :  { %5979 = vmatprep.subr.bf16.mxu1 %v6573_v0  ;;  %5976 = vmatprep.subr.bf16.mxu0 %v6573_v0  ;;  %v6673_v15 = vpack.c.bf16 %v645_v14, %v644_v13  ;;  %v5043_v34 = vld [vmem:[%s7290_s0 + $0x8] sm:$0x3]  ;;  %v850_v36 = vld [vmem:[#allocation3 + $0x60] sm:$0xff]  ;;  %v5047_v37 = vld [vmem:[%s7290_s0 + $0xc] sm:$0x3]  ;;  %s6578_s27 = smov 96  }
  0x19   :  { %v849_v35 = vld [vmem:[#allocation3 + $0x58] sm:$0xff]  ;;  %v851_v40 = vld [vmem:[#allocation3 + $0x68] sm:$0xff]  ;;  %v852_v41 = vld [vmem:[#allocation3 + $0x70] sm:$0xff]  ;;  %vm4944_vm5 = vcmask 523264   ;;  %vm5018_vm6 = vcmask 74752  }
  0x1a   :  { %5413 = vmatmul.mubr.msk.f32.vlgmr.msra.gmra.mrb[0].mxu1 %vm43_vm1, %v5037_v5  ;;  %5406 = vmatmul.mubr.msk.f32.vlgmr.msra.gmra.mrb[0].mxu0 %vm43_vm1, %v38_v6  ;;  %v6713_v38 = vpack.c.bf16 %v850_v36, %v849_v35  ;;  %v6722_v42 = vpack.c.bf16 %v852_v41, %v851_v40  ;;  %v845_v45 = vld [vmem:[#allocation3 + $0x38] sm:$0xff]  ;;  %v846_v46 = vld [vmem:[#allocation3 + $0x40] sm:$0xff]  ;;  %v847_v48 = vld [vmem:[#allocation3 + $0x48] sm:$0xff] }
  0x1b   :  { %5981 = vmatpush3.bf16.msra.mxu1 %v6628_v4  ;;  %5426 = vmatprep.mubr.msk.f32.mxu1 %vm6574_vm0, %v6575_v1  ;;  %v6734_v47 = vpack.c.bf16 %v846_v46, %v845_v45  ;;  %v848_v49 = vld [vmem:[#allocation3 + $0x50] sm:$0xff]  ;;  %v6753_v58 = vld [vmem:[#allocation3 + $0x78] ss:$0 sm:$0xff]  ;;  %vm6243_vm4 = vmpackc.low %vm646_vm2, %vm646_vm2 }
  0x1c   :  { %5985 = vmatprep.subr.bf16.mxu1 %v6573_v0  ;;  %5978 = vmatpush3.bf16.msra.mxu0 %v6628_v4  ;;  %v6738_v51 = vpack.c.bf16 %v848_v49, %v847_v48  ;;  %v1295_v35 = vld [vmem:[#allocation3 + $0x90] sm:$0xff]  ;;  %v1296_v36 = vld [vmem:[#allocation3 + $0x98] sm:$0xff] }
  0x1d   :  { %5419 = vmatprep.mubr.msk.f32.mxu0 %vm6574_vm0, %v6575_v1  ;;  %5982 = vmatprep.subr.bf16.mxu0 %v6573_v0  ;;  %v1300_v40 = vld [vmem:[#allocation3 + $0xb8] sm:$0xff] }
  0x1e   :  { %5427 = vmatmul.mubr.msk.f32.vlgmr.msra.gmra.mrb[2].mxu1 %vm43_vm1, %v5041_v7 }
  0x1f   :  { %5987 = vmatpush3.bf16.msra.mxu1 %v6628_v4  ;;  %5440 = vmatprep.mubr.msk.f32.mxu1 %vm6574_vm0, %v6575_v1 }
  0x20   :  { %5991 = vmatprep.subr.bf16.mxu1 %v6573_v0  ;;  %5420 = vmatmul.mubr.msk.f32.vlgmr.msra.gmra.mrb[2].mxu0 %vm43_vm1, %v5039_v33  ;;  %v1298_v33 = vld [vmem:[#allocation3 + $0xa8] sm:$0xff] }
  0x21   :  { %5984 = vmatpush3.bf16.msra.mxu0 %v6628_v4  ;;  %5433 = vmatprep.mubr.msk.f32.mxu0 %vm6574_vm0, %v6575_v1 }
  0x22   :  { %5441 = vmatmul.mubr.msk.f32.vlgmr.msra.gmra.mrb[4].mxu1 %vm43_vm1, %v5045_v8  ;;  %5988 = vmatprep.subr.bf16.mxu0 %v6573_v0 }
  0x23   :  { %5993 = vmatpush3.bf16.msra.mxu1 %v6628_v4  ;;  %5454 = vmatprep.mubr.msk.f32.mxu1 %vm6574_vm0, %v6575_v1 }
  0x24   :  { %5994 = vmatprep.subr.bf16.mxu1 %v6573_v0  ;;  %5434 = vmatmul.mubr.msk.f32.vlgmr.msra.gmra.mrb[4].mxu0 %vm43_vm1, %v5043_v34 }
  0x25   :  { %5990 = vmatpush3.bf16.msra.mxu0 %v6628_v4  ;;  %5447 = vmatprep.mubr.msk.f32.mxu0 %vm6574_vm0, %v6575_v1 }
  0x26   :  { %5455 = vmatmul.mubr.msk.f32.vlgmr.msra.gmra.mrb[6].mxu1 %vm43_vm1, %v5049_v11  ;;  %6006 = vmatprep.subr.bf16.mxu0 %v6573_v0 }
  0x27   :  { %5996 = vmatpush3.bf16.msra.mxu1 %v6668_v12  ;;  %5465 = vmatprep.mubr.msk.f32.mxu1 %vm6574_vm0, %v6575_v1 }
  0x28   :  { %5997 = vmatprep.subr.bf16.mxu1 %v6573_v0  ;;  %5448 = vmatmul.mubr.msk.f32.vlgmr.msra.gmra.mrb[6].mxu0 %vm43_vm1, %v5047_v37 }
  0x29   :  { %6008 = vmatpush3.bf16.msra.mxu0 %v6713_v38  ;;  %5487 = vmatprep.mubr.msk.f32.mxu0 %vm6574_vm0, %v6575_v1 }
  0x2a   :  { %6009 = vmatprep.subr.bf16.mxu0 %v6573_v0 }
  0x2b   :  { %5999 = vmatpush3.bf16.msra.mxu1 %v6673_v15 }
  0x2c   :  { %6000 = vmatprep.subr.bf16.mxu1 %v6573_v0 }
  0x2d   :  { %6011 = vmatpush3.bf16.msra.mxu0 %v6722_v42 }
  0x2e   :  { %5466 = vmatmul.mubr.f32.vlgmr.msra.gmra.mrb[8].mxu1 %v6575_v1  ;;  %6018 = vmatprep.subr.bf16.mxu0 %v6573_v0 }
  0x2f   :  { %6002 = vmatpush3.bf16.msra.mxu1 %v6668_v12  ;;  %5476 = vmatprep.mubr.msk.f32.mxu1 %vm6574_vm0, %v6575_v1 }
  0x30   :  { %6003 = vmatprep.subr.bf16.mxu1 %v6573_v0  ;;  %5488 = vmatmul.mubr.f32.vlgmr.msra.gmra.mrb[8].mxu0 %v6575_v1 }
  0x31   :  { %6020 = vmatpush3.bf16.msra.mxu0 %v6668_v12  ;;  %5509 = vmatprep.mubr.msk.f32.mxu0 %vm6574_vm0, %v6575_v1 }
  0x32   :  { %6021 = vmatprep.subr.bf16.mxu0 %v6573_v0 }
  0x33   :  { %6005 = vmatpush3.bf16.msra.mxu1 %v6673_v15 }
  0x34   :  { %6012 = vmatprep.subr.bf16.mxu1 %v6573_v0 }
  0x35   :  { %6023 = vmatpush3.bf16.msra.mxu0 %v6673_v15 }
  0x36   :  { %6030 = vmatprep.subr.bf16.mxu0 %v6573_v0 }
  0xed   :  { %v113_v16 = vpop.f32.mrb[0].mxu0 }
  0xee   :  { %v5407_v17 = vpop.f32.mrb[1].mxu0  ;;  %v114_v19 = vadd.f32 %v6687_v18, %v113_v16 }
 0x101   :  { %v716_v20 = vpop.f32.mrb[8].mxu1 }
 0x102   :  { %v720_v21 = vadd.f32 %v716_v20, %v114_v19  ;;  %v5467_v22 = vpop.f32.mrb[9].mxu1 }
 0x103   :  { %v919_v52 = vpop.f32.mrb[8].mxu0 }
 0x104   :  { %6321 = vtanh.f32 %v720_v21  ;;  %v5051_v24 = vmul.f32 -1.442695, %v720_v21  ;;  %v5489_v53 = vpop.f32.mrb[9].mxu0 }
 0x106   :  { %6323 = vpow2.f32 %v5051_v24 }
 0x10e   :  { %v6322_v23 = vpop.eup %6321 }
 0x10f   :  { %730 = vrot.lane.b32.xlu0 %v6322_v23, %s6576_s16 }
 0x110   :  { %v6324_v25 = vpop.eup %6323 }
 0x111   :  { %v724_v26 = vadd.f32 1.0, %v6324_v25 }
 0x113   :  { %6325 = vrcp.f32 %v724_v26 }
 0x11d   :  { %v6326_v27 = vpop.eup %6325 }
 0x11e   :  { %v728_v30 = vmul.f32 0.0, %v6326_v27 }
 0x181   :  { %v731_v28 = vpop.permute.xlu0 %730 }
 0x182   :  { %v733_v29 = vmul.f32 %v6326_v27, %v731_v28 }
 0x184   :  { %735 = vrot.lane.b32.xlu0 %v733_v29, %s6577_s17 }
 0x1f6   :  { %v736_v31 = vpop.permute.xlu0 %735 }
 0x1f7   :  { %v6692_v32 = vadd.f32 %v736_v31, %v728_v30  ;;  %v1293_v30 = vld [vmem:[#allocation3 + $0x80] sm:$0xff]  ;;  %v1294_v31 = vld [vmem:[#allocation3 + $0x88] sm:$0xff] }
 0x1f8   :  { %v6777_v34 = vpack.c.bf16 %v1294_v31, %v1293_v30 }
 0x1f9   :  { %6327 = vtanh.f32 %v6692_v32 }
 0x203   :  { %v6328_v39 = vpop.eup %6327 }
 0x204   :  { %741 = vrot.lane.b32.xlu1 %v6328_v39, %s6576_s16  ;;  %v1299_v39 = vld [vmem:[#allocation3 + $0xb0] sm:$0xff] }
 0x276   :  { %v742_v43 = vpop.permute.xlu1 %741 }
 0x277   :  { %v744_v44 = vmul.f32 %v6326_v27, %v742_v43  ;;  %v6784_v43 = vpack.c.bf16 %v1296_v36, %v1295_v35 }
 0x279   :  { %746 = vrot.lane.b32.xlu1 %v744_v44, %s6577_s17  ;;  %v6791_v44 = vpack.c.bf16 %v1300_v40, %v1299_v39 }
 0x2eb   :  { %v747_v50 = vpop.permute.xlu1 %746 }
 0x2ec   :  { %5477 = vmatmul.mubr.msk.f32.vlgmr.msra.gmra.mrb[0].mxu1 %vm646_vm2, %v747_v50 }
 0x2ed   :  { %6014 = vmatpush3.bf16.msra.mxu1 %v6734_v47  ;;  %5498 = vmatprep.mubr.msk.f32.mxu1 %vm6574_vm0, %v6575_v1 }
 0x2ee   :  { %6015 = vmatprep.subr.bf16.mxu1 %v6573_v0 }
 0x2f1   :  { %6017 = vmatpush3.bf16.msra.mxu1 %v6738_v51 }
 0x2f2   :  { %6024 = vmatprep.subr.bf16.mxu1 %v6573_v0 }
 0x2f4   :  { %5499 = vmatmul.mubr.msk.f32.vlgmr.msra.gmra.mrb[10].mxu1 %vm646_vm2, %v747_v50 }
 0x2f5   :  { %6026 = vmatpush3.bf16.msra.mxu1 %v6713_v38  ;;  %5520 = vmatprep.mubr.msk.f32.mxu1 %vm6574_vm0, %v6575_v1 }
 0x2f6   :  { %6027 = vmatprep.subr.bf16.mxu1 %v6573_v0 }
 0x2f9   :  { %6029 = vmatpush3.bf16.msra.mxu1 %v6722_v42 }
 0x2fa   :  { %6036 = vmatprep.subr.bf16.mxu1 %v6573_v0 }
 0x3bf   :  { %v816_v54 = vpop.f32.mrb[0].mxu1 }
 0x3c0   :  { %v6280_v55 = vadd.f32 %v6687_v18, %v816_v54  ;;  %v5478_v56 = vpop.f32.mrb[1].mxu1 }
 0x3c2   :  { %6329 = vtanh.f32 %v6280_v55  ;;  %v5053_v2 = vmul.f32 -1.442695, %v6280_v55 }
 0x3c7   :  { %v989_v57 = vpop.f32.mrb[10].mxu1 }
 0x3c8   :  { %v990_v59 = vadd.f32 %v989_v57, %v919_v52  ;;  %v5500_v60 = vpop.f32.mrb[11].mxu1 }
 0x3ca   :  { %v998_v61 = vadd.f32 %v6753_v58, %v990_v59 }
 0x3cc   :  { %v6330_v62 = vpop.eup %6329  ;;  %6331 = vtanh.f32 %v998_v61  ;;  %v5056_v3 = vmul.f32 -1.442695, %v998_v61  ;;  %v6817_v61 = vld [vmem:[#allocation3 + $0xc0] ss:$0 sm:$0xff] }
 0x3cd   :  { %830 = vrot.lane.b32.xlu0 %v6330_v62, %s6576_s16  ;;  %6333 = vpow2.f32 %v5053_v2 }
 0x3ce   :  { %6335 = vpow2.f32 %v5056_v3 }
 0x3d6   :  { %v6332_v63 = vpop.eup %6331 }
 0x3d7   :  { %1008 = vrot.lane.b32.xlu1 %v6332_v63, %s6576_s16  ;;  %v6334_v4 = vpop.eup %6333 }
 0x3d8   :  { %v824_v5 = vadd.f32 1.0, %v6334_v4  ;;  %v6336_v6 = vpop.eup %6335 }
 0x3d9   :  { %v1002_v7 = vadd.f32 1.0, %v6336_v6 }
 0x3da   :  { %6337 = vrcp.f32 %v824_v5 }
 0x3db   :  { %6339 = vrcp.f32 %v1002_v7 }
 0x3e4   :  { %v6338_v8 = vpop.eup %6337 }
 0x3e5   :  { %v6340_v11 = vpop.eup %6339  ;;  %v828_v16 = vmul.f32 %v6338_v8, %v6692_v32  ;;  %v1297_v32 = vld [vmem:[#allocation3 + $0xa0] sm:$0xff] }
 0x3e6   :  { %v1006_v20 = vmul.f32 0.0, %v6340_v11  ;;  %v6780_v37 = vpack.c.bf16 %v1298_v33, %v1297_v32 }
 0x43f   :  { %v831_v9 = vpop.permute.xlu0 %830 }
 0x440   :  { %v833_v10 = vmul.f32 %v6338_v8, %v831_v9 }
 0x442   :  { %835 = vrot.lane.b32.xlu0 %v833_v10, %s6577_s17 }
 0x449   :  { %v1009_v13 = vpop.permute.xlu1 %1008 }
 0x44a   :  { %v1011_v14 = vmul.f32 %v6340_v11, %v1009_v13 }
 0x44c   :  { %1013 = vrot.lane.b32.xlu1 %v1011_v14, %s6577_s17 }
 0x4b4   :  { %v836_v17 = vpop.permute.xlu0 %835 }
 0x4b5   :  { %v6761_v19 = vadd.f32 %v836_v17, %v828_v16 }
 0x4b7   :  { %6341 = vtanh.f32 %v6761_v19 }
 0x4be   :  { %v1014_v21 = vpop.permute.xlu1 %1013 }
 0x4bf   :  { %v6764_v22 = vadd.f32 %v1014_v21, %v1006_v20 }
 0x4c1   :  { %v6342_v23 = vpop.eup %6341  ;;  %6343 = vtanh.f32 %v6764_v22 }
 0x4c2   :  { %841 = vrot.lane.b32.xlu0 %v6342_v23, %s6576_s16 }
 0x4cb   :  { %v6344_v24 = vpop.eup %6343 }
 0x4cc   :  { %1019 = vrot.lane.b32.xlu1 %v6344_v24, %s6576_s16 }
 0x534   :  { %v842_v25 = vpop.permute.xlu0 %841 }
 0x535   :  { %v844_v26 = vmul.f32 %v6338_v8, %v842_v25 }
 0x537   :  { %1024 = vrot.lane.b32.xlu0 %v844_v26, %s6577_s17 }
 0x53e   :  { %v1020_v27 = vpop.permute.xlu1 %1019 }
 0x53f   :  { %v1022_v28 = vmul.f32 %v6340_v11, %v1020_v27 }
 0x541   :  { %1124 = vrot.lane.b32.xlu1 %v1022_v28, %s6577_s17 }
 0x5a9   :  { %v1025_v29 = vpop.permute.xlu0 %1024 }
 0x5aa   :  { %5510 = vmatmul.mubr.msk.f32.vlgmr.msra.gmra.mrb[2].mxu0 %vm646_vm2, %v1025_v29 }
 0x5ab   :  { %6032 = vmatpush3.bf16.msra.mxu0 %v6734_v47  ;;  %5531 = vmatprep.mubr.msk.f32.mxu0 %vm6574_vm0, %v6575_v1 }
 0x5ac   :  { %6033 = vmatprep.subr.bf16.mxu0 %v6573_v0 }
 0x5af   :  { %6035 = vmatpush3.bf16.msra.mxu0 %v6738_v51 }
 0x5b0   :  { %6042 = vmatprep.subr.bf16.mxu0 %v6573_v0 }
 0x5b2   :  { %5532 = vmatmul.mubr.msk.f32.vlgmr.msra.gmra.mrb[10].mxu0 %vm646_vm2, %v1025_v29 }
 0x5b3   :  { %6044 = vmatpush3.bf16.msra.mxu0 %v6777_v34  ;;  %v1125_v41 = vpop.permute.xlu1 %1124  ;;  %5553 = vmatprep.mubr.msk.f32.mxu0 %vm6574_vm0, %v6575_v1 }
 0x5b4   :  { %5521 = vmatmul.mubr.msk.f32.vlgmr.msra.gmra.mrb[12].mxu1 %vm646_vm2, %v1125_v41  ;;  %6045 = vmatprep.subr.bf16.mxu0 %v6573_v0 }
 0x5b5   :  { %6038 = vmatpush3.bf16.msra.mxu1 %v6780_v37  ;;  %5542 = vmatprep.mubr.msk.f32.mxu1 %vm6574_vm0, %v6575_v1 }
 0x5b6   :  { %6039 = vmatprep.subr.bf16.mxu1 %v6573_v0 }
 0x5b7   :  { %6047 = vmatpush3.bf16.msra.mxu0 %v6784_v43 }
 0x5b8   :  { %6054 = vmatprep.subr.bf16.mxu0 %v6573_v0 }
 0x5b9   :  { %6041 = vmatpush3.bf16.msra.mxu1 %v6791_v44 }
 0x5ba   :  { %5554 = vmatmul.mubr.msk.f32.vlgmr.msra.gmra.mrb[12].mxu0 %vm646_vm2, %v1125_v41  ;;  %6048 = vmatprep.subr.bf16.mxu1 %v6573_v0 }
 0x5bb   :  { %6056 = vmatpush3.bf16.msra.mxu0 %v6713_v38  ;;  %5575 = vmatprep.mubr.msk.f32.mxu0 %vm6574_vm0, %v6575_v1 }
 0x5bc   :  { %5543 = vmatmul.mubr.f32.vlgmr.msra.gmra.mrb[14].mxu1 %v6575_v1  ;;  %6057 = vmatprep.subr.bf16.mxu0 %v6573_v0 }
 0x5bd   :  { %6050 = vmatpush3.bf16.msra.mxu1 %v6668_v12  ;;  %5564 = vmatprep.mubr.msk.f32.mxu1 %vm6574_vm0, %v6575_v1 }
 0x5be   :  { %6051 = vmatprep.subr.bf16.mxu1 %v6573_v0 }
 0x5bf   :  { %6059 = vmatpush3.bf16.msra.mxu0 %v6722_v42 }
 0x5c0   :  { %6066 = vmatprep.subr.bf16.mxu0 %v6573_v0 }
 0x5c1   :  { %6053 = vmatpush3.bf16.msra.mxu1 %v6673_v15 }
 0x5c2   :  { %6060 = vmatprep.subr.bf16.mxu1 %v6573_v0 }
 0x67d   :  { %v1094_v45 = vpop.f32.mrb[2].mxu0 }
 0x67e   :  { %v6281_v46 = vadd.f32 %v6687_v18, %v1094_v45  ;;  %v5511_v48 = vpop.f32.mrb[3].mxu0 }
 0x680   :  { %6345 = vtanh.f32 %v6281_v46  ;;  %v5058_v5 = vmul.f32 -1.442695, %v6281_v46 }
 0x685   :  { %v1264_v49 = vpop.f32.mrb[10].mxu0 }
 0x686   :  { %v5533_v50 = vpop.f32.mrb[11].mxu0 }
 0x687   :  { %v1194_v52 = vpop.f32.mrb[12].mxu1 }
 0x688   :  { %v1265_v53 = vadd.f32 %v1264_v49, %v1194_v52  ;;  %v5522_v54 = vpop.f32.mrb[13].mxu1 }
 0x68a   :  { %v6346_v55 = vpop.eup %6345  ;;  %v1268_v56 = vadd.f32 %v6753_v58, %v1265_v53 }
 0x68b   :  { %1108 = vrot.lane.b32.xlu0 %v6346_v55, %s6576_s16 }
 0x68c   :  { %6347 = vtanh.f32 %v1268_v56  ;;  %v5061_v6 = vmul.f32 -1.442695, %v1268_v56 }
 0x68d   :  { %v1437_v57 = vpop.f32.mrb[12].mxu0 }
 0x68e   :  { %v5555_v59 = vpop.f32.mrb[13].mxu0 }
 0x68f   :  { %v1367_v60 = vpop.f32.mrb[14].mxu1 }
 0x690   :  { %v1438_v62 = vadd.f32 %v1437_v57, %v1367_v60  ;;  %v5544_v63 = vpop.f32.mrb[15].mxu1 }
 0x692   :  { %v1446_v2 = vadd.f32 %v6817_v61, %v1438_v62 }
 0x694   :  { %6349 = vtanh.f32 %v1446_v2  ;;  %v5064_v9 = vmul.f32 -1.442695, %v1446_v2 }
 0x695   :  { %6351 = vpow2.f32 %v5058_v5 }
 0x696   :  { %v6348_v3 = vpop.eup %6347  ;;  %6353 = vpow2.f32 %v5061_v6 }
 0x697   :  { %1278 = vrot.lane.b32.xlu1 %v6348_v3, %s6576_s16 }
 0x69e   :  { %v6350_v4 = vpop.eup %6349 }
 0x69f   :  { %1456 = vrot.lane.b32.xlu0 %v6350_v4, %s6576_s16  ;;  %v6352_v7 = vpop.eup %6351 }
 0x6a0   :  { %v1102_v8 = vadd.f32 1.0, %v6352_v7  ;;  %v6354_v10 = vpop.eup %6353 }
 0x6a1   :  { %v1272_v11 = vadd.f32 1.0, %v6354_v10 }
 0x6a2   :  { %6355 = vrcp.f32 %v1102_v8 }
 0x6a3   :  { %6357 = vpow2.f32 %v5064_v9 }
 0x6a4   :  { %6359 = vrcp.f32 %v1272_v11 }
 0x6ac   :  { %v6356_v13 = vpop.eup %6355 }
 0x6ad   :  { %v6358_v17 = vpop.eup %6357  ;;  %v1106_v28 = vmul.f32 %v6356_v13, %v6761_v19 }
 0x6ae   :  { %v1450_v20 = vadd.f32 1.0, %v6358_v17  ;;  %v6360_v21 = vpop.eup %6359 }
 0x6af   :  { %v1276_v31 = vmul.f32 %v6360_v21, %v6764_v22 }
 0x6b0   :  { %6361 = vrcp.f32 %v1450_v20 }
 0x6ba   :  { %v6362_v25 = vpop.eup %6361 }
 0x6bb   :  { %v1454_v36 = vmul.f32 0.0, %v6362_v25 }
 0x6fd   :  { %v1109_v14 = vpop.permute.xlu0 %1108 }
 0x6fe   :  { %v1111_v16 = vmul.f32 %v6356_v13, %v1109_v14 }
 0x700   :  { %1113 = vrot.lane.b32.xlu1 %v1111_v16, %s6577_s17 }
 0x709   :  { %v1279_v23 = vpop.permute.xlu1 %1278 }
 0x70a   :  { %v1281_v24 = vmul.f32 %v6360_v21, %v1279_v23 }
 0x70c   :  { %1283 = vrot.lane.b32.xlu0 %v1281_v24, %s6577_s17 }
 0x711   :  { %v1457_v26 = vpop.permute.xlu0 %1456 }
 0x712   :  { %v1459_v27 = vmul.f32 %v6362_v25, %v1457_v26 }
 0x714   :  { %1461 = vrot.lane.b32.xlu1 %v1459_v27, %s6577_s17 }
 0x772   :  { %v1114_v29 = vpop.permute.xlu1 %1113 }
 0x773   :  { %v6826_v30 = vadd.f32 %v1114_v29, %v1106_v28 }
 0x775   :  { %6363 = vtanh.f32 %v6826_v30 }
 0x77e   :  { %v1284_v32 = vpop.permute.xlu0 %1283 }
 0x77f   :  { %v6364_v33 = vpop.eup %6363  ;;  %v6830_v35 = vadd.f32 %v1284_v32, %v1276_v31 }
 0x780   :  { %1119 = vrot.lane.b32.xlu0 %v6364_v33, %s6576_s16 }
 0x781   :  { %6365 = vtanh.f32 %v6830_v35 }
 0x786   :  { %v1462_v39 = vpop.permute.xlu1 %1461 }
 0x787   :  { %v6834_v40 = vadd.f32 %v1462_v39, %v1454_v36 }
 0x789   :  { %6367 = vtanh.f32 %v6834_v40 }
 0x78b   :  { %v6366_v19 = vpop.eup %6365 }
 0x78c   :  { %1289 = vrot.lane.b32.xlu1 %v6366_v19, %s6576_s16 }
 0x793   :  { %v6368_v41 = vpop.eup %6367 }
 0x794   :  { %1467 = vrot.lane.b32.xlu0 %v6368_v41, %s6576_s16 }
 0x7f2   :  { %v1120_v22 = vpop.permute.xlu0 %1119 }
 0x7f3   :  { %v1122_v45 = vmul.f32 %v6356_v13, %v1120_v22 }
 0x7f5   :  { %1482 = vrot.lane.b32.xlu1 %v1122_v45, %s6577_s17 }
 0x7fe   :  { %v1290_v46 = vpop.permute.xlu1 %1289 }
 0x7ff   :  { %v1292_v48 = vmul.f32 %v6360_v21, %v1290_v46 }
 0x801   :  { %1590 = vrot.lane.b32.xlu0 %v1292_v48, %s6577_s17 }
 0x806   :  { %v1468_v49 = vpop.permute.xlu0 %1467 }
 0x807   :  { %v1470_v50 = vmul.f32 %v6362_v25, %v1468_v49 }
 0x809   :  { %1472 = vrot.lane.b32.xlu1 %v1470_v50, %s6577_s17 }
 0x867   :  { %v1483_v52 = vpop.permute.xlu1 %1482 }
 0x868   :  { %5565 = vmatmul.mubr.msk.f32.vlgmr.msra.gmra.mrb[2].mxu1 %vm646_vm2, %v1483_v52 }
 0x869   :  { %6062 = vmatpush3.bf16.msra.mxu1 %v6734_v47  ;;  %5586 = vmatprep.mubr.msk.f32.mxu1 %vm6574_vm0, %v6575_v1 }
 0x86a   :  { %6063 = vmatprep.subr.bf16.mxu1 %v6573_v0 }
 0x86d   :  { %6065 = vmatpush3.bf16.msra.mxu1 %v6738_v51 }
 0x86e   :  { %6072 = vmatprep.subr.bf16.mxu1 %v6573_v0 }
 0x870   :  { %5587 = vmatmul.mubr.msk.f32.vlgmr.msra.gmra.mrb[16].mxu1 %vm646_vm2, %v1483_v52 }
 0x871   :  { %6074 = vmatpush3.bf16.msra.mxu1 %v6777_v34  ;;  %5608 = vmatprep.mubr.msk.f32.mxu1 %vm6574_vm0, %v6575_v1 }
 0x872   :  { %6075 = vmatprep.subr.bf16.mxu1 %v6573_v0 }
 0x873   :  { %v1591_v53 = vpop.permute.xlu0 %1590 }
 0x874   :  { %5576 = vmatmul.mubr.msk.f32.vlgmr.msra.gmra.mrb[14].mxu0 %vm646_vm2, %v1591_v53 }
 0x875   :  { %6068 = vmatpush3.bf16.msra.mxu0 %v6780_v37  ;;  %6077 = vmatpush3.bf16.msra.mxu1 %v6784_v43 }
 0x876   :  { %6069 = vmatprep.subr.bf16.mxu0 %v6573_v0  ;;  %5597 = vmatprep.mubr.msk.f32.mxu0 %vm6574_vm0, %v6575_v1 }
 0x877   :  { %6084 = vmatprep.subr.bf16.mxu1 %v6573_v0 }
 0x878   :  { %5609 = vmatmul.mubr.msk.f32.vlgmr.msra.gmra.mrb[18].mxu1 %vm646_vm2, %v1591_v53 }
 0x879   :  { %6071 = vmatpush3.bf16.msra.mxu0 %v6791_v44  ;;  %6086 = vmatpush3.bf16.msra.mxu1 %v6713_v38 }
 0x87a   :  { %6078 = vmatprep.subr.bf16.mxu0 %v6573_v0  ;;  %6087 = vmatprep.subr.bf16.mxu1 %v6573_v0 }
 0x87b   :  { %v1473_v54 = vpop.permute.xlu1 %1472  ;;  %5630 = vmatprep.mubr.msk.f32.mxu1 %vm6574_vm0, %v6575_v1 }
 0x87c   :  { %1476 = vst.msk [vmem:[#allocation2] sm:$0x3] %vm1475_vm3, %v1473_v54  ;;  %5598 = vmatmul.mubr.msk.f32.vlgmr.msra.gmra.mrb[16].mxu0 %vm646_vm2, %v1473_v54 }
 0x87d   :  { %6080 = vmatpush3.bf16.msra.mxu0 %v6668_v12  ;;  %5619 = vmatprep.mubr.msk.f32.mxu0 %vm6574_vm0, %v6575_v1 }
 0x87e   :  { %6081 = vmatprep.subr.bf16.mxu0 %v6573_v0  ;;  %6089 = vmatpush3.bf16.msra.mxu1 %v6722_v42 }
 0x87f   :  { %6096 = vmatprep.subr.bf16.mxu1 %v6573_v0 }
 0x881   :  { %6083 = vmatpush3.bf16.msra.mxu0 %v6673_v15 }
 0x882   :  { %6090 = vmatprep.subr.bf16.mxu0 %v6573_v0 }
 0x93b   :  { %v1552_v55 = vpop.f32.mrb[2].mxu1 }
 0x93c   :  { %v6282_v56 = vadd.f32 %v6687_v18, %v1552_v55  ;;  %v5566_v57 = vpop.f32.mrb[3].mxu1 }
 0x93e   :  { %6369 = vtanh.f32 %v6282_v56  ;;  %v5066_v14 = vmul.f32 -1.442695, %v6282_v56 }
 0x943   :  { %v1730_v59 = vpop.f32.mrb[16].mxu1 }
 0x944   :  { %v5588_v60 = vpop.f32.mrb[17].mxu1 }
 0x947   :  { %v1660_v62 = vpop.f32.mrb[14].mxu0 }
 0x948   :  { %v6370_v63 = vpop.eup %6369  ;;  %v1731_v2 = vadd.f32 %v1730_v59, %v1660_v62  ;;  %v5577_v3 = vpop.f32.mrb[15].mxu0 }
 0x949   :  { %1566 = vrot.lane.b32.xlu0 %v6370_v63, %s6576_s16 }
 0x94a   :  { %v1739_v4 = vadd.f32 %v6753_v58, %v1731_v2 }
 0x94b   :  { %v1910_v5 = vpop.f32.mrb[18].mxu1 }
 0x94c   :  { %6371 = vtanh.f32 %v1739_v4  ;;  %v5610_v6 = vpop.f32.mrb[19].mxu1  ;;  %v5070_v17 = vmul.f32 -1.442695, %v1739_v4 }
 0x94f   :  { %v1840_v7 = vpop.f32.mrb[16].mxu0 }
 0x950   :  { %v1911_v8 = vadd.f32 %v1910_v5, %v1840_v7  ;;  %v5599_v9 = vpop.f32.mrb[17].mxu0 }
 0x952   :  { %v1919_v10 = vadd.f32 %v6817_v61, %v1911_v8 }
 0x954   :  { %6373 = vtanh.f32 %v1919_v10  ;;  %v5074_v21 = vmul.f32 -1.442695, %v1919_v10 }
 0x955   :  { %6375 = vpow2.f32 %v5066_v14 }
 0x956   :  { %v6372_v11 = vpop.eup %6371  ;;  %6377 = vpow2.f32 %v5070_v17 }
 0x957   :  { %1749 = vrot.lane.b32.xlu1 %v6372_v11, %s6576_s16 }
 0x95e   :  { %v6374_v13 = vpop.eup %6373 }
 0x95f   :  { %1929 = vrot.lane.b32.xlu0 %v6374_v13, %s6576_s16  ;;  %v6376_v16 = vpop.eup %6375 }
 0x960   :  { %v1560_v20 = vadd.f32 1.0, %v6376_v16  ;;  %v6378_v23 = vpop.eup %6377 }
 0x961   :  { %v1743_v25 = vadd.f32 1.0, %v6378_v23 }
 0x962   :  { %6379 = vrcp.f32 %v1560_v20 }
 0x963   :  { %6381 = vpow2.f32 %v5074_v21 }
 0x964   :  { %6383 = vrcp.f32 %v1743_v25 }
 0x96c   :  { %v6380_v24 = vpop.eup %6379 }
 0x96d   :  { %v6382_v28 = vpop.eup %6381  ;;  %v1564_v41 = vmul.f32 %v6380_v24, %v6826_v30 }
 0x96e   :  { %v1923_v29 = vadd.f32 1.0, %v6382_v28  ;;  %v6384_v31 = vpop.eup %6383 }
 0x96f   :  { %v1747_v48 = vmul.f32 %v6384_v31, %v6830_v35 }
 0x970   :  { %6385 = vrcp.f32 %v1923_v29 }
 0x97a   :  { %v6386_v36 = vpop.eup %6385 }
 0x97b   :  { %v1927_v52 = vmul.f32 %v6386_v36, %v6834_v40 }
 0x9bb   :  { %v1567_v26 = vpop.permute.xlu0 %1566 }
 0x9bc   :  { %v1569_v27 = vmul.f32 %v6380_v24, %v1567_v26 }
 0x9be   :  { %1571 = vrot.lane.b32.xlu1 %v1569_v27, %s6577_s17 }
 0x9c9   :  { %v1750_v32 = vpop.permute.xlu1 %1749 }
 0x9ca   :  { %v1752_v33 = vmul.f32 %v6384_v31, %v1750_v32 }
 0x9cc   :  { %1754 = vrot.lane.b32.xlu0 %v1752_v33, %s6577_s17 }
 0x9d1   :  { %v1930_v39 = vpop.permute.xlu0 %1929 }
 0x9d2   :  { %v1932_v19 = vmul.f32 %v6386_v36, %v1930_v39 }
 0x9d4   :  { %1934 = vrot.lane.b32.xlu1 %v1932_v19, %s6577_s17 }
 0xa30   :  { %v1572_v22 = vpop.permute.xlu1 %1571 }
 0xa31   :  { %v6888_v45 = vadd.f32 %v1572_v22, %v1564_v41 }
 0xa33   :  { %6387 = vtanh.f32 %v6888_v45 }
 0xa3d   :  { %v6388_v46 = vpop.eup %6387 }
 0xa3e   :  { %v1755_v49 = vpop.permute.xlu0 %1754  ;;  %1577 = vrot.lane.b32.xlu0 %v6388_v46, %s6576_s16 }
 0xa3f   :  { %v6893_v50 = vadd.f32 %v1755_v49, %v1747_v48 }
 0xa41   :  { %6389 = vtanh.f32 %v6893_v50 }
 0xa46   :  { %v1935_v53 = vpop.permute.xlu1 %1934 }
 0xa47   :  { %v6897_v54 = vadd.f32 %v1935_v53, %v1927_v52 }
 0xa49   :  { %6391 = vtanh.f32 %v6897_v54 }
 0xa4b   :  { %v6390_v30 = vpop.eup %6389 }
 0xa4c   :  { %1760 = vrot.lane.b32.xlu1 %v6390_v30, %s6576_s16 }
 0xa53   :  { %v6392_v55 = vpop.eup %6391 }
 0xa54   :  { %1940 = vrot.lane.b32.xlu0 %v6392_v55, %s6576_s16 }
 0xab0   :  { %v1578_v35 = vpop.permute.xlu0 %1577 }
 0xab1   :  { %v1580_v56 = vmul.f32 %v6380_v24, %v1578_v35 }
 0xab3   :  { %1954 = vrot.lane.b32.xlu1 %v1580_v56, %s6577_s17 }
 0xabe   :  { %v1761_v57 = vpop.permute.xlu1 %1760 }
 0xabf   :  { %v1763_v59 = vmul.f32 %v6384_v31, %v1761_v57 }
 0xac1   :  { %2062 = vrot.lane.b32.xlu0 %v1763_v59, %s6577_s17 }
 0xac6   :  { %v1941_v40 = vpop.permute.xlu0 %1940 }
 0xac7   :  { %v1943_v60 = vmul.f32 %v6386_v36, %v1941_v40 }
 0xac9   :  { %1945 = vrot.lane.b32.xlu1 %v1943_v60, %s6577_s17 }
 0xb25   :  { %v1955_v62 = vpop.permute.xlu1 %1954 }
 0xb26   :  { %5620 = vmatmul.mubr.msk.f32.vlgmr.msra.gmra.mrb[4].mxu0 %vm646_vm2, %v1955_v62 }
 0xb27   :  { %6092 = vmatpush3.bf16.msra.mxu0 %v6734_v47  ;;  %5641 = vmatprep.mubr.msk.f32.mxu0 %vm6574_vm0, %v6575_v1 }
 0xb28   :  { %6093 = vmatprep.subr.bf16.mxu0 %v6573_v0 }
 0xb2b   :  { %6095 = vmatpush3.bf16.msra.mxu0 %v6738_v51 }
 0xb2c   :  { %6102 = vmatprep.subr.bf16.mxu0 %v6573_v0 }
 0xb2e   :  { %5642 = vmatmul.mubr.msk.f32.vlgmr.msra.gmra.mrb[18].mxu0 %vm646_vm2, %v1955_v62 }
 0xb2f   :  { %6104 = vmatpush3.bf16.msra.mxu0 %v6777_v34  ;;  %5663 = vmatprep.mubr.msk.f32.mxu0 %vm6574_vm0, %v6575_v1 }
 0xb30   :  { %6105 = vmatprep.subr.bf16.mxu0 %v6573_v0 }
 0xb33   :  { %6107 = vmatpush3.bf16.msra.mxu0 %v6784_v43  ;;  %v2063_v63 = vpop.permute.xlu0 %2062 }
 0xb34   :  { %5631 = vmatmul.mubr.msk.f32.vlgmr.msra.gmra.mrb[20].mxu1 %vm646_vm2, %v2063_v63  ;;  %6114 = vmatprep.subr.bf16.mxu0 %v6573_v0 }
 0xb35   :  { %6098 = vmatpush3.bf16.msra.mxu1 %v6780_v37  ;;  %5652 = vmatprep.mubr.msk.f32.mxu1 %vm6574_vm0, %v6575_v1 }
 0xb36   :  { %5664 = vmatmul.mubr.msk.f32.vlgmr.msra.gmra.mrb[20].mxu0 %vm646_vm2, %v2063_v63  ;;  %6099 = vmatprep.subr.bf16.mxu1 %v6573_v0 }
 0xb37   :  { %6116 = vmatpush3.bf16.msra.mxu0 %v6713_v38  ;;  %5685 = vmatprep.mubr.msk.f32.mxu0 %vm6574_vm0, %v6575_v1 }
 0xb38   :  { %6117 = vmatprep.subr.bf16.mxu0 %v6573_v0 }
 0xb39   :  { %6101 = vmatpush3.bf16.msra.mxu1 %v6791_v44 }
 0xb3a   :  { %6108 = vmatprep.subr.bf16.mxu1 %v6573_v0 }
 0xb3b   :  { %v1946_v2 = vpop.permute.xlu1 %1945  ;;  %6119 = vmatpush3.bf16.msra.mxu0 %v6722_v42 }
 0xb3c   :  { %1948 = vst.msk [vmem:[#allocation2 + $0x2] sm:$0x3] %vm1475_vm3, %v1946_v2  ;;  %5653 = vmatmul.mubr.msk.f32.vlgmr.msra.gmra.mrb[22].mxu1 %vm646_vm2, %v1946_v2  ;;  %6126 = vmatprep.subr.bf16.mxu0 %v6573_v0 }
 0xb3d   :  { %6110 = vmatpush3.bf16.msra.mxu1 %v6668_v12  ;;  %5674 = vmatprep.mubr.msk.f32.mxu1 %vm6574_vm0, %v6575_v1 }
 0xb3e   :  { %6111 = vmatprep.subr.bf16.mxu1 %v6573_v0 }
 0xb41   :  { %6113 = vmatpush3.bf16.msra.mxu1 %v6673_v15 }
 0xb42   :  { %6120 = vmatprep.subr.bf16.mxu1 %v6573_v0 }
 0xbf9   :  { %v2024_v38 = vpop.f32.mrb[4].mxu0 }
 0xbfa   :  { %v6283_v42 = vadd.f32 %v6687_v18, %v2024_v38  ;;  %v5621_v3 = vpop.f32.mrb[5].mxu0 }
 0xbfc   :  { %6393 = vtanh.f32 %v6283_v42  ;;  %v5076_v21 = vmul.f32 -1.442695, %v6283_v42 }
 0xc01   :  { %v2202_v4 = vpop.f32.mrb[18].mxu0 }
 0xc02   :  { %v5643_v5 = vpop.f32.mrb[19].mxu0 }
 0xc06   :  { %v6394_v6 = vpop.eup %6393 }
 0xc07   :  { %v2132_v7 = vpop.f32.mrb[20].mxu1  ;;  %2038 = vrot.lane.b32.xlu0 %v6394_v6, %s6576_s16 }
 0xc08   :  { %v2203_v12 = vadd.f32 %v2202_v4, %v2132_v7  ;;  %v5632_v8 = vpop.f32.mrb[21].mxu1 }
 0xc09   :  { %v2382_v9 = vpop.f32.mrb[20].mxu0 }
 0xc0a   :  { %v2211_v10 = vadd.f32 %v6753_v58, %v2203_v12  ;;  %v5665_v11 = vpop.f32.mrb[21].mxu0 }
 0xc0c   :  { %6395 = vtanh.f32 %v2211_v10  ;;  %v5080_v24 = vmul.f32 -1.442695, %v2211_v10 }
 0xc0f   :  { %v2312_v15 = vpop.f32.mrb[22].mxu1 }
 0xc10   :  { %v2383_v13 = vadd.f32 %v2382_v9, %v2312_v15  ;;  %v5654_v14 = vpop.f32.mrb[23].mxu1 }
 0xc12   :  { %v2391_v16 = vadd.f32 %v6817_v61, %v2383_v13 }
 0xc14   :  { %6397 = vtanh.f32 %v2391_v16  ;;  %v5084_v26 = vmul.f32 -1.442695, %v2391_v16 }
 0xc15   :  { %6399 = vpow2.f32 %v5076_v21 }
 0xc16   :  { %v6396_v17 = vpop.eup %6395  ;;  %6401 = vpow2.f32 %v5080_v24 }
 0xc17   :  { %2221 = vrot.lane.b32.xlu1 %v6396_v17, %s6576_s16 }
 0xc1e   :  { %v6398_v20 = vpop.eup %6397 }
 0xc1f   :  { %2401 = vrot.lane.b32.xlu0 %v6398_v20, %s6576_s16  ;;  %v6400_v23 = vpop.eup %6399 }
 0xc20   :  { %v2032_v25 = vadd.f32 1.0, %v6400_v23  ;;  %v6402_v27 = vpop.eup %6401 }
 0xc21   :  { %v2215_v32 = vadd.f32 1.0, %v6402_v27 }
 0xc22   :  { %6403 = vrcp.f32 %v2032_v25 }
 0xc23   :  { %6405 = vpow2.f32 %v5084_v26 }
 0xc24   :  { %6407 = vrcp.f32 %v2215_v32 }
 0xc2c   :  { %v6404_v28 = vpop.eup %6403 }
 0xc2d   :  { %v6406_v33 = vpop.eup %6405  ;;  %v2036_v49 = vmul.f32 %v6404_v28, %v6888_v45 }
 0xc2e   :  { %v2395_v36 = vadd.f32 1.0, %v6406_v33  ;;  %v6408_v39 = vpop.eup %6407 }
 0xc2f   :  { %v2219_v55 = vmul.f32 %v6408_v39, %v6893_v50 }
 0xc30   :  { %6409 = vrcp.f32 %v2395_v36 }
 0xc3a   :  { %v6410_v22 = vpop.eup %6409 }
 0xc3b   :  { %v2399_v57 = vmul.f32 %v6410_v22, %v6897_v54 }
 0xc79   :  { %v2039_v29 = vpop.permute.xlu0 %2038 }
 0xc7a   :  { %v2041_v31 = vmul.f32 %v6404_v28, %v2039_v29 }
 0xc7c   :  { %2043 = vrot.lane.b32.xlu1 %v2041_v31, %s6577_s17 }
 0xc89   :  { %v2222_v19 = vpop.permute.xlu1 %2221 }
 0xc8a   :  { %v2224_v41 = vmul.f32 %v6408_v39, %v2222_v19 }
 0xc8c   :  { %2226 = vrot.lane.b32.xlu0 %v2224_v41, %s6577_s17 }
 0xc91   :  { %v2402_v46 = vpop.permute.xlu0 %2401 }
 0xc92   :  { %v2404_v48 = vmul.f32 %v6410_v22, %v2402_v46 }
 0xc94   :  { %2406 = vrot.lane.b32.xlu1 %v2404_v48, %s6577_s17 }
 0xcee   :  { %v2044_v52 = vpop.permute.xlu1 %2043 }
 0xcef   :  { %v6951_v53 = vadd.f32 %v2044_v52, %v2036_v49 }
 0xcf1   :  { %6411 = vtanh.f32 %v6951_v53 }
 0xcfb   :  { %v6412_v30 = vpop.eup %6411 }
 0xcfc   :  { %2049 = vrot.lane.b32.xlu0 %v6412_v30, %s6576_s16 }
 0xcfe   :  { %v2227_v35 = vpop.permute.xlu0 %2226 }
 0xcff   :  { %v6956_v56 = vadd.f32 %v2227_v35, %v2219_v55 }
 0xd01   :  { %6413 = vtanh.f32 %v6956_v56 }
 0xd06   :  { %v2407_v59 = vpop.permute.xlu1 %2406 }
 0xd07   :  { %v6960_v40 = vadd.f32 %v2407_v59, %v2399_v57  ;;  %v2894_v57 = vld [vmem:[#allocation3 + $0x18] sm:$0xff]  ;;  %v2895_v59 = vld [vmem:[#allocation3 + $0x20] sm:$0xff] }
 0xd09   :  { %6415 = vtanh.f32 %v6960_v40 }
 0xd0b   :  { %v6414_v45 = vpop.eup %6413 }
 0xd0c   :  { %2232 = vrot.lane.b32.xlu1 %v6414_v45, %s6576_s16 }
 0xd13   :  { %v6416_v60 = vpop.eup %6415 }
 0xd14   :  { %2412 = vrot.lane.b32.xlu0 %v6416_v60, %s6576_s16  ;;  %v2896_v60 = vld [vmem:[#allocation3 + $0x28] sm:$0xff] }
 0xd6e   :  { %v2050_v62 = vpop.permute.xlu0 %2049 }
 0xd6f   :  { %v2052_v50 = vmul.f32 %v6404_v28, %v2050_v62 }
 0xd71   :  { %2426 = vrot.lane.b32.xlu1 %v2052_v50, %s6577_s17  ;;  %v3001_v50 = vld [vmem:[#allocation3 + $0x58] sm:$0xff] }
 0xd7e   :  { %v2233_v63 = vpop.permute.xlu1 %2232 }
 0xd7f   :  { %v2235_v2 = vmul.f32 %v6408_v39, %v2233_v63  ;;  %v3002_v63 = vld [vmem:[#allocation3 + $0x60] sm:$0xff] }
 0xd81   :  { %2534 = vrot.lane.b32.xlu0 %v2235_v2, %s6577_s17  ;;  %v7028_v2 = vpack.c.bf16 %v3002_v63, %v3001_v50 }
 0xd86   :  { %v2413_v54 = vpop.permute.xlu0 %2412 }
 0xd87   :  { %v2415_v38 = vmul.f32 %v6410_v22, %v2413_v54  ;;  %v3003_v54 = vld [vmem:[#allocation3 + $0x68] sm:$0xff] }
 0xd89   :  { %2417 = vrot.lane.b32.xlu1 %v2415_v38, %s6577_s17  ;;  %v3004_v38 = vld [vmem:[#allocation3 + $0x70] sm:$0xff] }
 0xde3   :  { %v2427_v42 = vpop.permute.xlu1 %2426 }
 0xde4   :  { %5675 = vmatmul.mubr.msk.f32.vlgmr.msra.gmra.mrb[4].mxu1 %vm646_vm2, %v2427_v42 }
 0xde5   :  { %6122 = vmatpush3.bf16.msra.mxu1 %v6734_v47  ;;  %5696 = vmatprep.mubr.msk.f32.mxu1 %vm6574_vm0, %v6575_v1 }
 0xde6   :  { %6123 = vmatprep.subr.bf16.mxu1 %v6573_v0 }
 0xde9   :  { %6125 = vmatpush3.bf16.msra.mxu1 %v6738_v51 }
 0xdea   :  { %6132 = vmatprep.subr.bf16.mxu1 %v6573_v0 }
 0xdec   :  { %5697 = vmatmul.mubr.msk.f32.vlgmr.msra.gmra.mrb[24].mxu1 %vm646_vm2, %v2427_v42 }
 0xded   :  { %6134 = vmatpush3.bf16.msra.mxu1 %v6777_v34  ;;  %5718 = vmatprep.mubr.msk.f32.mxu1 %vm6574_vm0, %v6575_v1 }
 0xdee   :  { %6135 = vmatprep.subr.bf16.mxu1 %v6573_v0 }
 0xdf1   :  { %6137 = vmatpush3.bf16.msra.mxu1 %v6784_v43 }
 0xdf2   :  { %6144 = vmatprep.subr.bf16.mxu1 %v6573_v0 }
 0xdf3   :  { %v2535_v47 = vpop.permute.xlu0 %2534 }
 0xdf4   :  { %5686 = vmatmul.mubr.msk.f32.vlgmr.msra.gmra.mrb[22].mxu0 %vm646_vm2, %v2535_v47  ;;  %5719 = vmatmul.mubr.msk.f32.vlgmr.msra.gmra.mrb[26].mxu1 %vm646_vm2, %v2535_v47 }
 0xdf5   :  { %6128 = vmatpush3.bf16.msra.mxu0 %v6780_v37  ;;  %5707 = vmatprep.mubr.msk.f32.mxu0 %vm6574_vm0, %v6575_v1 }
 0xdf6   :  { %6129 = vmatprep.subr.bf16.mxu0 %v6573_v0  ;;  %5740 = vmatprep.mubr.msk.f32.mxu1 %vm6574_vm0, %v6575_v1 }
 0xdf7   :  { %6146 = vmatpush3.bf16.msra.mxu1 %v7028_v2 }
 0xdf8   :  { %6147 = vmatprep.subr.bf16.mxu1 %v6573_v0 }
 0xdf9   :  { %6131 = vmatpush3.bf16.msra.mxu0 %v6791_v44 }
 0xdfa   :  { %6138 = vmatprep.subr.bf16.mxu0 %v6573_v0 }
 0xdfb   :  { %v2418_v51 = vpop.permute.xlu1 %2417 }
 0xdfc   :  { %2420 = vst.msk [vmem:[#allocation2 + $0x4] sm:$0x3] %vm1475_vm3, %v2418_v51  ;;  %5708 = vmatmul.mubr.msk.f32.vlgmr.msra.gmra.mrb[24].mxu0 %vm646_vm2, %v2418_v51  ;;  %v7031_v51 = vpack.c.bf16 %v3004_v38, %v3003_v54 }
 0xdfd   :  { %5729 = vmatprep.mubr.msk.f32.mxu0 %vm6574_vm0, %v6575_v1 }
 0xdfe   :  { %6149 = vmatpush3.bf16.msra.mxu1 %v7031_v51 }
 0xdff   :  { %6156 = vmatprep.subr.bf16.mxu1 %v6573_v0 }
 0xeb7   :  { %v2496_v34 = vpop.f32.mrb[4].mxu1 }
 0xeb8   :  { %v6284_v37 = vadd.f32 %v6687_v18, %v2496_v34  ;;  %v5676_v43 = vpop.f32.mrb[5].mxu1 }
 0xeba   :  { %6417 = vtanh.f32 %v6284_v37  ;;  %v5086_v16 = vmul.f32 -1.442695, %v6284_v37 }
 0xebf   :  { %v2674_v3 = vpop.f32.mrb[24].mxu1 }
 0xec0   :  { %v5698_v4 = vpop.f32.mrb[25].mxu1 }
 0xec1   :  { %v2997_v4 = vld [vmem:[#allocation3 + $0x38] sm:$0xff] }
 0xec4   :  { %v6418_v5 = vpop.eup %6417 }
 0xec5   :  { %2510 = vrot.lane.b32.xlu0 %v6418_v5, %s6576_s16  ;;  %v2998_v5 = vld [vmem:[#allocation3 + $0x40] sm:$0xff] }
 0xec7   :  { %v2604_v44 = vpop.f32.mrb[22].mxu0  ;;  %v2854_v6 = vpop.f32.mrb[26].mxu1 }
 0xec8   :  { %v2675_v7 = vadd.f32 %v2674_v3, %v2604_v44  ;;  %v5687_v12 = vpop.f32.mrb[23].mxu0  ;;  %v5720_v8 = vpop.f32.mrb[27].mxu1  ;;  %v7039_v44 = vpack.c.bf16 %v2998_v5, %v2997_v4 }
 0xeca   :  { %v2683_v9 = vadd.f32 %v6753_v58, %v2675_v7  ;;  %v3000_v7 = vld [vmem:[#allocation3 + $0x50] sm:$0xff] }
 0xecc   :  { %6419 = vtanh.f32 %v2683_v9  ;;  %v5090_v21 = vmul.f32 -1.442695, %v2683_v9  ;;  %v3180_v9 = vld [vmem:[#allocation3 + $0x80] sm:$0xff] }
 0xecf   :  { %v2784_v10 = vpop.f32.mrb[24].mxu0 }
 0xed0   :  { %v2855_v11 = vadd.f32 %v2854_v6, %v2784_v10  ;;  %v5709_v15 = vpop.f32.mrb[25].mxu0  ;;  %v2999_v6 = vld [vmem:[#allocation3 + $0x48] sm:$0xff] }
 0xed1   :  { %v7043_v8 = vpack.c.bf16 %v3000_v7, %v2999_v6  ;;  %v3181_v10 = vld [vmem:[#allocation3 + $0x88] sm:$0xff]  ;;  %v3182_v15 = vld [vmem:[#allocation3 + $0x90] sm:$0xff] }
 0xed2   :  { %v2863_v18 = vadd.f32 %v6817_v61, %v2855_v11  ;;  %v7049_v11 = vpack.c.bf16 %v3181_v10, %v3180_v9 }
 0xed4   :  { %6421 = vtanh.f32 %v2863_v18  ;;  %v5094_v58 = vmul.f32 -1.442695, %v2863_v18  ;;  %v3183_v18 = vld [vmem:[#allocation3 + $0x98] sm:$0xff] }
 0xed5   :  { %6423 = vpow2.f32 %v5086_v16  ;;  %v3185_v16 = vld [vmem:[#allocation3 + $0xa8] sm:$0xff] }
 0xed6   :  { %v6420_v13 = vpop.eup %6419 }
 0xed7   :  { %2693 = vrot.lane.b32.xlu1 %v6420_v13, %s6576_s16  ;;  %v7054_v13 = vpack.c.bf16 %v3183_v18, %v3182_v15 }
 0xede   :  { %v6422_v14 = vpop.eup %6421 }
 0xedf   :  { %2873 = vrot.lane.b32.xlu0 %v6422_v14, %s6576_s16  ;;  %v6424_v17 = vpop.eup %6423  ;;  %v3184_v14 = vld [vmem:[#allocation3 + $0xa0] sm:$0xff] }
 0xee0   :  { %v2504_v20 = vadd.f32 1.0, %v6424_v17  ;;  %v7061_v17 = vpack.c.bf16 %v3185_v16, %v3184_v14 }
 0xee2   :  { %6425 = vrcp.f32 %v2504_v20  ;;  %v3186_v20 = vld [vmem:[#allocation3 + $0xb0] sm:$0xff] }
 0xee3   :  { %6427 = vpow2.f32 %v5090_v21  ;;  %v3187_v21 = vld [vmem:[#allocation3 + $0xb8] sm:$0xff] }
 0xee4   :  { %6429 = vpow2.f32 %v5094_v58 }
 0xeec   :  { %v6426_v23 = vpop.eup %6425 }
 0xeed   :  { %v6428_v25 = vpop.eup %6427  ;;  %v2508_v19 = vmul.f32 %v6426_v23, %v6951_v53  ;;  %v2893_v53 = vld [vmem:[#allocation3 + $0x10] sm:$0xff] }
 0xeee   :  { %v2687_v26 = vadd.f32 1.0, %v6428_v25  ;;  %v6430_v27 = vpop.eup %6429  ;;  %v7018_v45 = vpack.c.bf16 %v2894_v57, %v2893_v53 }
 0xeef   :  { %v2867_v28 = vadd.f32 1.0, %v6430_v27 }
 0xef0   :  { %6431 = vrcp.f32 %v2687_v26  ;;  %6140 = vmatpush3.bf16.msra.mxu0 %v7018_v45 }
 0xef1   :  { %6433 = vrcp.f32 %v2867_v28  ;;  %6141 = vmatprep.subr.bf16.mxu0 %v6573_v0 }
 0xefa   :  { %v6432_v29 = vpop.eup %6431 }
 0xefb   :  { %v6434_v33 = vpop.eup %6433  ;;  %v2691_v48 = vmul.f32 %v6432_v29, %v6956_v56  ;;  %v7022_v56 = vpack.c.bf16 %v2896_v60, %v2895_v59 }
 0xefc   :  { %v2871_v30 = vmul.f32 %v6434_v33, %v6960_v40 }
 0xefd   :  { %6143 = vmatpush3.bf16.msra.mxu0 %v7022_v56 }
 0xefe   :  { %6150 = vmatprep.subr.bf16.mxu0 %v6573_v0 }
 0xf37   :  { %v2511_v24 = vpop.permute.xlu0 %2510 }
 0xf38   :  { %v2513_v61 = vmul.f32 %v6426_v23, %v2511_v24 }
 0xf3a   :  { %2515 = vrot.lane.b32.xlu1 %v2513_v61, %s6577_s17  ;;  %v7087_v61 = vld [vmem:[#allocation3 + $0x30] ss:$0 sm:$0xff] }
 0xf49   :  { %v2694_v31 = vpop.permute.xlu1 %2693 }
 0xf4a   :  { %v2696_v32 = vmul.f32 %v6432_v29, %v2694_v31 }
 0xf4c   :  { %2698 = vrot.lane.b32.xlu0 %v2696_v32, %s6577_s17 }
 0xf51   :  { %v2874_v36 = vpop.permute.xlu0 %2873 }
 0xf52   :  { %v2876_v39 = vmul.f32 %v6434_v33, %v2874_v36 }
 0xf54   :  { %2878 = vrot.lane.b32.xlu1 %v2876_v39, %s6577_s17 }
 0xfac   :  { %v2516_v41 = vpop.permute.xlu1 %2515 }
 0xfad   :  { %v7006_v22 = vadd.f32 %v2516_v41, %v2508_v19 }
 0xfaf   :  { %6435 = vtanh.f32 %v7006_v22 }
 0xfb9   :  { %v6436_v46 = vpop.eup %6435 }
 0xfba   :  { %2521 = vrot.lane.b32.xlu0 %v6436_v46, %s6576_s16 }
 0xfbe   :  { %v2699_v49 = vpop.permute.xlu0 %2698 }
 0xfbf   :  { %v7011_v52 = vadd.f32 %v2699_v49, %v2691_v48  ;;  %v7094_v49 = vld [vmem:[#allocation3 + $0xc0] ss:$0 sm:$0xff] }
 0xfc1   :  { %6437 = vtanh.f32 %v7011_v52 }
 0xfc6   :  { %v2879_v55 = vpop.permute.xlu1 %2878 }
 0xfc7   :  { %v7015_v35 = vadd.f32 %v2879_v55, %v2871_v30 }
 0xfc9   :  { %6439 = vtanh.f32 %v7015_v35 }
 0xfcb   :  { %v6438_v62 = vpop.eup %6437 }
 0xfcc   :  { %2704 = vrot.lane.b32.xlu1 %v6438_v62, %s6576_s16 }
 0xfd3   :  { %v6440_v40 = vpop.eup %6439 }
 0xfd4   :  { %2884 = vrot.lane.b32.xlu0 %v6440_v40, %s6576_s16 }
0x102c   :  { %v2522_v42 = vpop.permute.xlu0 %2521 }
0x102d   :  { %v2524_v47 = vmul.f32 %v6426_v23, %v2522_v42  ;;  %v7066_v23 = vpack.c.bf16 %v3187_v21, %v3186_v20 }
0x102f   :  { %2898 = vrot.lane.b32.xlu1 %v2524_v47, %s6577_s17 }
0x103e   :  { %v2705_v34 = vpop.permute.xlu1 %2704 }
0x103f   :  { %v2707_v37 = vmul.f32 %v6432_v29, %v2705_v34 }
0x1041   :  { %3006 = vrot.lane.b32.xlu0 %v2707_v37, %s6577_s17 }
0x1046   :  { %v2885_v43 = vpop.permute.xlu0 %2884 }
0x1047   :  { %v2887_v3 = vmul.f32 %v6434_v33, %v2885_v43  ;;  %v7091_v33 = vld [vmem:[#allocation3 + $0x78] ss:$0 sm:$0xff] }
0x1049   :  { %2889 = vrot.lane.b32.xlu1 %v2887_v3, %s6577_s17 }
0x10a1   :  { %v2899_v12 = vpop.permute.xlu1 %2898 }
0x10a2   :  { %5730 = vmatmul.mubr.msk.f32.vlgmr.msra.gmra.mrb[6].mxu0 %vm646_vm2, %v2899_v12 }
0x10a3   :  { %6152 = vmatpush3.bf16.msra.mxu0 %v7039_v44  ;;  %5751 = vmatprep.mubr.msk.f32.mxu0 %vm6574_vm0, %v6575_v1 }
0x10a4   :  { %6153 = vmatprep.subr.bf16.mxu0 %v6573_v0 }
0x10a7   :  { %6155 = vmatpush3.bf16.msra.mxu0 %v7043_v8 }
0x10a8   :  { %6162 = vmatprep.subr.bf16.mxu0 %v6573_v0 }
0x10aa   :  { %5752 = vmatmul.mubr.msk.f32.vlgmr.msra.gmra.mrb[26].mxu0 %vm646_vm2, %v2899_v12 }
0x10ab   :  { %6164 = vmatpush3.bf16.msra.mxu0 %v7049_v11  ;;  %5773 = vmatprep.mubr.msk.f32.mxu0 %vm6574_vm0, %v6575_v1 }
0x10ac   :  { %6165 = vmatprep.subr.bf16.mxu0 %v6573_v0 }
0x10af   :  { %6167 = vmatpush3.bf16.msra.mxu0 %v7054_v13 }
0x10b0   :  { %6174 = vmatprep.subr.bf16.mxu0 %v6573_v0 }
0x10b3   :  { %v3007_v58 = vpop.permute.xlu0 %3006 }
0x10b4   :  { %5741 = vmatmul.mubr.msk.f32.vlgmr.msra.gmra.mrb[28].mxu1 %vm646_vm2, %v3007_v58  ;;  %5774 = vmatmul.mubr.msk.f32.vlgmr.msra.gmra.mrb[28].mxu0 %vm646_vm2, %v3007_v58 }
0x10b5   :  { %6158 = vmatpush3.bf16.msra.mxu1 %v7061_v17  ;;  %5762 = vmatprep.mubr.msk.f32.mxu1 %vm6574_vm0, %v6575_v1 }
0x10b6   :  { %6159 = vmatprep.subr.bf16.mxu1 %v6573_v0  ;;  %6176 = vmatpush3.bf16.msra.mxu0 %v7028_v2 }
0x10b7   :  { %6177 = vmatprep.subr.bf16.mxu0 %v6573_v0  ;;  %5795 = vmatprep.mubr.msk.f32.mxu0 %vm6574_vm0, %v6575_v1 }
0x10b9   :  { %6161 = vmatpush3.bf16.msra.mxu1 %v7066_v23 }
0x10ba   :  { %6168 = vmatprep.subr.bf16.mxu1 %v6573_v0  ;;  %6179 = vmatpush3.bf16.msra.mxu0 %v7031_v51 }
0x10bb   :  { %v2890_v24 = vpop.permute.xlu1 %2889  ;;  %6186 = vmatprep.subr.bf16.mxu0 %v6573_v0 }
0x10bc   :  { %2892 = vst.msk [vmem:[#allocation2 + $0x6] sm:$0x3] %vm1475_vm3, %v2890_v24  ;;  %5763 = vmatmul.mubr.msk.f32.vlgmr.msra.gmra.mrb[30].mxu1 %vm646_vm2, %v2890_v24 }
0x10bd   :  { %6170 = vmatpush3.bf16.msra.mxu1 %v7018_v45  ;;  %5784 = vmatprep.mubr.msk.f32.mxu1 %vm6574_vm0, %v6575_v1 }
0x10be   :  { %6171 = vmatprep.subr.bf16.mxu1 %v6573_v0 }
0x10c1   :  { %6173 = vmatpush3.bf16.msra.mxu1 %v7022_v56 }
0x10c2   :  { %6180 = vmatprep.subr.bf16.mxu1 %v6573_v0 }
0x1175   :  { %v2968_v25 = vpop.f32.mrb[6].mxu0 }
0x1176   :  { %v6285_v26 = vadd.f32 %v7087_v61, %v2968_v25  ;;  %v5731_v27 = vpop.f32.mrb[7].mxu0 }
0x1178   :  { %6441 = vtanh.f32 %v6285_v26  ;;  %v5096_v45 = vmul.f32 -1.442695, %v6285_v26 }
0x117d   :  { %v3146_v28 = vpop.f32.mrb[26].mxu0 }
0x117e   :  { %v5753_v29 = vpop.f32.mrb[27].mxu0 }
0x1182   :  { %v6442_v31 = vpop.eup %6441 }
0x1183   :  { %2982 = vrot.lane.b32.xlu0 %v6442_v31, %s6576_s16 }
0x1187   :  { %v3076_v32 = vpop.f32.mrb[28].mxu1  ;;  %v3326_v36 = vpop.f32.mrb[28].mxu0 }
0x1188   :  { %v3147_v39 = vadd.f32 %v3146_v28, %v3076_v32  ;;  %v5742_v19 = vpop.f32.mrb[29].mxu1  ;;  %v5775_v41 = vpop.f32.mrb[29].mxu0 }
0x118a   :  { %v3155_v46 = vadd.f32 %v7091_v33, %v3147_v39 }
0x118c   :  { %6443 = vtanh.f32 %v3155_v46  ;;  %v5100_v56 = vmul.f32 -1.442695, %v3155_v46 }
0x118f   :  { %v3256_v48 = vpop.f32.mrb[30].mxu1 }
0x1190   :  { %v3327_v30 = vadd.f32 %v3326_v36, %v3256_v48  ;;  %v5764_v55 = vpop.f32.mrb[31].mxu1 }
0x1192   :  { %v3335_v53 = vadd.f32 %v7094_v49, %v3327_v30 }
0x1194   :  { %6445 = vtanh.f32 %v3335_v53  ;;  %v5104_v40 = vmul.f32 -1.442695, %v3335_v53 }
0x1195   :  { %6447 = vpow2.f32 %v5096_v45 }
0x1196   :  { %v6444_v57 = vpop.eup %6443 }
0x1197   :  { %3165 = vrot.lane.b32.xlu1 %v6444_v57, %s6576_s16 }
0x119e   :  { %v6446_v59 = vpop.eup %6445 }
0x119f   :  { %3345 = vrot.lane.b32.xlu0 %v6446_v59, %s6576_s16  ;;  %v6448_v60 = vpop.eup %6447 }
0x11a0   :  { %v2976_v62 = vadd.f32 1.0, %v6448_v60 }
0x11a2   :  { %6449 = vrcp.f32 %v2976_v62 }
0x11a3   :  { %6451 = vpow2.f32 %v5100_v56 }
0x11a4   :  { %6453 = vpow2.f32 %v5104_v40 }
0x11ac   :  { %v6450_v50 = vpop.eup %6449 }
0x11ad   :  { %v6452_v38 = vpop.eup %6451  ;;  %v2980_v7 = vmul.f32 %v6450_v50, %v7006_v22 }
0x11ae   :  { %v3159_v42 = vadd.f32 1.0, %v6452_v38  ;;  %v6454_v47 = vpop.eup %6453 }
0x11af   :  { %v3339_v34 = vadd.f32 1.0, %v6454_v47 }
0x11b0   :  { %6455 = vrcp.f32 %v3159_v42 }
0x11b1   :  { %6457 = vrcp.f32 %v3339_v34 }
0x11ba   :  { %v6456_v37 = vpop.eup %6455 }
0x11bb   :  { %v6458_v4 = vpop.eup %6457  ;;  %v3163_v15 = vmul.f32 %v6456_v37, %v7011_v52 }
0x11bc   :  { %v3343_v16 = vmul.f32 %v6458_v4, %v7015_v35 }
0x11f5   :  { %v2983_v63 = vpop.permute.xlu0 %2982 }
0x11f6   :  { %v2985_v54 = vmul.f32 %v6450_v50, %v2983_v63 }
0x11f8   :  { %2987 = vrot.lane.b32.xlu1 %v2985_v54, %s6577_s17 }
0x1209   :  { %v3166_v43 = vpop.permute.xlu1 %3165 }
0x120a   :  { %v3168_v3 = vmul.f32 %v6456_v37, %v3166_v43 }
0x120c   :  { %3170 = vrot.lane.b32.xlu0 %v3168_v3, %s6577_s17 }
0x1211   :  { %v3346_v5 = vpop.permute.xlu0 %3345 }
0x1212   :  { %v3348_v6 = vmul.f32 %v6458_v4, %v3346_v5 }
0x1214   :  { %3350 = vrot.lane.b32.xlu1 %v3348_v6, %s6577_s17 }
0x126a   :  { %v2988_v12 = vpop.permute.xlu1 %2987 }
0x126b   :  { %v7103_v9 = vadd.f32 %v2988_v12, %v2980_v7 }
0x126d   :  { %6459 = vtanh.f32 %v7103_v9 }
0x1277   :  { %v6460_v10 = vpop.eup %6459 }
0x1278   :  { %2993 = vrot.lane.b32.xlu0 %v6460_v10, %s6576_s16 }
0x127e   :  { %v3171_v18 = vpop.permute.xlu0 %3170 }
0x127f   :  { %v7108_v14 = vadd.f32 %v3171_v18, %v3163_v15 }
0x1281   :  { %6461 = vtanh.f32 %v7108_v14 }
0x1286   :  { %v3351_v20 = vpop.permute.xlu1 %3350 }
0x1287   :  { %v7112_v21 = vadd.f32 %v3351_v20, %v3343_v16 }
0x1289   :  { %6463 = vtanh.f32 %v7112_v21 }
0x128b   :  { %v6462_v22 = vpop.eup %6461 }
0x128c   :  { %3176 = vrot.lane.b32.xlu1 %v6462_v22, %s6576_s16 }
0x1293   :  { %v6464_v58 = vpop.eup %6463 }
0x1294   :  { %3356 = vrot.lane.b32.xlu0 %v6464_v58, %s6576_s16 }
0x12ea   :  { %v2994_v24 = vpop.permute.xlu0 %2993 }
0x12eb   :  { %v2996_v52 = vmul.f32 %v6450_v50, %v2994_v24 }
0x12ed   :  { %3370 = vrot.lane.b32.xlu1 %v2996_v52, %s6577_s17 }
0x12fe   :  { %v3177_v25 = vpop.permute.xlu1 %3176 }
0x12ff   :  { %v3179_v26 = vmul.f32 %v6456_v37, %v3177_v25 }
0x1301   :  { %3478 = vrot.lane.b32.xlu0 %v3179_v26, %s6577_s17 }
0x1306   :  { %v3357_v35 = vpop.permute.xlu0 %3356 }
0x1307   :  { %v3359_v27 = vmul.f32 %v6458_v4, %v3357_v35 }
0x1309   :  { %3361 = vrot.lane.b32.xlu1 %v3359_v27, %s6577_s17 }
0x135f   :  { %v3371_v28 = vpop.permute.xlu1 %3370 }
0x1360   :  { %5785 = vmatmul.mubr.msk.f32.vlgmr.msra.gmra.mrb[6].mxu1 %vm646_vm2, %v3371_v28 }
0x1361   :  { %6182 = vmatpush3.bf16.msra.mxu1 %v7039_v44  ;;  %5806 = vmatprep.mubr.msk.f32.mxu1 %vm6574_vm0, %v6575_v1 }
0x1362   :  { %6183 = vmatprep.subr.bf16.mxu1 %v6573_v0 }
0x1365   :  { %6185 = vmatpush3.bf16.msra.mxu1 %v7043_v8 }
0x1366   :  { %6192 = vmatprep.subr.bf16.mxu1 %v6573_v0 }
0x1368   :  { %5807 = vmatmul.mubr.msk.f32.vlgmr.msra.gmra.mrb[32].mxu1 %vm646_vm2, %v3371_v28 }
0x1369   :  { %6194 = vmatpush3.bf16.msra.mxu1 %v7049_v11  ;;  %5828 = vmatprep.mubr.msk.f32.mxu1 %vm6574_vm0, %v6575_v1 }
0x136a   :  { %6195 = vmatprep.subr.bf16.mxu1 %v6573_v0 }
0x136d   :  { %6197 = vmatpush3.bf16.msra.mxu1 %v7054_v13 }
0x136e   :  { %6204 = vmatprep.subr.bf16.mxu1 %v6573_v0 }
0x1373   :  { %v3479_v29 = vpop.permute.xlu0 %3478 }
0x1374   :  { %5796 = vmatmul.mubr.msk.f32.vlgmr.msra.gmra.mrb[30].mxu0 %vm646_vm2, %v3479_v29  ;;  %5829 = vmatmul.mubr.msk.f32.vlgmr.msra.gmra.mrb[34].mxu1 %vm646_vm2, %v3479_v29 }
0x1375   :  { %6188 = vmatpush3.bf16.msra.mxu0 %v7061_v17  ;;  %5817 = vmatprep.mubr.msk.f32.mxu0 %vm6574_vm0, %v6575_v1 }
0x1376   :  { %6189 = vmatprep.subr.bf16.mxu0 %v6573_v0  ;;  %6206 = vmatpush3.bf16.msra.mxu1 %v7039_v44 }
0x1377   :  { %6207 = vmatprep.subr.bf16.mxu1 %v6573_v0  ;;  %5850 = vmatprep.mubr.msk.f32.mxu1 %vm6574_vm0, %v6575_v1 }
0x1379   :  { %6191 = vmatpush3.bf16.msra.mxu0 %v7066_v23 }
0x137a   :  { %6209 = vmatpush3.bf16.msra.mxu1 %v7043_v8  ;;  %6198 = vmatprep.subr.bf16.mxu0 %v6573_v0 }
0x137b   :  { %v3362_v31 = vpop.permute.xlu1 %3361  ;;  %6216 = vmatprep.subr.bf16.mxu1 %v6573_v0 }
0x137c   :  { %3364 = vst.msk [vmem:[#allocation2 + $0x8] sm:$0x3] %vm1475_vm3, %v3362_v31  ;;  %5818 = vmatmul.mubr.msk.f32.vlgmr.msra.gmra.mrb[32].mxu0 %vm646_vm2, %v3362_v31 }
0x137d   :  { %6200 = vmatpush3.bf16.msra.mxu0 %v7028_v2  ;;  %5839 = vmatprep.mubr.msk.f32.mxu0 %vm6574_vm0, %v6575_v1 }
0x137e   :  { %6201 = vmatprep.subr.bf16.mxu0 %v6573_v0 }
0x1381   :  { %6203 = vmatpush3.bf16.msra.mxu0 %v7031_v51 }
0x1382   :  { %6210 = vmatprep.subr.bf16.mxu0 %v6573_v0 }
0x1433   :  { %v3440_v44 = vpop.f32.mrb[6].mxu1 }
0x1434   :  { %v6286_v8 = vadd.f32 %v7087_v61, %v3440_v44  ;;  %v5786_v32 = vpop.f32.mrb[7].mxu1 }
0x1436   :  { %6465 = vtanh.f32 %v6286_v8  ;;  %v5106_v60 = vmul.f32 -1.442695, %v6286_v8 }
0x143b   :  { %v3618_v36 = vpop.f32.mrb[32].mxu1 }
0x143c   :  { %v5808_v39 = vpop.f32.mrb[33].mxu1 }
0x1440   :  { %v6466_v19 = vpop.eup %6465 }
0x1441   :  { %3454 = vrot.lane.b32.xlu0 %v6466_v19, %s6576_s16 }
0x1447   :  { %v3548_v2 = vpop.f32.mrb[30].mxu0  ;;  %v3798_v41 = vpop.f32.mrb[34].mxu1 }
0x1448   :  { %v3619_v46 = vadd.f32 %v3618_v36, %v3548_v2  ;;  %v5797_v48 = vpop.f32.mrb[31].mxu0  ;;  %v5830_v30 = vpop.f32.mrb[35].mxu1 }
0x144a   :  { %v3627_v55 = vadd.f32 %v7091_v33, %v3619_v46 }
0x144c   :  { %6467 = vtanh.f32 %v3627_v55  ;;  %v5110_v40 = vmul.f32 -1.442695, %v3627_v55 }
0x144f   :  { %v3728_v51 = vpop.f32.mrb[32].mxu0 }
0x1450   :  { %v3799_v53 = vadd.f32 %v3798_v41, %v3728_v51  ;;  %v5819_v57 = vpop.f32.mrb[33].mxu0 }
0x1452   :  { %v3807_v61 = vadd.f32 %v7094_v49, %v3799_v53 }
0x1454   :  { %6469 = vtanh.f32 %v3807_v61  ;;  %v5114_v50 = vmul.f32 -1.442695, %v3807_v61 }
0x1455   :  { %6471 = vpow2.f32 %v5106_v60 }
0x1456   :  { %v6468_v59 = vpop.eup %6467 }
0x1457   :  { %3637 = vrot.lane.b32.xlu1 %v6468_v59, %s6576_s16 }
0x145e   :  { %v6470_v45 = vpop.eup %6469 }
0x145f   :  { %3817 = vrot.lane.b32.xlu0 %v6470_v45, %s6576_s16  ;;  %v6472_v62 = vpop.eup %6471 }
0x1460   :  { %v3448_v56 = vadd.f32 1.0, %v6472_v62 }
0x1462   :  { %6473 = vrcp.f32 %v3448_v56 }
0x1463   :  { %6475 = vpow2.f32 %v5110_v40 }
0x1464   :  { %6477 = vpow2.f32 %v5114_v50 }
0x146c   :  { %v6474_v63 = vpop.eup %6473 }
0x146d   :  { %v6476_v42 = vpop.eup %6475  ;;  %v3452_v12 = vmul.f32 %v6474_v63, %v7103_v9 }
0x146e   :  { %v3631_v47 = vadd.f32 1.0, %v6476_v42  ;;  %v6478_v34 = vpop.eup %6477 }
0x146f   :  { %v3811_v37 = vadd.f32 1.0, %v6478_v34 }
0x1470   :  { %6479 = vrcp.f32 %v3631_v47 }
0x1471   :  { %6481 = vrcp.f32 %v3811_v37 }
0x147a   :  { %v6480_v43 = vpop.eup %6479 }
0x147b   :  { %v6482_v5 = vpop.eup %6481  ;;  %v3635_v16 = vmul.f32 %v6480_v43, %v7108_v14 }
0x147c   :  { %v3815_v58 = vmul.f32 %v6482_v5, %v7112_v21 }
0x14b3   :  { %v3455_v54 = vpop.permute.xlu0 %3454 }
0x14b4   :  { %v3457_v38 = vmul.f32 %v6474_v63, %v3455_v54 }
0x14b6   :  { %3459 = vrot.lane.b32.xlu1 %v3457_v38, %s6577_s17 }
0x14c9   :  { %v3638_v3 = vpop.permute.xlu1 %3637 }
0x14ca   :  { %v3640_v4 = vmul.f32 %v6480_v43, %v3638_v3 }
0x14cc   :  { %3642 = vrot.lane.b32.xlu0 %v3640_v4, %s6577_s17 }
0x14d1   :  { %v3818_v6 = vpop.permute.xlu0 %3817 }
0x14d2   :  { %v3820_v7 = vmul.f32 %v6482_v5, %v3818_v6 }
0x14d4   :  { %3822 = vrot.lane.b32.xlu1 %v3820_v7, %s6577_s17  ;;  %v4400_v7 = vld [vmem:[#allocation2] sm:$0xff] }
0x1528   :  { %v3460_v10 = vpop.permute.xlu1 %3459 }
0x1529   :  { %v3462_v15 = vadd.f32 %v3460_v10, %v3452_v12  ;;  %v4402_v12 = vld [vmem:[%s7291_s1] sm:$0xff] }
0x152b   :  { %6483 = vtanh.f32 %v3462_v15  ;;  %v4404_v15 = vmul.f32 %v4402_v12, %v4400_v7 }
0x1535   :  { %v6484_v18 = vpop.eup %6483 }
0x1536   :  { %3465 = vrot.lane.b32.xlu0 %v6484_v18, %s6576_s16 }
0x153e   :  { %v3643_v20 = vpop.permute.xlu0 %3642 }
0x153f   :  { %v7168_v22 = vadd.f32 %v3643_v20, %v3635_v16 }
0x1541   :  { %6485 = vtanh.f32 %v7168_v22 }
0x1546   :  { %v3823_v24 = vpop.permute.xlu1 %3822 }
0x1547   :  { %v7172_v52 = vadd.f32 %v3823_v24, %v3815_v58 }
0x1549   :  { %6487 = vtanh.f32 %v7172_v52 }
0x154b   :  { %v6486_v9 = vpop.eup %6485 }
0x154c   :  { %3648 = vrot.lane.b32.xlu1 %v6486_v9, %s6576_s16 }
0x1553   :  { %v6488_v25 = vpop.eup %6487 }
0x1554   :  { %3828 = vrot.lane.b32.xlu0 %v6488_v25, %s6576_s16 }
0x15a8   :  { %v3466_v26 = vpop.permute.xlu0 %3465 }
0x15a9   :  { %v3468_v14 = vmul.f32 %v6474_v63, %v3466_v26 }
0x15ab   :  { %3921 = vrot.lane.b32.xlu0 %v3468_v14, %s6577_s17 }
0x15be   :  { %v3649_v35 = vpop.permute.xlu1 %3648 }
0x15bf   :  { %v3651_v27 = vmul.f32 %v6480_v43, %v3649_v35 }
0x15c1   :  { %3846 = vrot.lane.b32.xlu1 %v3651_v27, %s6577_s17 }
0x15c6   :  { %v3829_v21 = vpop.permute.xlu0 %3828 }
0x15c7   :  { %v3831_v28 = vmul.f32 %v6482_v5, %v3829_v21 }
0x15c9   :  { %3833 = vrot.lane.b32.xlu1 %v3831_v28, %s6577_s17 }
0x161d   :  { %v3922_v29 = vpop.permute.xlu0 %3921 }
0x161e   :  { %5851 = vmatmul.mubr.msk.f32.vlgmr.msra.gmra.mrb[36].mxu1 %vm646_vm2, %v3922_v29 }
0x161f   :  { %6218 = vmatpush3.bf16.msra.mxu1 %v7049_v11  ;;  %5872 = vmatprep.mubr.msk.f32.mxu1 %vm6574_vm0, %v6575_v1 }
0x1620   :  { %6219 = vmatprep.subr.bf16.mxu1 %v6573_v0 }
0x1623   :  { %6221 = vmatpush3.bf16.msra.mxu1 %v7054_v13 }
0x1624   :  { %6228 = vmatprep.subr.bf16.mxu1 %v6573_v0 }
0x1633   :  { %v3847_v31 = vpop.permute.xlu1 %3846 }
0x1634   :  { %5840 = vmatmul.mubr.msk.f32.vlgmr.msra.gmra.mrb[34].mxu0 %vm646_vm2, %v3847_v31  ;;  %5873 = vmatmul.mubr.msk.f32.vlgmr.msra.gmra.mrb[38].mxu1 %vm646_vm2, %v3847_v31 }
0x1635   :  { %6212 = vmatpush3.bf16.msra.mxu0 %v7061_v17  ;;  %5861 = vmatprep.mubr.msk.f32.mxu0 %vm6574_vm0, %v6575_v1 }
0x1636   :  { %6213 = vmatprep.subr.bf16.mxu0 %v6573_v0  ;;  %6230 = vmatpush3.bf16.msra.mxu1 %v7049_v11 }
0x1637   :  { %6231 = vmatprep.subr.bf16.mxu1 %v6573_v0  ;;  %5894 = vmatprep.mubr.msk.f32.mxu1 %vm6574_vm0, %v6575_v1 }
0x1639   :  { %6215 = vmatpush3.bf16.msra.mxu0 %v7066_v23 }
0x163a   :  { %6233 = vmatpush3.bf16.msra.mxu1 %v7054_v13  ;;  %6222 = vmatprep.subr.bf16.mxu0 %v6573_v0 }
0x163b   :  { %v3834_v44 = vpop.permute.xlu1 %3833 }
0x163c   :  { %3836 = vst.msk [vmem:[#allocation2 + $0xa] sm:$0x3] %vm1475_vm3, %v3834_v44  ;;  %5862 = vmatmul.mubr.msk.f32.vlgmr.msra.gmra.mrb[36].mxu0 %vm646_vm2, %v3834_v44  ;;  %v4407_v44 = vld [vmem:[#allocation3 + $0xd0] sm:$0xff] }
0x163d   :  { %6224 = vmatpush3.bf16.msra.mxu0 %v7061_v17  ;;  %5883 = vmatprep.mubr.msk.f32.mxu0 %vm6574_vm0, %v6575_v1 }
0x163e   :  { %6225 = vmatprep.subr.bf16.mxu0 %v6573_v0 }
0x1641   :  { %6227 = vmatpush3.bf16.msra.mxu0 %v7066_v23 }
0x16f1   :  { %v3991_v11 = vpop.f32.mrb[36].mxu1 }
0x16f2   :  { %v5852_v8 = vpop.f32.mrb[37].mxu1 }
0x16f3   :  { %v4408_v8 = vld [vmem:[#allocation3 + $0xd8] sm:$0xff] }
0x1707   :  { %v3916_v32 = vpop.f32.mrb[34].mxu0  ;;  %v4171_v13 = vpop.f32.mrb[38].mxu1 }
0x1708   :  { %v3992_v36 = vadd.f32 %v3991_v11, %v3916_v32  ;;  %v5841_v39 = vpop.f32.mrb[35].mxu0  ;;  %v5874_v19 = vpop.f32.mrb[39].mxu1  ;;  %v4409_v32 = vld [vmem:[#allocation3 + $0xe0] sm:$0xff] }
0x170a   :  { %v4000_v2 = vadd.f32 %v7091_v33, %v3992_v36 }
0x170c   :  { %6489 = vtanh.f32 %v4000_v2  ;;  %v5118_v55 = vmul.f32 -1.442695, %v4000_v2  ;;  %v4403_v2 = vld [vmem:[%s7291_s1 + $0x8] sm:$0xff] }
0x170f   :  { %v4101_v41 = vpop.f32.mrb[36].mxu0 }
0x1710   :  { %v4172_v46 = vadd.f32 %v4171_v13, %v4101_v41  ;;  %v5863_v17 = vpop.f32.mrb[37].mxu0  ;;  %v6238_v13 = vpack.c.bf16 %v4409_v32, %v4408_v8 }
0x1711   :  { %v5127_v17 = vld [vmem:[#allocation3 + $0xe8] ss:$0 sm:$0xff] }
0x1712   :  { %v4180_v48 = vadd.f32 %v7094_v49, %v4172_v46 }
0x1714   :  { %6491 = vtanh.f32 %v4180_v48  ;;  %v5122_v51 = vmul.f32 -1.442695, %v4180_v48 }
0x1715   :  { %6493 = vpow2.f32 %v5118_v55 }
0x1716   :  { %v6490_v30 = vpop.eup %6489  ;;  %6495 = vpow2.f32 %v5122_v51 }
0x1717   :  { %4010 = vrot.lane.b32.xlu0 %v6490_v30, %s6576_s16 }
0x171e   :  { %v6492_v23 = vpop.eup %6491 }
0x171f   :  { %4190 = vrot.lane.b32.xlu1 %v6492_v23, %s6576_s16  ;;  %v6494_v53 = vpop.eup %6493 }
0x1720   :  { %v4004_v57 = vadd.f32 1.0, %v6494_v53  ;;  %v6496_v33 = vpop.eup %6495 }
0x1721   :  { %v4184_v61 = vadd.f32 1.0, %v6496_v33 }
0x1722   :  { %6497 = vrcp.f32 %v4004_v57 }
0x1723   :  { %6499 = vrcp.f32 %v4184_v61 }
0x172c   :  { %v6498_v59 = vpop.eup %6497 }
0x172d   :  { %v6500_v62 = vpop.eup %6499  ;;  %v4008_v50 = vmul.f32 %v6498_v59, %v7168_v22 }
0x172e   :  { %v4188_v38 = vmul.f32 %v6500_v62, %v7172_v52 }
0x1789   :  { %v4011_v45 = vpop.permute.xlu0 %4010 }
0x178a   :  { %v4013_v60 = vmul.f32 %v6498_v59, %v4011_v45  ;;  %v4588_v45 = vld [vmem:[%s7292_s2 + $0x8] sm:$0xff] }
0x178c   :  { %4015 = vrot.lane.b32.xlu0 %v4013_v60, %s6577_s17 }
0x1791   :  { %v4191_v56 = vpop.permute.xlu1 %4190 }
0x1792   :  { %v4193_v40 = vmul.f32 %v6500_v62, %v4191_v56  ;;  %v4587_v56 = vld [vmem:[%s7292_s2] sm:$0xff] }
0x1794   :  { %4195 = vrot.lane.b32.xlu1 %v4193_v40, %s6577_s17 }
0x17fe   :  { %v4016_v63 = vpop.permute.xlu0 %4015 }
0x17ff   :  { %v4018_v54 = vadd.f32 %v4016_v63, %v4008_v50 }
0x1801   :  { %6501 = vtanh.f32 %v4018_v54 }
0x1806   :  { %v4196_v42 = vpop.permute.xlu1 %4195 }
0x1807   :  { %v4198_v47 = vadd.f32 %v4196_v42, %v4188_v38 }
0x1809   :  { %6503 = vtanh.f32 %v4198_v47 }
0x180b   :  { %v6502_v34 = vpop.eup %6501 }
0x180c   :  { %4021 = vrot.lane.b32.xlu0 %v6502_v34, %s6576_s16 }
0x1813   :  { %v6504_v37 = vpop.eup %6503 }
0x1814   :  { %4201 = vrot.lane.b32.xlu1 %v6504_v37, %s6576_s16 }
0x187e   :  { %v4022_v43 = vpop.permute.xlu0 %4021 }
0x187f   :  { %v4024_v3 = vmul.f32 %v6498_v59, %v4022_v43 }
0x1881   :  { %4291 = vrot.lane.b32.xlu1 %v4024_v3, %s6577_s17 }
0x1886   :  { %v4202_v4 = vpop.permute.xlu1 %4201 }
0x1887   :  { %v4204_v5 = vmul.f32 %v6500_v62, %v4202_v4 }
0x1889   :  { %4206 = vrot.lane.b32.xlu0 %v4204_v5, %s6577_s17 }
0x18f3   :  { %v4292_v6 = vpop.permute.xlu1 %4291 }
0x18f4   :  { %5895 = vmatmul.mubr.msk.f32.vlgmr.msra.gmra.mrb[40].mxu1 %vm646_vm2, %v4292_v6 }
0x18fb   :  { %v4207_v10 = vpop.permute.xlu0 %4206 }
0x18fc   :  { %4209 = vst.msk [vmem:[#allocation2 + $0xc] sm:$0x3] %vm1475_vm3, %v4207_v10  ;;  %5884 = vmatmul.mubr.msk.f32.vlgmr.msra.gmra.mrb[38].mxu0 %vm646_vm2, %v4207_v10 }
0x18fd   :  { %5905 = vmatprep.mubr.msk.f32.mxu0 %vm646_vm2, %v4404_v15 }
0x19c7   :  { %v4361_v18 = vpop.f32.mrb[40].mxu1 }
0x19c8   :  { %v5896_v16 = vpop.f32.mrb[41].mxu1 }
0x19cf   :  { %v4286_v20 = vpop.f32.mrb[38].mxu0 }
0x19d0   :  { %v4362_v22 = vadd.f32 %v4361_v18, %v4286_v20  ;;  %v5885_v58 = vpop.f32.mrb[39].mxu0 }
0x19d2   :  { %v4370_v24 = vadd.f32 %v7094_v49, %v4362_v22  ;;  %v4406_v49 = vld [vmem:[#allocation3 + $0xc8] sm:$0xff] }
0x19d3   :  { %v6234_v11 = vpack.c.bf16 %v4407_v44, %v4406_v49  ;;  %v4848_v49 = vld [vmem:[#allocation3 + $0x118] sm:$0xff]  ;;  %v4849_v44 = vld [vmem:[#allocation3 + $0x120] sm:$0xff] }
0x19d4   :  { %6505 = vtanh.f32 %v4370_v24  ;;  %v5126_v9 = vmul.f32 -1.442695, %v4370_v24 }
0x19d5   :  { %6235 = vmatprep.subr.bf16.mxu0 %v6234_v11 }
0x19d6   :  { %6507 = vpow2.f32 %v5126_v9  ;;  %6237 = vmatpush3.bf16.msra.mxu0 %v6234_v11  ;;  %v6261_v11 = vpack.c.bf16 %v4849_v44, %v4848_v49 }
0x19d7   :  { %6239 = vmatprep.subr.bf16.mxu0 %v6238_v13 }
0x19da   :  { %6241 = vmatpush3.bf16.msra.mxu0 %v6238_v13  ;;  %v4850_v13 = vld [vmem:[#allocation3 + $0x128] sm:$0xff] }
0x19db   :  { %6248 = vmatprep.subr.bf16.mxu0 %v6573_v0 }
0x19de   :  { %v6506_v52 = vpop.eup %6505 }
0x19df   :  { %4380 = vrot.lane.b32.xlu0 %v6506_v52, %s6576_s16 }
0x19e0   :  { %v6508_v25 = vpop.eup %6507 }
0x19e1   :  { %v4374_v26 = vadd.f32 1.0, %v6508_v25  ;;  %v4613_v25 = vld [vmem:[%s7293_s3] sm:$0x3]  ;;  %s6579_s3 = smov [#allocation6]  }
0x19e2   :  { %s5026_s4 = sshll.u32 %s6579_s3, 4  ;;  %s5027_s4 = int_to_ptr.vmem [resolvable:$true] %s5026_s4 }
0x19e3   :  { %6509 = vrcp.f32 %v4374_v26  ;;  %v4766_v26 = vld [vmem:[#allocation3 + $0xf0] sm:$0xff]  ;;  %s6544_s7 = scalar_lea.vmem %s5027_s4, 32  ;;  %p6549_p9 = scmp.lt.s32.totalorder %s5027_s4, %s5027_s4 }
0x19e4   :  { %p6545_p8 = scmp.ne.s32.totalorder %s5027_s4, %s6544_s7  ;;  %p6550_p10 = scmp.lt.s32.totalorder %s6544_s7, %s6544_s7 }
0x19e6   :  { %p6551_p11 = por %p6550_p10, %p6549_p9 }
0x19e8   :  { %p6552_p12 = pnand %p6551_p11, %p6545_p8 }
0x19ed   :  { %v6510_v14 = vpop.eup %6509 }
0x19ee   :  { %v4378_v21 = vmul.f32 %v6510_v14, %v4198_v47 }
0x1a51   :  { %v4381_v35 = vpop.permute.xlu0 %4380 }
0x1a52   :  { %v4383_v27 = vmul.f32 %v6510_v14, %v4381_v35  ;;  %v4768_v35 = vld [vmem:[#allocation3 + $0x100] sm:$0xff] }
0x1a54   :  { %4385 = vrot.lane.b32.xlu1 %v4383_v27, %s6577_s17 }
0x1ac6   :  { %v4386_v28 = vpop.permute.xlu1 %4385 }
0x1ac7   :  { %v4388_v29 = vadd.f32 %v4386_v28, %v4378_v21  ;;  %v4769_v21 = vld [vmem:[#allocation3 + $0x108] sm:$0xff] }
0x1ac8   :  { %v6258_v28 = vpack.c.bf16 %v4769_v21, %v4768_v35 }
0x1ac9   :  { %6511 = vtanh.f32 %v4388_v29 }
0x1ad3   :  { %v6512_v31 = vpop.eup %6511 }
0x1ad4   :  { %4391 = vrot.lane.b32.xlu0 %v6512_v31, %s6576_s16 }
0x1b46   :  { %v4392_v36 = vpop.permute.xlu0 %4391 }
0x1b47   :  { %v4394_v39 = vmul.f32 %v6510_v14, %v4392_v36  ;;  %v4767_v14 = vld [vmem:[#allocation3 + $0xf8] sm:$0xff]  ;;  %v4851_v36 = vld [vmem:[#allocation3 + $0x130] sm:$0xff] }
0x1b48   :  { %v6255_v27 = vpack.c.bf16 %v4767_v14, %v4766_v26 }
0x1b49   :  { %4396 = vrot.lane.b32.xlu1 %v4394_v39, %s6577_s17  ;;  %v6264_v39 = vpack.c.bf16 %v4851_v36, %v4850_v13 }
0x1bbb   :  { %v4397_v19 = vpop.permute.xlu1 %4396 }
0x1bbc   :  { %4399 = vst.msk [vmem:[#allocation2 + $0xe] sm:$0x3] %vm1475_vm3, %v4397_v19  ;;  %v4931_v19 = vld [vmem:[#allocation3 + $0x140] sm:$0xff] }
0x1bc3   :  { %v4401_v41 = vld [vmem:[#allocation2 + $0x8] sm:$0xff] }
0x1bc4   :  { %v4405_v46 = vmul.f32 %v4403_v2, %v4401_v41  ;;  %v4932_v2 = vld [vmem:[#allocation3 + $0x148] sm:$0xff]  ;;  %v4933_v41 = vld [vmem:[#allocation3 + $0x150] sm:$0xff] }
0x1bc6   :  { %5906 = vmatmul.mubr.msk.f32.vlgmr.msra.gmra.mrb[40].mxu0 %vm646_vm2, %v4405_v46  ;;  %v6267_v46 = vpack.c.bf16 %v4932_v2, %v4931_v19 }
0x1bc7   :  { %5919 = vmatprep.mubr.msk.f32.mxu0 %vm6574_vm0, %v6575_v1 }
0x1c99   :  { %v5907_v48 = vpop.f32.mrb[40].mxu0 }
0x1c9a   :  { %v4493_v30 = vadd.f32 %v5907_v48, %v5127_v17  ;;  %v4487_v23 = vpop.f32.mrb[41].mxu0 }
0x1c9b   :  { %v4488_v55 = vadd.f32 %v5127_v17, %v4487_v23  ;;  %v4934_v17 = vld [vmem:[#allocation3 + $0x158] sm:$0xff]  ;;  %v4936_v23 = vld [vmem:[#allocation3 + $0x168] sm:$0xff] }
0x1c9c   :  { %v6270_v48 = vpack.c.bf16 %v4934_v17, %v4933_v41 }
0x1c9d   :  { %5912 = vmatprep.mubr.msk.f32.mxu1 %vm646_vm2, %v4488_v55  ;;  %v6311_v51 = vpack.i.bf16 %v4493_v30, %v4488_v55 }
0x1c9f   :  { %6312 = vrot.lane.b32.xlu0 %v6311_v51, %s6578_s27 }
0x1d11   :  { %v6313_v53 = vpop.permute.xlu0 %6312 }
0x1d12   :  { %v6315_v57 = vunpack.i.h.bf16 %v6313_v53  ;;  %v6314_v33 = vunpack.i.l.bf16 %v6313_v53 }
0x1d14   :  { %v6242_v61 = vpack.c.bf16 %v6315_v57, %v6314_v33  ;;  %v4937_v33 = vld [vmem:[#allocation3 + $0x170] sm:$0xff] }
0x1d16   :  { %6244 = vmatprep.subr.msk.bf16.mxu1 %vm6243_vm4, %v6242_v61 }
0x1d17   :  { %6247 = vmatpush3.bf16.xpose.msk.msra.mxu1 %vm6243_vm4, %v6242_v61  ;;  %v4938_v61 = vld [vmem:[#allocation3 + $0x178] sm:$0xff] }
0x1d18   :  { %6251 = vmatprep.subr.bf16.mxu1 %v6573_v0 }
0x1d1e   :  { %5913 = vmatmul.mubr.msk.f32.vlgmr.msra.gmra.mrb[42].mxu1 %vm646_vm2, %v4493_v30  ;;  %v4935_v30 = vld [vmem:[#allocation3 + $0x160] sm:$0xff] }
0x1d1f   :  { %5926 = vmatprep.mubr.msk.f32.mxu1 %vm6574_vm0, %v6575_v1  ;;  %v6273_v55 = vpack.c.bf16 %v4936_v23, %v4935_v30 }
0x1df1   :  { %v5914_v59 = vpop.f32.mrb[42].mxu1 }
0x1df2   :  { %v4586_v60 = vmul.f32 0.17677669, %v5914_v59  ;;  %v4576_v62 = vpop.f32.mrb[43].mxu1  ;;  %v6276_v59 = vpack.c.bf16 %v4938_v61, %v4937_v33 }
0x1df3   :  { %v4585_v40 = vmul.f32 0.17677669, %v4576_v62 }
0x1df4   :  { %v4590_v50 = vadd.f32 %v4588_v45, %v4586_v60  ;;  %v5138_v45 = vld [vmem:[#allocation3 + $0x138] ss:$0 sm:$0xff] }
0x1df5   :  { %v4589_v63 = vadd.f32 %v4587_v56, %v4585_v40 }
0x1df6   :  { %v4594_v54 = vsel %vm43_vm1, %v4590_v50, -inf }
0x1df7   :  { %4595 = vmax.xlane.f32.xlu0 %v4594_v54  ;;  %v4591_v38 = vsel %vm43_vm1, %v4589_v63, -inf }
0x1df8   :  { %4592 = vmax.xlane.f32.xlu1 %v4591_v38 }
0x1e84   :  { %v4596_v42 = vpop.xlane.xlu0 %4595 }
0x1e85   :  { %v4598_v47 = vsub.f32 %v4590_v50, %v4596_v42  ;;  %v4593_v34 = vpop.xlane.xlu1 %4592  ;;  %v5140_v50 = vld [vmem:[#allocation3 + $0x180] ss:$0 sm:$0xff] }
0x1e86   :  { %v4597_v37 = vsub.f32 %v4589_v63, %v4593_v34 }
0x1e87   :  { %v4601_v43 = vmul.f32 1.442695, %v4598_v47 }
0x1e88   :  { %v4599_v3 = vmul.f32 1.442695, %v4597_v37 }
0x1e89   :  { %6513 = vpow2.f32 %v4601_v43 }
0x1e8a   :  { %6515 = vpow2.f32 %v4599_v3 }
0x1e93   :  { %v6514_v4 = vpop.eup %6513 }
0x1e94   :  { %v6516_v5 = vpop.eup %6515  ;;  %v4606_v6 = vsel %vm43_vm1, %v6514_v4, 0.0 }
0x1e95   :  { %4607 = vadd.xlane.f32.xlu1 %v4606_v6  ;;  %v4603_v7 = vsel %vm43_vm1, %v6516_v5, 0.0 }
0x1e96   :  { %4604 = vadd.xlane.f32.xlu0 %v4603_v7 }
0x1eac   :  { %6317 = vrot.lane.b32.xlu0 %v6311_v51, %s6576_s16 }
0x1f22   :  { %v4608_v12 = vpop.xlane.xlu1 %4607 }
0x1f23   :  { %6517 = vrcp.f32 %v4608_v12  ;;  %v4605_v10 = vpop.xlane.xlu0 %4604 }
0x1f24   :  { %6519 = vrcp.f32 %v4605_v10 }
0x1f27   :  { %v6318_v15 = vpop.permute.xlu0 %6317 }
0x1f28   :  { %v6320_v18 = vunpack.i.h.bf16 %v6318_v15  ;;  %v6319_v16 = vunpack.i.l.bf16 %v6318_v15 }
0x1f2a   :  { %v6252_v20 = vpack.c.bf16 %v6320_v18, %v6319_v16 }
0x1f2c   :  { %6253 = vmatpush3.bf16.msra.mxu1 %v6252_v20 }
0x1f2d   :  { %v6518_v22 = vpop.eup %6517  ;;  %6260 = vmatprep.subr.bf16.mxu1 %v6573_v0 }
0x1f2e   :  { %v6520_v58 = vpop.eup %6519  ;;  %v4612_v24 = vmul.f32 %v6518_v22, %v6514_v4 }
0x1f2f   :  { %v4610_v52 = vmul.f32 %v6520_v58, %v6516_v5 }
0x1f31   :  { %v6249_v9 = vpack.c.bf16 %v4612_v24, %v4610_v52 }
0x1f33   :  { %6250 = vmatpush3.bf16.msra.mxu0 %v6249_v9 }
0x1f34   :  { %6254 = vmatprep.subr.bf16.mxu0 %v6573_v0 }
0x1f36   :  { %5920 = vmatmul.mubr.msk.f32.vlgmr.msra.gmra.mrb[42].mxu0 %vm43_vm1, %v4613_v25 }
0x1f37   :  { %5937 = vmatprep.mubr.msk.f32.mxu0 %vm6574_vm0, %v6575_v1  ;;  %6256 = vmatpush3.bf16.msra.mxu0 %v6255_v27 }
0x1f38   :  { %6257 = vmatprep.subr.bf16.mxu0 %v6573_v0 }
0x1f3b   :  { %6259 = vmatpush3.bf16.msra.mxu0 %v6258_v28 }
0x1f3c   :  { %6266 = vmatprep.subr.bf16.mxu0 %v6573_v0 }
0x2009   :  { %v4683_v29 = vpop.f32.mrb[42].mxu0 }
0x200a   :  { %v5921_v31 = vpop.f32.mrb[43].mxu0  ;;  %5927 = vmatmul.mubr.msk.f32.vlgmr.msra.gmra.mrb[44].mxu1 %vm43_vm1, %v4683_v29 }
0x200b   :  { %5948 = vmatprep.mubr.msk.f32.mxu1 %vm6574_vm0, %v6575_v1  ;;  %6262 = vmatpush3.bf16.msra.mxu1 %v6261_v11 }
0x200c   :  { %6263 = vmatprep.subr.bf16.mxu1 %v6573_v0 }
0x200f   :  { %6265 = vmatpush3.bf16.msra.mxu1 %v6264_v39 }
0x20dd   :  { %v4762_v8 = vpop.f32.mrb[44].mxu1 }
0x20de   :  { %v5928_v32 = vpop.f32.mrb[45].mxu1  ;;  %5938 = vmatmul.mubr.msk.f32.vlgmr.msra.gmra.mrb[44].mxu0 %vm646_vm2, %v4762_v8 }
0x20df   :  { %5967 = vmatprep.mubr.msk.f32.mxu0 %vm6574_vm0, %v6575_v1  ;;  %6268 = vmatpush3.bf16.msra.mxu0 %v6267_v46  ;;  %v5136_v1 = vld [vmem:[#allocation3 + $0x110] ss:$0 sm:$0xff] }
0x20e0   :  { %6269 = vmatprep.subr.bf16.mxu0 %v6573_v0 }
0x20e3   :  { %6271 = vmatpush3.bf16.msra.mxu0 %v6270_v48 }
0x20e4   :  { %6272 = vmatprep.subr.bf16.mxu0 %v6573_v0 }
0x20e7   :  { %6274 = vmatpush3.bf16.msra.mxu0 %v6273_v55 }
0x20e8   :  { %6275 = vmatprep.subr.bf16.mxu0 %v6573_v0 }
0x20eb   :  { %6277 = vmatpush3.bf16.msra.mxu0 %v6276_v59 }
0x21b1   :  { %v4844_v51 = vpop.f32.mrb[44].mxu0 }
0x21b2   :  { %v4845_v53 = vadd.f32 %v5136_v1, %v4844_v51  ;;  %v5939_v57 = vpop.f32.mrb[45].mxu0 }
0x21b4   :  { %5949 = vmatmul.mubr.msk.f32.vlgmr.msra.gmra.mrb[46].mxu1 %vm646_vm2, %v4845_v53 }
0x2287   :  { %v4926_v60 = vpop.f32.mrb[46].mxu1 }
0x2288   :  { %v4927_v62 = vadd.f32 %v5138_v45, %v4926_v60  ;;  %v5950_v56 = vpop.f32.mrb[47].mxu1 }
0x228a   :  { %v4930_v40 = vmax.f32 %v4927_v62, 0.0 }
0x228c   :  { %5968 = vmatmul.mubr.msk.f32.vlgmr.msra.gmra.mrb[46].mxu0 %vm4944_vm5, %v4930_v40 }
0x235f   :  { %v5014_v0 = vpop.f32.mrb[46].mxu0 }
0x2360   :  { %v5015_v63 = vadd.f32 %v5140_v50, %v5014_v0  ;;  %v5969_v54 = vpop.f32.mrb[47].mxu0 }
0x2362   :  { %5019 = vst.msk [vmem:[#allocation6] sm:$0x3] %vm5018_vm6, %v5015_v63 }
0x2363   :  { %6555 = shalt.err (!%p6552_p12)
}
0x2364   :  { %s6556_s10 = scalar_lea.hbm %s7295_s5, 32 }
0x2365   :  { %p6557_p13 = scmp.ne.s32.totalorder %s7295_s5, %s6556_s10  ;;  %p6560_p0 = scmp.lt.u32.totalorder %s6556_s10, %s7295_s5 }
0x2367   :  { %p6562_p1 = pnand %p6560_p0, %p6557_p13 }
0x2369   :  { %6565 = shalt.err (!%p6562_p1)
}
0x236a   :  { %5029 = dma.vmem_to_hbm [thread:$0]  %s5027_s4, 32, %s7295_s5, [#allocation5]  }
0x236b   :  { %6568 = dma.done.wait [#allocation5], 32  }
0x236c   :  { %6569 = vsyncadd [#allocation5], 4294967264 }
0x236d   :  { %5033 = vsyncpa [#allocation4], 1 }
0x236e   :  { %5034 = vsyncpa [#allocation5], 1 }

</bundles_post_ra>
